<compile_context>
chip_gen: v6e
topology: v6e:2x2x1
jax: 0.10.0
libtpu: 0.0.40
codegen_flags: <defaults>
</compile_context>

<pallas_src>
import jax
import jax.numpy as jnp
from jax.experimental import pallas as pl
from jax.experimental.pallas import tpu as pltpu


def ln_linear_kernel(x_ref, gamma_ref, beta_ref, wt_ref, bias_ref, o_ref):
    # x_ref: (tm, D) f32   gamma/beta/bias: (1, D) f32   wt_ref: (D, D) bf16
    x = x_ref[...]
    inv_d = 1.0 / x.shape[-1]
    # One-pass statistics: both reductions read x once.
    mean = jnp.sum(x, axis=-1, keepdims=True) * inv_d
    mean_sq = jnp.sum(x * x, axis=-1, keepdims=True) * inv_d
    var = mean_sq - mean * mean
    rstd = jax.lax.rsqrt(var + 1e-5)
    # Fused normalize + affine + bf16 cast (single elementwise pass over x).
    y = ((x - mean) * (rstd * gamma_ref[...]) + beta_ref[...]).astype(jnp.bfloat16)
    # bf16 MXU matmul, f32 accumulation.
    out = jnp.dot(y, wt_ref[...], preferred_element_type=jnp.float32)
    o_ref[...] = (out + bias_ref[...]).astype(o_ref.dtype)


def prepare_params(w, bias, gamma, beta):
    """One-time parameter prep (call at init, NOT per forward call).

    PyTorch Linear weight is (out, in); the MXU wants (in, out). Casting to
    bf16 here halves the weight DMA and keeps the transpose+cast off the
    per-call HBM-traffic budget.
    """
    wt = w.T.astype(jnp.bfloat16)                       # (in, out) bf16
    bias2 = bias.reshape(1, -1).astype(jnp.float32)
    gamma2 = gamma.reshape(1, -1).astype(jnp.float32)
    beta2 = beta.reshape(1, -1).astype(jnp.float32)
    return wt, bias2, gamma2, beta2


def _default_tm(M):
    """Row tile so that the grid has >=2 steps (per core on v7x)."""
    kind = ""
    try:
        kind = jax.devices()[0].device_kind.lower()
    except Exception:
        pass
    dual_tc = "v7" in kind
    if dual_tc:
        # Even step count with >=2 steps per core: each core overlaps x
        # prefetch / out writeback with compute; W^T stays resident per core.
        for cand in (96, 128, 64, 48, 32, 16, 8):
            steps = M // cand if M % cand == 0 else 0
            if steps >= 4 and steps % 2 == 0:
                return cand
    # Single TC (v5e/v6e): 2-4 steps -> double-buffer x/out, W resident.
    for cand in (128, 192, 96, 256, 64, 48, 32, 16, 8):
        if M % cand == 0 and (M // cand) >= 2:
            return cand
    return M


def layernorm_linear(x, gamma2, beta2, wt, bias2, *, tm=None):
    """x: (B, S, D) f32; wt: (D, D) bf16 pre-transposed; gamma2/beta2/bias2: (1, D) f32."""
    B, S, D = x.shape
    M = B * S
    x2 = x.reshape(M, D)

    if tm is None:
        tm = _default_tm(M)
    assert M % tm == 0, "row count must be divisible by the row tile"

    cost = pl.CostEstimate(
        flops=2 * M * D * D + 8 * M * D,
        transcendentals=0,
        bytes_accessed=(M * D * x.dtype.itemsize        # x in
                        + D * D * 2                     # W^T (bf16)
                        + M * D * 4                     # out
                        + 3 * D * 4),                   # gamma/beta/bias
    )

    const1d = pl.BlockSpec((1, D), lambda i: (0, 0))     # grid-invariant: resident
    out = pl.pallas_call(
        ln_linear_kernel,
        out_shape=jax.ShapeDtypeStruct((M, D), x.dtype),
        grid_spec=pltpu.PrefetchScalarGridSpec(
            num_scalar_prefetch=0,
            grid=(M // tm,),
            in_specs=[
                pl.BlockSpec((tm, D), lambda i: (i, 0)),     # x rows (pipelined)
                const1d,                                      # gamma
                const1d,                                      # beta
                pl.BlockSpec((D, D), lambda i: (0, 0)),       # W^T (resident)
                const1d,                                      # bias
            ],
            out_specs=pl.BlockSpec((tm, D), lambda i: (i, 0)),
        ),
        compiler_params=pltpu.CompilerParams(
            dimension_semantics=("parallel",)),
        cost_estimate=cost,
    )(x2, gamma2, beta2, wt, bias2)
    return out.reshape(B, S, D)


if __name__ == "__main__":
    B, S, D = 1, 384, 768
    key = jax.random.PRNGKey(0)
    kx, kw, kb, kg, kbe = jax.random.split(key, 5)

    x = jax.random.normal(kx, (B, S, D), dtype=jnp.float32)
    # Deterministic synthetic parameters (PyTorch layout: weight is (out, in)).
    w = jax.random.normal(kw, (D, D), dtype=jnp.float32) * 0.02
    b = jax.random.normal(kb, (D,), dtype=jnp.float32) * 0.02
    gamma = jnp.ones((D,), dtype=jnp.float32) + 0.01 * jax.random.normal(kg, (D,))
    beta = 0.01 * jax.random.normal(kbe, (D,), dtype=jnp.float32)

    # One-time prep (kept out of the per-call hot path).
    wt, bias2, gamma2, beta2 = prepare_params(w, b, gamma, beta)
    wt, bias2, gamma2, beta2 = jax.block_until_ready((wt, bias2, gamma2, beta2))

    fwd = jax.jit(layernorm_linear)
    out = jax.block_until_ready(fwd(x, gamma2, beta2, wt, bias2))

    # Pure-JAX f32 reference; tolerance covers the bf16 MXU path (f32 accumulation).
    mean = jnp.mean(x, axis=-1, keepdims=True)
    var = jnp.mean((x - mean) ** 2, axis=-1, keepdims=True)
    xn = (x - mean) * jax.lax.rsqrt(var + 1e-5)
    ref = jnp.einsum("bsd,od->bso", xn * gamma + beta, w) + b
    max_err = float(jnp.max(jnp.abs(out - ref)))
    assert jnp.allclose(out, ref, atol=3e-2, rtol=3e-2), \
        f"mismatch vs reference (max abs err {max_err})"

    print("KERNEL_OK")
</pallas_src>

<mosaic_0001>
module attributes {stable_mosaic.version = 11 : i64} {
  func.func @ln_linear_kernel(%arg0: i32, %arg1: memref<128x768xf32, #tpu.memory_space<vmem>>, %arg2: memref<1x768xf32, #tpu.memory_space<vmem>>, %arg3: memref<1x768xf32, #tpu.memory_space<vmem>>, %arg4: memref<768x768xbf16, #tpu.memory_space<vmem>>, %arg5: memref<1x768xf32, #tpu.memory_space<vmem>>, %arg6: memref<128x768xf32, #tpu.memory_space<vmem>>) attributes {dimension_semantics = [#tpu.dimension_semantics<parallel>], iteration_bounds = array<i64: 3>, scalar_prefetch = 0 : i64, scratch_operands = 0 : i64, tpu.core_type = #tpu.core_type<tc>, window_params = [{transform_indices = @transform_0, window_bounds = array<i64: 128, 768>}, {pipeline_mode = #tpu.pipeline_mode<synchronous>, transform_indices = @transform_1, window_bounds = array<i64: 1, 768>}, {pipeline_mode = #tpu.pipeline_mode<synchronous>, transform_indices = @transform_2, window_bounds = array<i64: 1, 768>}, {pipeline_mode = #tpu.pipeline_mode<synchronous>, transform_indices = @transform_3, window_bounds = array<i64: 768, 768>}, {pipeline_mode = #tpu.pipeline_mode<synchronous>, transform_indices = @transform_4, window_bounds = array<i64: 1, 768>}, {transform_indices = @transform_5, window_bounds = array<i64: 128, 768>}]} {
    %c0 = arith.constant 0 : index
    %c0_0 = arith.constant 0 : index
    %0 = vector.load %arg1[%c0, %c0_0] : memref<128x768xf32, #tpu.memory_space<vmem>>, vector<128x768xf32>
    %cst = arith.constant dense<0.000000e+00> : vector<128xf32>
    %1 = vector.multi_reduction <add>, %0, %cst [1] : vector<128x768xf32> to vector<128xf32>
    %2 = vector.shape_cast %1 : vector<128xf32> to vector<128x1xf32>
    %cst_1 = arith.constant 0.00130208337 : f32
    %3 = vector.broadcast %cst_1 : f32 to vector<128x1xf32>
    %4 = arith.mulf %2, %3 : vector<128x1xf32>
    %5 = arith.mulf %0, %0 : vector<128x768xf32>
    %cst_2 = arith.constant dense<0.000000e+00> : vector<128xf32>
    %6 = vector.multi_reduction <add>, %5, %cst_2 [1] : vector<128x768xf32> to vector<128xf32>
    %7 = vector.shape_cast %6 : vector<128xf32> to vector<128x1xf32>
    %cst_3 = arith.constant 0.00130208337 : f32
    %8 = vector.broadcast %cst_3 : f32 to vector<128x1xf32>
    %9 = arith.mulf %7, %8 : vector<128x1xf32>
    %10 = arith.mulf %4, %4 : vector<128x1xf32>
    %11 = arith.subf %9, %10 : vector<128x1xf32>
    %cst_4 = arith.constant 9.99999974E-6 : f32
    %12 = vector.broadcast %cst_4 : f32 to vector<128x1xf32>
    %13 = arith.addf %11, %12 : vector<128x1xf32>
    %14 = math.rsqrt %13 : vector<128x1xf32>
    %15 = vector.broadcast %4 : vector<128x1xf32> to vector<128x768xf32>
    %16 = arith.subf %0, %15 : vector<128x768xf32>
    %c0_5 = arith.constant 0 : index
    %c0_6 = arith.constant 0 : index
    %17 = vector.load %arg2[%c0_5, %c0_6] : memref<1x768xf32, #tpu.memory_space<vmem>>, vector<1x768xf32>
    %18 = vector.broadcast %14 : vector<128x1xf32> to vector<128x768xf32>
    %19 = vector.broadcast %17 : vector<1x768xf32> to vector<128x768xf32>
    %20 = arith.mulf %18, %19 : vector<128x768xf32>
    %21 = arith.mulf %16, %20 : vector<128x768xf32>
    %c0_7 = arith.constant 0 : index
    %c0_8 = arith.constant 0 : index
    %22 = vector.load %arg3[%c0_7, %c0_8] : memref<1x768xf32, #tpu.memory_space<vmem>>, vector<1x768xf32>
    %23 = vector.broadcast %22 : vector<1x768xf32> to vector<128x768xf32>
    %24 = arith.addf %21, %23 : vector<128x768xf32>
    %25 = arith.truncf %24 : vector<128x768xf32> to vector<128x768xbf16>
    %c0_9 = arith.constant 0 : index
    %c0_10 = arith.constant 0 : index
    %26 = vector.load %arg4[%c0_9, %c0_10] : memref<768x768xbf16, #tpu.memory_space<vmem>>, vector<768x768xbf16>
    %cst_11 = arith.constant dense<0.000000e+00> : vector<128x768xf32>
    %27 = tpu.matmul %25, %26, %cst_11 {dimension_numbers = #tpu.dot_dimension_numbers<[1], [0], [0], [1], [0, 0, 1, 1], [], []>} : vector<128x768xbf16>, vector<768x768xbf16>, vector<128x768xf32> -> vector<128x768xf32>
    %c0_12 = arith.constant 0 : index
    %c0_13 = arith.constant 0 : index
    %28 = vector.load %arg5[%c0_12, %c0_13] : memref<1x768xf32, #tpu.memory_space<vmem>>, vector<1x768xf32>
    %29 = vector.broadcast %28 : vector<1x768xf32> to vector<128x768xf32>
    %30 = arith.addf %27, %29 : vector<128x768xf32>
    %c0_14 = arith.constant 0 : index
    %c0_15 = arith.constant 0 : index
    %31 = vector.load %arg6[%c0_14, %c0_15] : memref<128x768xf32, #tpu.memory_space<vmem>>, vector<128x768xf32>
    tpu.vector_store %arg6[%c0_14, %c0_15], %30 {strides = array<i32>} : memref<128x768xf32, #tpu.memory_space<vmem>>, vector<128x768xf32>,
    return
  }
  func.func @transform_0(%arg0: i32) -> (i32, i32) {
    %c0_i32 = arith.constant 0 : i32
    %c0_i32_0 = arith.constant 0 : i32
    return %arg0, %c0_i32 : i32, i32
  }
  func.func @transform_1(%arg0: i32) -> (i32, i32) {
    %c0_i32 = arith.constant 0 : i32
    %c0_i32_0 = arith.constant 0 : i32
    %c0_i32_1 = arith.constant 0 : i32
    return %c0_i32, %c0_i32_0 : i32, i32
  }
  func.func @transform_2(%arg0: i32) -> (i32, i32) {
    %c0_i32 = arith.constant 0 : i32
    %c0_i32_0 = arith.constant 0 : i32
    %c0_i32_1 = arith.constant 0 : i32
    return %c0_i32, %c0_i32_0 : i32, i32
  }
  func.func @transform_3(%arg0: i32) -> (i32, i32) {
    %c0_i32 = arith.constant 0 : i32
    %c0_i32_0 = arith.constant 0 : i32
    %c0_i32_1 = arith.constant 0 : i32
    return %c0_i32, %c0_i32_0 : i32, i32
  }
  func.func @transform_4(%arg0: i32) -> (i32, i32) {
    %c0_i32 = arith.constant 0 : i32
    %c0_i32_0 = arith.constant 0 : i32
    %c0_i32_1 = arith.constant 0 : i32
    return %c0_i32, %c0_i32_0 : i32, i32
  }
  func.func @transform_5(%arg0: i32) -> (i32, i32) {
    %c0_i32 = arith.constant 0 : i32
    %c0_i32_0 = arith.constant 0 : i32
    return %arg0, %c0_i32 : i32, i32
  }
}

</mosaic_0001>

<bundles_post_ra>
// kernel: layernorm_linear.1
= control target key start
LH: loop header
LB: loop body
LE: loop exit
PB: predicated region body
PF: predicated region fallthrough
CT: control target
= control target key end

     0   :  { %10 = vsyncpa [#allocation3], 0  ;;  %s7601_s0 = inlined_call_operand.hbm [shape: f32[384,768], index: 0, kind: input, shape index: {}]   ;;  %s7602_s1 = inlined_call_operand.hbm [shape: f32[1,768], index: 1, kind: input, shape index: {}]   ;;  %s7603_s2 = inlined_call_operand.hbm [shape: f32[1,768], index: 2, kind: input, shape index: {}]   ;;  %s7604_s3 = inlined_call_operand.hbm [shape: bf16[768,768], index: 3, kind: input, shape index: {}]   ;;  %s7605_s4 = inlined_call_operand.hbm [shape: f32[1,768], index: 4, kind: input, shape index: {}]   ;;  %s7606_s5 = inlined_call_operand.hbm [shape: f32[384,768], index: 5, kind: output, shape index: {}]  }
   0x1   :  { %12 = vsyncpa [#allocation3 + $0x1], 0 }
   0x2   :  { %13 = vsyncpa [#allocation6], 0 }
   0x3   :  { %14 = vsyncpa [#allocation9], 0 }
   0x4   :  { %15 = vsyncpa [#allocation4], 0 }
   0x5   :  { %17 = vsyncpa [#allocation4 + $0x1], 0  ;;  %s5550_s18 = smov 0   ;;  %s5552_s19 = smov 0  }
   0x6   :  { %s5554_s20 = smov 0   ;;  %s5556_s21 = smov 0  }
   0x7 LB: > { %s5571_s22 = sadd.s32 4294967295, %s5506_s21   ;;  %s4305_s23 = sadd.s32 4294967294, %s5506_s21   ;;  %s5506_s21 = sphi %s5556_s21, %s7905_s21   ;;  %s5502_s20 = sphi %s5554_s20, %s7904_s20   ;;  %s5498_s19 = sphi %s5552_s19, %s7903_s19   ;;  %s5494_s18 = sphi %s5550_s18, %s7902_s18  }
   0x8   : > { %p43_p0 = scmp.ne.s32.totalorder %s5498_s19, %s5494_s18  ;;  %p7607_p1 = scmp.eq.s32.totalorder %s5571_s22, 0 }
   0x9   : > { %p157_p3 = scmp.eq.s32.totalorder %s4305_s23, 2  ;;  %p4306_p5 = scmp.ge.s32.totalorder %s5506_s21, 1 }
   0xa   : > { %p5580_p4 = por %p7607_p1, %p43_p0  ;;  %p164_p7 = scmp.lt.s32.totalorder %s5506_s21, 4 }
   0xb   : > { %p5585_p6 = por %p157_p3, %p43_p0  ;;  %s5508_s27 = smov [#allocation5]  }
   0xc   : > { %s7691_s24 = scalar_select %p5580_p4, 1, 0 }
   0xd   : > { %s7692_s25 = scalar_select %p5585_p6, 1, 0 }
   0xe   : > { %p5590_p8 = pnand %p4306_p5, %p164_p7  ;;  %s177_s28 = sshll.u32 %s5508_s27, 4  ;;  %s178_s28 = int_to_ptr.vmem [resolvable:$true] %s177_s28 }
   0xf   : > { %s5509_s29 = smov [#allocation8]   ;;  %s5510_s7 = smov [#allocation7]  }
  0x10   : > { %s7693_s26 = scalar_select %p5590_p8, 1, 0 }
  0x11   : > { %p4669_p9 = pneg %p5590_p8  ;;  %s198_s30 = sshll.u32 %s5509_s29, 4  ;;  %s199_s30 = int_to_ptr.vmem [resolvable:$true] %s198_s30 }
  0x12   : > { %s188_s8 = sshll.u32 %s5510_s7, 4  ;;  %s5313_s9 = scalar_lea.vmem %s178_s28, 96  ;;  %s189_s8 = int_to_ptr.vmem [resolvable:$true] %s188_s8 }
  0x13   : > { %p5598_p10 = pnand %p4669_p9, %p7607_p1  ;;  %p5314_p12 = scmp.ne.s32.totalorder %s178_s28, %s5313_s9 }
  0x14   : > { %p5321_p3 = scmp.lt.s32.totalorder %s178_s28, %s178_s28  ;;  %p5322_p5 = scmp.lt.s32.totalorder %s5313_s9, %s5313_s9 }
  0x15   : > { %p5304_p11 = pneg %p5598_p10 }
  0x16   : > { %p5323_p7 = por %p5322_p5, %p5321_p3 }
  0x17   : > { %p5316_p13 = pnand %p5314_p12, %p5304_p11 }
  0x19   : > { %p5317_p0 = pneg %p5316_p13 }
  0x1b   : > { %p5324_p9 = pnand %p5323_p7, %p5317_p0 }
  0x1d   : > { %5327 = shalt.err (!%p5324_p9)
}
  0x1e   : > { %4672 = dma.hbm_to_vmem [thread:$0]  (!%p5598_p10), %s7602_s1, 96, %s178_s28, [#allocation6]  }
  0x1f   : > { %s5339_s12 = scalar_lea.vmem %s199_s30, 36864  ;;  %p5347_p12 = scmp.lt.s32.totalorder %s199_s30, %s199_s30 }
  0x20   : > { %p5340_p1 = scmp.ne.s32.totalorder %s199_s30, %s5339_s12  ;;  %p5348_p13 = scmp.lt.s32.totalorder %s5339_s12, %s5339_s12 }
  0x22   : > { %p5342_p2 = pnand %p5340_p1, %p5304_p11  ;;  %p5349_p4 = por %p5348_p13, %p5347_p12 }
  0x24   : > { %p5343_p6 = pneg %p5342_p2 }
  0x26   : > { %p5350_p8 = pnand %p5349_p4, %p5343_p6 }
  0x28   : > { %5353 = shalt.err (!%p5350_p8)
}
  0x29   : > { %s5511_s13 = smov 384   ;;  %s5512_s14 = smov 24  }
  0x2a   : > { %4678 = dma.hbm_to_vmem [thread:$0]  (!%p5598_p10), %s7604_s3, 36864, %s199_s30, [#allocation9], %s5511_s13, %s5511_s13, %s5512_s14  }
  0x2b   : > { %s5365_s17 = scalar_lea.vmem %s189_s8, 96  ;;  %p5373_p3 = scmp.lt.s32.totalorder %s189_s8, %s189_s8 }
  0x2c   : > { %p5366_p0 = scmp.ne.s32.totalorder %s189_s8, %s5365_s17  ;;  %p5374_p5 = scmp.lt.s32.totalorder %s5365_s17, %s5365_s17 }
  0x2e   : > { %p5368_p1 = pnand %p5366_p0, %p5304_p11  ;;  %p5375_p4 = por %p5374_p5, %p5373_p3 }
  0x30   : > { %p5369_p2 = pneg %p5368_p1 }
  0x32   : > { %p5376_p6 = pnand %p5375_p4, %p5369_p2 }
  0x34   : > { %5379 = shalt.err (!%p5376_p6)
}
  0x35   : > { %4675 = dma.hbm_to_vmem [thread:$0]  (!%p5598_p10), %s7603_s2, 96, %s189_s8, [#allocation6]  }
  0x36   : > { %s5513_s28 = smov [#allocation10]  }
  0x37   : > { %s212_s29 = sshll.u32 %s5513_s28, 4  ;;  %s213_s29 = int_to_ptr.vmem [resolvable:$true] %s212_s29 }
  0x38   : > { %s5391_s30 = scalar_lea.vmem %s213_s29, 96  ;;  %p5399_p12 = scmp.lt.s32.totalorder %s213_s29, %s213_s29 }
  0x39   : > { %p5392_p8 = scmp.ne.s32.totalorder %s213_s29, %s5391_s30  ;;  %p5400_p13 = scmp.lt.s32.totalorder %s5391_s30, %s5391_s30 }
  0x3b   : > { %p5394_p7 = pnand %p5392_p8, %p5304_p11  ;;  %p5401_p0 = por %p5400_p13, %p5399_p12 }
  0x3d   : > { %p5395_p9 = pneg %p5394_p7 }
  0x3f   : > { %p5402_p1 = pnand %p5401_p0, %p5395_p9 }
  0x41   : > { %5405 = shalt.err (!%p5402_p1)
}
  0x42   : > { %4681 = dma.hbm_to_vmem [thread:$0]  (!%p5598_p10), %s7605_s4, 96, %s213_s29, [#allocation9]  }
  0x43   : > { %s5637_s8 = sadd.s32 1, %s5506_s21   ;;  %s30_s10 = sadd.s32 1, %s5502_s20 }
  0x44   : > { %s27_s6 = ssub.s32 %s5506_s21, %s5637_s8  ;;  %p37_p11 = scmp.ne.s32.totalorder %s5502_s20, %s5498_s19 }
  0x45   : > { %p28_p2 = scmp.eq.s32.totalorder %s27_s6, 0  ;;  %p38_p3 = scmp.eq.s32.totalorder %s5506_s21, 0 }
  0x46   : > { %p7695_p5 = scmp.eq.s32.totalorder %s5571_s22, 2  ;;  %p4694_p6 = scmp.lt.s32.totalorder %s5506_s21, 3 }
  0x47   : > { %s5653_s12 = scalar_select %p28_p2, %s5502_s20, %s30_s10  }
  0x48   : > { %p5647_p4 = por %p7695_p5, %p37_p11  ;;  %p39_p8 = por %p38_p3, %p37_p11 }
  0x49   : > { %s223_s13 = sand.u32 1, %s5502_s20   ;;  %s4646_s15 = smul.u32 12288, %s5506_s21 }
  0x4a   : > { %s7696_s11 = scalar_select %p5647_p4, 1, 0 }
  0x4b   : > { %s4645_s14 = smul.u32 768, %s223_s13  ;;  %p5657_p10 = pnand %p4694_p6, %p39_p8 }
  0x4c   : > { %s5664_s27 = scalar_lea.hbm %s7601_s0, %s4646_s15  ;;  %s5668_s30 = scalar_lea.sflag [#allocation3], %s223_s13 }
  0x4d   : > { %s227_s28 = scalar_lea.vmem [#allocation2], %s4645_s14  ;;  %s5406_s7 = scalar_lea.hbm %s5664_s27, 12288 }
  0x4e   : > { %s235_s29 = sshll.u32 %s227_s28, 4  ;;  %p5407_p7 = scmp.ne.s32.totalorder %s5664_s27, %s5406_s7  ;;  %s5666_s29 = int_to_ptr.vmem [resolvable:$true] %s235_s29 }
  0x4f   : > { %p5408_p9 = pneg %p5657_p10  ;;  %s5411_s6 = scalar_lea.hbm %s7601_s0, 36864 }
  0x50   : > { %p5412_p0 = scmp.lt.s32.totalorder %s5664_s27, %s7601_s0  ;;  %p5413_p1 = scmp.lt.s32.totalorder %s5411_s6, %s5406_s7 }
  0x51   : > { %p5409_p12 = pnand %p5408_p9, %p5407_p7 }
  0x52   : > { %p5414_p11 = por %p5413_p1, %p5412_p0 }
  0x53   : > { %p5410_p13 = pneg %p5409_p12 }
  0x55   : > { %p5415_p2 = pnand %p5414_p11, %p5410_p13 }
  0x57   : > { %5418 = shalt.err (!%p5415_p2)
}
  0x58   : > { %s5419_s13 = scalar_lea.vmem %s5666_s29, 12288  ;;  %s5514_s14 = smov [#allocation2]  }
  0x59   : > { %p5420_p3 = scmp.ne.s32.totalorder %s5666_s29, %s5419_s13  ;;  %s5424_s23 = sshll.u32 %s5514_s14, 4  ;;  %s5425_s23 = int_to_ptr.vmem [resolvable:$false] %s5424_s23 }
  0x5a   : > { %s5426_s28 = scalar_lea.vmem %s5425_s23, 24576  ;;  %p5427_p8 = scmp.lt.s32.totalorder %s5666_s29, %s5425_s23 }
  0x5b   : > { %p5422_p5 = pnand %p5420_p3, %p5408_p9  ;;  %p5428_p7 = scmp.lt.s32.totalorder %s5426_s28, %s5419_s13 }
  0x5d   : > { %p5423_p6 = pneg %p5422_p5  ;;  %p5429_p12 = por %p5428_p7, %p5427_p8 }
  0x5f   : > { %p5430_p4 = pnand %p5429_p12, %p5423_p6 }
  0x61   : > { %5433 = shalt.err (!%p5430_p4)
}
  0x62   : > { %s5515_s7 = smov 768   ;;  %s5516_s9 = smov 48  }
  0x63   : > { %4685 = dma.hbm_to_vmem [thread:$0]  (!%p5657_p10), %s5664_s27, 12288, %s5666_s29, %s5668_s30, %s5515_s7, %s5515_s7, %s5516_s9  }
  0x64   : > { %p7698_p9 = scmp.ne.s32.totalorder %s7693_s26, 0 }
  0x66   : > { %247 = sbr.rel (%p7698_p9) target bundleno = 829 (0x33d), region = 40 }
  0x6b   : > { %s5692_s10 = sand.u32 1, %s5498_s19   ;;  %p7699_p4 = scmp.ne.s32.totalorder %s7691_s24, 0 }
  0x6c   : > { %s4647_s6 = smul.u32 768, %s5692_s10  ;;  %s250_s15 = scalar_lea.sflag [#allocation3], %s5692_s10 }
  0x6e   : > { %s5698_s17 = scalar_lea.vmem [#allocation2], %s4647_s6 }
  0x6f   : > { %5477 = dma.done.wait (%p7699_p4), %s250_s15, 12288  }
  0x70   : > { %5479 = vsyncadd (%p7699_p4), %s250_s15, 4294955008  ;;  %p7700_p10 = scmp.eq.s32.totalorder %s5571_s22, 0 }
  0x72   : > { %5481 = dma.done.wait (%p7700_p10), [#allocation6], 192   ;;  %p7701_p13 = pmov %p7700_p10 }
  0x73   : > { %p7702_p0 = pmov %p7700_p10 }
  0x74   : > { %5483 = vsyncadd (%p7701_p13), [#allocation6], 4294967104 }
  0x75   : > { %5485 = dma.done.wait (%p7702_p0), [#allocation9], 36960   ;;  %p7703_p1 = pmov %p7702_p0 }
  0x76   : > { %v298_v0 = vld [vmem:[%s5698_s17] sm:$0xff]  ;;  %v299_v1 = vld [vmem:[%s5698_s17 + $0x8] sm:$0xff]  ;;  %v300_v2 = vld [vmem:[%s5698_s17 + $0x10] sm:$0xff]  ;;  %s7015_s24 = scalar_lea.vmem [#allocation11], %s4647_s6  ;;  %s4648_s26 = smul.u32 12288, %s5571_s22 }
  0x77   : > { %5487 = vsyncadd (%p7703_p1), [#allocation9], 4294930336  ;;  %v301_v3 = vld [vmem:[%s5698_s17 + $0x18] sm:$0xff]  ;;  %v302_v4 = vld [vmem:[%s5698_s17 + $0x20] sm:$0xff]  ;;  %v394_v6 = vadd.f32 %v299_v1, %v298_v0  ;;  %v522_v7 = vmul.f32 %v298_v0, %v298_v0  ;;  %v523_v8 = vmul.f32 %v299_v1, %v299_v1  ;;  %v524_v9 = vmul.f32 %v300_v2, %v300_v2  ;;  %s4194_s16 = sshll.u32 %s7015_s24, 4  ;;  %s4180_s30 = scalar_lea.sflag [#allocation4], %s5692_s10  ;;  %s7558_s16 = int_to_ptr.vmem [resolvable:$true] %s4194_s16 }
  0x78   : > { %v303_v5 = vld [vmem:[%s5698_s17 + $0x28] sm:$0xff]  ;;  %v525_v10 = vmul.f32 %v301_v3, %v301_v3  ;;  %v526_v11 = vmul.f32 %v302_v4, %v302_v4  ;;  %v304_v12 = vld [vmem:[%s5698_s17 + $0x30] sm:$0xff]  ;;  %v305_v13 = vld [vmem:[%s5698_s17 + $0x38] sm:$0xff]  ;;  %s7555_s29 = scalar_lea.hbm %s7606_s5, %s4648_s26  ;;  %s5434_s13 = scalar_lea.vmem %s7558_s16, 12288 }
  0x79   : > { %v306_v14 = vld [vmem:[%s5698_s17 + $0x40] sm:$0xff]  ;;  %v395_v15 = vadd.f32 %v394_v6, %v300_v2  ;;  %v618_v16 = vadd.f32 %v523_v8, %v522_v7  ;;  %v307_v17 = vld [vmem:[%s5698_s17 + $0x48] sm:$0xff]  ;;  %v308_v18 = vld [vmem:[%s5698_s17 + $0x50] sm:$0xff]  ;;  %v401_v19 = vadd.f32 %v305_v13, %v304_v12  ;;  %v528_v20 = vmul.f32 %v304_v12, %v304_v12  ;;  %p5435_p11 = scmp.ne.s32.totalorder %s7558_s16, %s5434_s13  ;;  %p7900_p2 = scmp.ne.s32.totalorder %s7696_s11, 0 }
  0x7a   : > { %v527_v21 = vmul.f32 %v303_v5, %v303_v5  ;;  %v529_v22 = vmul.f32 %v305_v13, %v305_v13  ;;  %v530_v23 = vmul.f32 %v306_v14, %v306_v14  ;;  %v531_v24 = vmul.f32 %v307_v17, %v307_v17  ;;  %v310_v25 = vld [vmem:[%s5698_s17 + $0x60] sm:$0xff]  ;;  %v311_v26 = vld [vmem:[%s5698_s17 + $0x68] sm:$0xff]  ;;  %v309_v29 = vld [vmem:[%s5698_s17 + $0x58] sm:$0xff]  ;;  %s5517_s14 = smov [#allocation11]  }
  0x7b   : > { %v396_v27 = vadd.f32 %v395_v15, %v301_v3  ;;  %v619_v28 = vadd.f32 %v618_v16, %v524_v9  ;;  %v402_v30 = vadd.f32 %v401_v19, %v306_v14  ;;  %v532_v31 = vmul.f32 %v308_v18, %v308_v18  ;;  %v312_v32 = vld [vmem:[%s5698_s17 + $0x70] sm:$0xff]  ;;  %v317_v36 = vld [vmem:[%s5698_s17 + $0x98] sm:$0xff]  ;;  %v318_v37 = vld [vmem:[%s5698_s17 + $0xa0] sm:$0xff]  ;;  %p5436_p3 = pnand %p5435_p11, %p7900_p2  ;;  %s5438_s23 = sshll.u32 %s5517_s14, 4  ;;  %s5439_s23 = int_to_ptr.vmem [resolvable:$false] %s5438_s23 }
  0x7c   : > { %v625_v33 = vadd.f32 %v529_v22, %v528_v20  ;;  %v408_v34 = vadd.f32 %v311_v26, %v310_v25  ;;  %v316_v35 = vld [vmem:[%s5698_s17 + $0x90] sm:$0xff]  ;;  %v534_v38 = vmul.f32 %v310_v25, %v310_v25  ;;  %v535_v39 = vmul.f32 %v311_v26, %v311_v26  ;;  %v313_v43 = vld [vmem:[%s5698_s17 + $0x78] sm:$0xff]  ;;  %v319_v48 = vld [vmem:[%s5698_s17 + $0xa8] sm:$0xff]  ;;  %s5440_s28 = scalar_lea.vmem %s5439_s23, 24576  ;;  %p5441_p6 = scmp.lt.s32.totalorder %s7558_s16, %s5439_s23 }
  0x7d   : > { %v397_v40 = vadd.f32 %v396_v27, %v302_v4  ;;  %v620_v41 = vadd.f32 %v619_v28, %v525_v10  ;;  %v403_v42 = vadd.f32 %v402_v30, %v307_v17  ;;  %v415_v44 = vadd.f32 %v317_v36, %v316_v35  ;;  %v314_v53 = vld [vmem:[%s5698_s17 + $0x80] sm:$0xff]  ;;  %v320_v57 = vld [vmem:[%s5698_s17 + $0xb0] sm:$0xff]  ;;  %v315_v62 = vld [vmem:[%s5698_s17 + $0x88] sm:$0xff]  ;;  %p5437_p5 = pneg %p5436_p3  ;;  %p5442_p8 = scmp.lt.s32.totalorder %s5440_s28, %s5434_s13 }
  0x7e   : > { %v533_v45 = vmul.f32 %v309_v29, %v309_v29  ;;  %v626_v46 = vadd.f32 %v625_v33, %v530_v23  ;;  %v409_v47 = vadd.f32 %v408_v34, %v312_v32  ;;  %v536_v49 = vmul.f32 %v312_v32, %v312_v32  ;;  %v323_v6 = vld [vmem:[%s5698_s17 + $0xc8] sm:$0xff]  ;;  %v329_v12 = vld [vmem:[%s5698_s17 + $0xf8] sm:$0xff]  ;;  %v330_v23 = vld [vmem:[%s5698_s17 + $0x100] sm:$0xff] }
  0x7f   : > { %v398_v50 = vadd.f32 %v397_v40, %v303_v5  ;;  %v621_v51 = vadd.f32 %v620_v41, %v526_v11  ;;  %v404_v52 = vadd.f32 %v403_v42, %v308_v18  ;;  %v416_v54 = vadd.f32 %v415_v44, %v318_v37  ;;  %v322_v5 = vld [vmem:[%s5698_s17 + $0xc0] sm:$0xff]  ;;  %v328_v11 = vld [vmem:[%s5698_s17 + $0xf0] sm:$0xff]  ;;  %v321_v15 = vld [vmem:[%s5698_s17 + $0xb8] sm:$0xff]  ;;  %p5443_p7 = por %p5442_p8, %p5441_p6 }
  0x80   : > { %v627_v55 = vadd.f32 %v626_v46, %v531_v24  ;;  %v410_v56 = vadd.f32 %v409_v47, %v313_v43  ;;  %v537_v58 = vmul.f32 %v313_v43, %v313_v43  ;;  %v538_v59 = vmul.f32 %v314_v53, %v314_v53  ;;  %v324_v18 = vld [vmem:[%s5698_s17 + $0xd0] sm:$0xff]  ;;  %v325_v24 = vld [vmem:[%s5698_s17 + $0xd8] sm:$0xff]  ;;  %v326_v32 = vld [vmem:[%s5698_s17 + $0xe0] sm:$0xff] }
  0x81   : > { %399 = vadd.xlane.f32.xlu0 %v398_v50  ;;  %v622_v60 = vadd.f32 %v621_v51, %v527_v21  ;;  %v405_v61 = vadd.f32 %v404_v52, %v309_v29  ;;  %v417_v63 = vadd.f32 %v416_v54, %v319_v48  ;;  %v632_v0 = vadd.f32 %v535_v39, %v534_v38  ;;  %v331_v34 = vld [vmem:[%s5698_s17 + $0x108] sm:$0xff]  ;;  %v332_v43 = vld [vmem:[%s5698_s17 + $0x110] sm:$0xff]  ;;  %v341_v52 = vld [vmem:[%s5698_s17 + $0x158] sm:$0xff]  ;;  %p5444_p12 = pnand %p5443_p7, %p5437_p5 }
  0x82   : > { %v628_v1 = vadd.f32 %v627_v55, %v532_v31  ;;  %v411_v2 = vadd.f32 %v410_v56, %v314_v53  ;;  %v540_v3 = vmul.f32 %v316_v35, %v316_v35  ;;  %v541_v4 = vmul.f32 %v317_v36, %v317_v36  ;;  %v327_v41 = vld [vmem:[%s5698_s17 + $0xe8] sm:$0xff]  ;;  %v340_v51 = vld [vmem:[%s5698_s17 + $0x150] sm:$0xff]  ;;  %v333_v55 = vld [vmem:[%s5698_s17 + $0x118] sm:$0xff] }
  0x83   : > { %623 = vadd.xlane.f32.xlu1 %v622_v60  ;;  %v418_v7 = vadd.f32 %v417_v63, %v320_v57  ;;  %v539_v8 = vmul.f32 %v315_v62, %v315_v62  ;;  %v633_v9 = vadd.f32 %v632_v0, %v536_v49  ;;  %v542_v10 = vmul.f32 %v318_v37, %v318_v37  ;;  %v335_v50 = vld [vmem:[%s5698_s17 + $0x128] sm:$0xff]  ;;  %v342_v63 = vld [vmem:[%s5698_s17 + $0x160] sm:$0xff] }
  0x84   : > { %v629_v13 = vadd.f32 %v628_v1, %v533_v45  ;;  %v412_v14 = vadd.f32 %v411_v2, %v315_v62  ;;  %v543_v16 = vmul.f32 %v319_v48, %v319_v48  ;;  %v544_v17 = vmul.f32 %v320_v57, %v320_v57  ;;  %v334_v45 = vld [vmem:[%s5698_s17 + $0x120] sm:$0xff]  ;;  %v336_v62 = vld [vmem:[%s5698_s17 + $0x130] sm:$0xff] }
  0x85   : > { %406 = vadd.xlane.f32.xlu0 %v405_v61  ;;  %v634_v19 = vadd.f32 %v633_v9, %v537_v58  ;;  %v545_v20 = vmul.f32 %v321_v15, %v321_v15  ;;  %v639_v21 = vadd.f32 %v541_v4, %v540_v3  ;;  %v422_v22 = vadd.f32 %v323_v6, %v322_v5 }
  0x86   : > { %v429_v25 = vadd.f32 %v329_v12, %v328_v11  ;;  %v546_v26 = vmul.f32 %v322_v5, %v322_v5  ;;  %v547_v27 = vmul.f32 %v323_v6, %v323_v6  ;;  %v548_v28 = vmul.f32 %v324_v18, %v324_v18 }
  0x87   : > { %630 = vadd.xlane.f32.xlu1 %v629_v13  ;;  %v419_v29 = vadd.f32 %v418_v7, %v321_v15  ;;  %v635_v30 = vadd.f32 %v634_v19, %v538_v59  ;;  %v640_v31 = vadd.f32 %v639_v21, %v542_v10  ;;  %v423_v33 = vadd.f32 %v422_v22, %v324_v18  ;;  %v337_v7 = vld [vmem:[%s5698_s17 + $0x138] sm:$0xff]  ;;  %v344_v18 = vld [vmem:[%s5698_s17 + $0x170] sm:$0xff] }
  0x88   : > { %v430_v35 = vadd.f32 %v429_v25, %v330_v23  ;;  %v549_v36 = vmul.f32 %v325_v24, %v325_v24  ;;  %v550_v37 = vmul.f32 %v326_v32, %v326_v32  ;;  %v646_v38 = vadd.f32 %v547_v27, %v546_v26  ;;  %v339_v25 = vld [vmem:[%s5698_s17 + $0x148] sm:$0xff] }
  0x89   : > { %413 = vadd.xlane.f32.xlu0 %v412_v14  ;;  %v636_v39 = vadd.f32 %v635_v30, %v539_v8  ;;  %v641_v40 = vadd.f32 %v640_v31, %v543_v16  ;;  %v424_v42 = vadd.f32 %v423_v33, %v325_v24  ;;  %v552_v44 = vmul.f32 %v328_v11, %v328_v11  ;;  %v343_v8 = vld [vmem:[%s5698_s17 + $0x168] sm:$0xff] }
  0x8a   : > { %v431_v46 = vadd.f32 %v430_v35, %v331_v34  ;;  %v647_v47 = vadd.f32 %v646_v38, %v548_v28  ;;  %v553_v48 = vmul.f32 %v329_v12, %v329_v12  ;;  %v554_v49 = vmul.f32 %v330_v23, %v330_v23  ;;  %v347_v30 = vld [vmem:[%s5698_s17 + $0x188] sm:$0xff]  ;;  %v352_v35 = vld [vmem:[%s5698_s17 + $0x1b0] sm:$0xff]  ;;  %v345_v38 = vld [vmem:[%s5698_s17 + $0x178] sm:$0xff] }
  0x8b   : > { %420 = vadd.xlane.f32.xlu1 %v419_v29  ;;  %v642_v53 = vadd.f32 %v641_v40, %v544_v17  ;;  %v425_v54 = vadd.f32 %v424_v42, %v326_v32  ;;  %v551_v56 = vmul.f32 %v327_v41, %v327_v41  ;;  %v555_v57 = vmul.f32 %v331_v34, %v331_v34  ;;  %v338_v17 = vld [vmem:[%s5698_s17 + $0x140] sm:$0xff]  ;;  %v348_v42 = vld [vmem:[%s5698_s17 + $0x190] sm:$0xff] }
  0x8c   : > { %v432_v58 = vadd.f32 %v431_v46, %v332_v43  ;;  %v648_v59 = vadd.f32 %v647_v47, %v549_v36  ;;  %v556_v60 = vmul.f32 %v332_v43, %v332_v43  ;;  %v653_v61 = vadd.f32 %v553_v48, %v552_v44  ;;  %v346_v29 = vld [vmem:[%s5698_s17 + $0x180] sm:$0xff]  ;;  %v353_v36 = vld [vmem:[%s5698_s17 + $0x1b8] sm:$0xff] }
  0x8d   : > { %637 = vadd.xlane.f32.xlu0 %v636_v39  ;;  %v643_v0 = vadd.f32 %v642_v53, %v545_v20  ;;  %v426_v1 = vadd.f32 %v425_v54, %v327_v41  ;;  %v436_v2 = vadd.f32 %v335_v50, %v334_v45  ;;  %v443_v3 = vadd.f32 %v341_v52, %v340_v51  ;;  %v349_v43 = vld [vmem:[%s5698_s17 + $0x198] sm:$0xff]  ;;  %v350_v47 = vld [vmem:[%s5698_s17 + $0x1a0] sm:$0xff] }
  0x8e   : > { %v433_v4 = vadd.f32 %v432_v58, %v333_v55  ;;  %v649_v5 = vadd.f32 %v648_v59, %v550_v37  ;;  %v654_v6 = vadd.f32 %v653_v61, %v554_v49  ;;  %v558_v9 = vmul.f32 %v334_v45, %v334_v45  ;;  %v354_v49 = vld [vmem:[%s5698_s17 + $0x1c0] sm:$0xff]  ;;  %v356_v59 = vld [vmem:[%s5698_s17 + $0x1d0] sm:$0xff] }
  0x8f   : > { %644 = vadd.xlane.f32.xlu1 %v643_v0  ;;  %v437_v10 = vadd.f32 %v436_v2, %v336_v62  ;;  %v444_v11 = vadd.f32 %v443_v3, %v342_v63  ;;  %v559_v12 = vmul.f32 %v335_v50, %v335_v50  ;;  %v560_v13 = vmul.f32 %v336_v62, %v336_v62  ;;  %v355_v50 = vld [vmem:[%s5698_s17 + $0x1c8] sm:$0xff]  ;;  %v4744_v61 = vld [vmem:[#allocation8 + $0x454] ss:$24 sps:$4 sm:$0xff]  }
  0x90   : > { %v650_v14 = vadd.f32 %v649_v5, %v551_v56  ;;  %v557_v15 = vmul.f32 %v333_v55, %v333_v55  ;;  %v655_v16 = vadd.f32 %v654_v6, %v555_v57  ;;  %v561_v19 = vmul.f32 %v337_v7, %v337_v7  ;;  %v4742_v55 = vld [vmem:[#allocation8 + $0x154] ss:$24 sps:$4 sm:$0xff]   ;;  %v4746_v5 = vld [vmem:[#allocation8 + $0x150] ss:$24 sps:$4 sm:$0xff]   ;;  %3179 = vmatprep.subr.bf16.mxu1 %v4744_v61 }
  0x91   : > { %427 = vadd.xlane.f32.xlu0 %v426_v1  ;;  %v438_v20 = vadd.f32 %v437_v10, %v337_v7  ;;  %v445_v21 = vadd.f32 %v444_v11, %v343_v8  ;;  %v562_v22 = vmul.f32 %v338_v17, %v338_v17  ;;  %v660_v23 = vadd.f32 %v559_v12, %v558_v9  ;;  %v358_v3 = vld [vmem:[%s5698_s17 + $0x1e0] sm:$0xff]  ;;  %v364_v11 = vld [vmem:[%s5698_s17 + $0x210] sm:$0xff] }
  0x92   : > { %v656_v24 = vadd.f32 %v655_v16, %v556_v60  ;;  %v564_v26 = vmul.f32 %v340_v51, %v340_v51  ;;  %v565_v27 = vmul.f32 %v341_v52, %v341_v52  ;;  %v566_v28 = vmul.f32 %v342_v63, %v342_v63  ;;  %v351_v63 = vld [vmem:[%s5698_s17 + $0x1a8] sm:$0xff]  ;;  %3066 = vmatprep.subr.bf16.mxu0 %v4742_v55  ;;  %v360_v16 = vld [vmem:[%s5698_s17 + $0x1f0] sm:$0xff] }
  0x93   : > { %434 = vadd.xlane.f32.xlu1 %v433_v4  ;;  %v439_v31 = vadd.f32 %v438_v20, %v338_v17  ;;  %v446_v32 = vadd.f32 %v445_v21, %v344_v18  ;;  %v563_v33 = vmul.f32 %v339_v25, %v339_v25  ;;  %v661_v34 = vadd.f32 %v660_v23, %v560_v13  ;;  %v359_v4 = vld [vmem:[%s5698_s17 + $0x1e8] sm:$0xff]  ;;  %v365_v17 = vld [vmem:[%s5698_s17 + $0x218] sm:$0xff]  ;;  %v366_v23 = vld [vmem:[%s5698_s17 + $0x220] sm:$0xff] }
  0x94   : > { %v657_v37 = vadd.f32 %v656_v24, %v557_v15  ;;  %v567_v39 = vmul.f32 %v343_v8, %v343_v8  ;;  %v568_v40 = vmul.f32 %v344_v18, %v344_v18  ;;  %v667_v41 = vadd.f32 %v565_v27, %v564_v26  ;;  %v357_v8 = vld [vmem:[%s5698_s17 + $0x1d8] sm:$0xff]  ;;  %3067 = vmatpush1.bf16.msra.mxu0 %v4746_v5 }
  0x95   : > { %651 = vadd.xlane.f32.xlu0 %v650_v14  ;;  %v440_v44 = vadd.f32 %v439_v31, %v339_v25  ;;  %v662_v45 = vadd.f32 %v661_v34, %v561_v19  ;;  %v569_v46 = vmul.f32 %v345_v38, %v345_v38  ;;  %v450_v48 = vadd.f32 %v347_v30, %v346_v29  ;;  %v4747_v18 = vld [vmem:[#allocation8 + $0x450] ss:$24 sps:$4 sm:$0xff]   ;;  %v367_v34 = vld [vmem:[%s5698_s17 + $0x228] sm:$0xff] }
  0x96   : > { %v668_v51 = vadd.f32 %v667_v41, %v566_v28  ;;  %v457_v52 = vadd.f32 %v353_v36, %v352_v35  ;;  %v570_v53 = vmul.f32 %v346_v29, %v346_v29  ;;  %v571_v54 = vmul.f32 %v347_v30, %v347_v30  ;;  %v4748_v28 = vld [vmem:[#allocation8 + $0x124] ss:$24 sps:$4 sm:$0xff]   ;;  %v361_v31 = vld [vmem:[%s5698_s17 + $0x1f8] sm:$0xff]  ;;  %3180 = vmatpush1.bf16.msra.mxu1 %v4747_v18  ;;  %v378_v18 = vld [vmem:[%s5698_s17 + $0x280] sm:$0xff] }
  0x97   : > { %658 = vadd.xlane.f32.xlu1 %v657_v37  ;;  %v447_v56 = vadd.f32 %v446_v32, %v345_v38  ;;  %v663_v57 = vadd.f32 %v662_v45, %v562_v22  ;;  %v451_v58 = vadd.f32 %v450_v48, %v348_v42  ;;  %v572_v60 = vmul.f32 %v348_v42, %v348_v42  ;;  %v362_v32 = vld [vmem:[%s5698_s17 + $0x200] sm:$0xff]  ;;  %v363_v48 = vld [vmem:[%s5698_s17 + $0x208] sm:$0xff] }
  0x98   : > { %v669_v62 = vadd.f32 %v668_v51, %v567_v39  ;;  %v458_v0 = vadd.f32 %v457_v52, %v354_v49  ;;  %v573_v1 = vmul.f32 %v349_v43, %v349_v43  ;;  %v574_v2 = vmul.f32 %v350_v47, %v350_v47  ;;  %v370_v51 = vld [vmem:[%s5698_s17 + $0x240] sm:$0xff]  ;;  %3068 = vmatprep.subr.bf16.mxu0 %v4748_v28  ;;  %v380_v28 = vld [vmem:[%s5698_s17 + $0x290] sm:$0xff] }
  0x99   : > { %441 = vadd.xlane.f32.xlu0 %v440_v44  ;;  %v664_v6 = vadd.f32 %v663_v57, %v563_v33  ;;  %v452_v7 = vadd.f32 %v451_v58, %v349_v43  ;;  %v674_v9 = vadd.f32 %v571_v54, %v570_v53  ;;  %v576_v10 = vmul.f32 %v352_v35, %v352_v35  ;;  %v368_v43 = vld [vmem:[%s5698_s17 + $0x230] sm:$0xff]  ;;  %v4752_v52 = vld [vmem:[#allocation8 + $0x120] ss:$24 sps:$4 sm:$0xff]  }
  0x9a   : > { %v670_v12 = vadd.f32 %v669_v62, %v568_v40  ;;  %v459_v13 = vadd.f32 %v458_v0, %v355_v50  ;;  %v577_v14 = vmul.f32 %v353_v36, %v353_v36  ;;  %v578_v15 = vmul.f32 %v354_v49, %v354_v49  ;;  %v4750_v40 = vld [vmem:[#allocation8 + $0x424] ss:$24 sps:$4 sm:$0xff]   ;;  %3069 = vmatpush1.bf16.msra.mxu0 %v4752_v52 }
  0x9b   : > { %448 = vadd.xlane.f32.xlu1 %v447_v56  ;;  %v453_v19 = vadd.f32 %v452_v7, %v350_v47  ;;  %v575_v20 = vmul.f32 %v351_v63, %v351_v63  ;;  %v675_v21 = vadd.f32 %v674_v9, %v572_v60  ;;  %v579_v22 = vmul.f32 %v355_v50, %v355_v50  ;;  %v371_v57 = vld [vmem:[%s5698_s17 + $0x248] sm:$0xff]  ;;  %v376_v0 = vld [vmem:[%s5698_s17 + $0x270] sm:$0xff] }
  0x9c   : > { %v671_v24 = vadd.f32 %v670_v12, %v569_v46  ;;  %v460_v25 = vadd.f32 %v459_v13, %v356_v59  ;;  %v580_v26 = vmul.f32 %v356_v59, %v356_v59  ;;  %v681_v27 = vadd.f32 %v577_v14, %v576_v10  ;;  %v369_v59 = vld [vmem:[%s5698_s17 + $0x238] sm:$0xff]  ;;  %3181 = vmatprep.subr.bf16.mxu1 %v4750_v40 }
  0x9d   : > { %665 = vadd.xlane.f32.xlu0 %v664_v6  ;;  %v454_v29 = vadd.f32 %v453_v19, %v351_v63  ;;  %v676_v30 = vadd.f32 %v675_v21, %v573_v1  ;;  %v464_v33 = vadd.f32 %v359_v4, %v358_v3  ;;  %v471_v35 = vadd.f32 %v365_v17, %v364_v11  ;;  %v372_v63 = vld [vmem:[%s5698_s17 + $0x250] sm:$0xff]  ;;  %v4753_v1 = vld [vmem:[#allocation8 + $0x420] ss:$24 sps:$4 sm:$0xff]   ;;  %v377_v6 = vld [vmem:[%s5698_s17 + $0x278] sm:$0xff] }
  0x9e   : > { %v461_v36 = vadd.f32 %v460_v25, %v357_v8  ;;  %v682_v37 = vadd.f32 %v681_v27, %v578_v15  ;;  %v582_v38 = vmul.f32 %v358_v3, %v358_v3  ;;  %v583_v39 = vmul.f32 %v359_v4, %v359_v4  ;;  %v4754_v12 = vld [vmem:[#allocation8 + $0xf4] ss:$24 sps:$4 sm:$0xff]   ;;  %v379_v19 = vld [vmem:[%s5698_s17 + $0x288] sm:$0xff]  ;;  %3182 = vmatpush1.bf16.msra.mxu1 %v4753_v1 }
  0x9f   : > { %672 = vadd.xlane.f32.xlu1 %v671_v24  ;;  %v677_v41 = vadd.f32 %v676_v30, %v574_v2  ;;  %v465_v42 = vadd.f32 %v464_v33, %v360_v16  ;;  %v472_v44 = vadd.f32 %v471_v35, %v366_v23  ;;  %v584_v45 = vmul.f32 %v360_v16, %v360_v16  ;;  %v374_v16 = vld [vmem:[%s5698_s17 + $0x260] sm:$0xff]  ;;  %v381_v40 = vld [vmem:[%s5698_s17 + $0x298] sm:$0xff]  ;;  %v391_v1 = vld [vmem:[%s5698_s17 + $0x2e8] sm:$0xff] }
  0xa0   : > { %v581_v46 = vmul.f32 %v357_v8, %v357_v8  ;;  %v683_v47 = vadd.f32 %v682_v37, %v579_v22  ;;  %v585_v49 = vmul.f32 %v361_v31, %v361_v31  ;;  %v586_v50 = vmul.f32 %v362_v32, %v362_v32  ;;  %v4756_v24 = vld [vmem:[#allocation8 + $0x3f4] ss:$24 sps:$4 sm:$0xff]   ;;  %3070 = vmatprep.subr.bf16.mxu0 %v4754_v12  ;;  %v4758_v37 = vld [vmem:[#allocation8 + $0xf0] ss:$24 sps:$4 sm:$0xff]  }
  0xa1   : > { %455 = vadd.xlane.f32.xlu0 %v454_v29  ;;  %v678_v53 = vadd.f32 %v677_v41, %v575_v20  ;;  %v466_v54 = vadd.f32 %v465_v42, %v361_v31  ;;  %v473_v55 = vadd.f32 %v472_v44, %v367_v34  ;;  %v688_v56 = vadd.f32 %v583_v39, %v582_v38  ;;  %v375_v31 = vld [vmem:[%s5698_s17 + $0x268] sm:$0xff]  ;;  %v382_v35 = vld [vmem:[%s5698_s17 + $0x2a0] sm:$0xff] }
  0xa2   : > { %v684_v58 = vadd.f32 %v683_v47, %v580_v26  ;;  %v588_v60 = vmul.f32 %v364_v11, %v364_v11  ;;  %v589_v61 = vmul.f32 %v365_v17, %v365_v17  ;;  %v590_v62 = vmul.f32 %v366_v23, %v366_v23  ;;  %v373_v11 = vld [vmem:[%s5698_s17 + $0x258] sm:$0xff]  ;;  %3183 = vmatprep.subr.bf16.mxu1 %v4756_v24 }
  0xa3   : > { %462 = vadd.xlane.f32.xlu1 %v461_v36  ;;  %v467_v2 = vadd.f32 %v466_v54, %v362_v32  ;;  %v474_v3 = vadd.f32 %v473_v55, %v368_v43  ;;  %v587_v4 = vmul.f32 %v363_v48, %v363_v48  ;;  %v689_v5 = vadd.f32 %v688_v56, %v584_v45  ;;  %v383_v36 = vld [vmem:[%s5698_s17 + $0x2a8] sm:$0xff]  ;;  %v390_v55 = vld [vmem:[%s5698_s17 + $0x2e0] sm:$0xff] }
  0xa4   : > { %v685_v7 = vadd.f32 %v684_v58, %v581_v46  ;;  %v591_v8 = vmul.f32 %v367_v34, %v367_v34  ;;  %v592_v9 = vmul.f32 %v368_v43, %v368_v43  ;;  %v695_v10 = vadd.f32 %v589_v61, %v588_v60  ;;  %v388_v43 = vld [vmem:[%s5698_s17 + $0x2d0] sm:$0xff]  ;;  %3071 = vmatpush1.bf16.msra.mxu0 %v4758_v37 }
  0xa5   : > { %679 = vadd.xlane.f32.xlu0 %v678_v53  ;;  %v468_v13 = vadd.f32 %v467_v2, %v363_v48  ;;  %v690_v14 = vadd.f32 %v689_v5, %v585_v49  ;;  %v593_v15 = vmul.f32 %v369_v59, %v369_v59  ;;  %v478_v17 = vadd.f32 %v371_v57, %v370_v51  ;;  %v384_v48 = vld [vmem:[%s5698_s17 + $0x2b0] sm:$0xff]  ;;  %v389_v49 = vld [vmem:[%s5698_s17 + $0x2d8] sm:$0xff] }
  0xa6   : > { %v696_v20 = vadd.f32 %v695_v10, %v590_v62  ;;  %v485_v21 = vadd.f32 %v377_v6, %v376_v0  ;;  %v594_v22 = vmul.f32 %v370_v51, %v370_v51  ;;  %v595_v23 = vmul.f32 %v371_v57, %v371_v57  ;;  %v4760_v60 = vld [vmem:[#allocation8 + $0xc4] ss:$24 sps:$4 sm:$0xff]  }
  0xa7   : > { %686 = vadd.xlane.f32.xlu1 %v685_v7  ;;  %v475_v25 = vadd.f32 %v474_v3, %v369_v59  ;;  %v691_v26 = vadd.f32 %v690_v14, %v586_v50  ;;  %v479_v27 = vadd.f32 %v478_v17, %v372_v63  ;;  %v596_v29 = vmul.f32 %v372_v63, %v372_v63  ;;  %v4759_v50 = vld [vmem:[#allocation8 + $0x3f0] ss:$24 sps:$4 sm:$0xff]   ;;  %v4762_v7 = vld [vmem:[#allocation8 + $0x3c4] ss:$24 sps:$4 sm:$0xff]  }
  0xa8   : > { %v697_v30 = vadd.f32 %v696_v20, %v591_v8  ;;  %v486_v32 = vadd.f32 %v485_v21, %v378_v18  ;;  %v597_v33 = vmul.f32 %v373_v11, %v373_v11  ;;  %v598_v34 = vmul.f32 %v374_v16, %v374_v16  ;;  %v385_v63 = vld [vmem:[%s5698_s17 + $0x2b8] sm:$0xff]  ;;  %3184 = vmatpush1.bf16.msra.mxu1 %v4759_v50 }
  0xa9   : > { %469 = vadd.xlane.f32.xlu0 %v468_v13  ;;  %v692_v38 = vadd.f32 %v691_v26, %v587_v4  ;;  %v480_v39 = vadd.f32 %v479_v27, %v373_v11  ;;  %v702_v41 = vadd.f32 %v595_v23, %v594_v22  ;;  %v600_v42 = vmul.f32 %v376_v0, %v376_v0  ;;  %v4765_v23 = vld [vmem:[#allocation8 + $0x3c0] ss:$24 sps:$4 sm:$0xff]  }
  0xaa   : > { %v698_v44 = vadd.f32 %v697_v30, %v592_v9  ;;  %v487_v45 = vadd.f32 %v486_v32, %v379_v19  ;;  %v601_v46 = vmul.f32 %v377_v6, %v377_v6  ;;  %v602_v47 = vmul.f32 %v378_v18, %v378_v18  ;;  %v386_v9 = vld [vmem:[%s5698_s17 + $0x2c0] sm:$0xff]  ;;  %3072 = vmatprep.subr.bf16.mxu0 %v4760_v60  ;;  %v4784_v60 = vld [vmem:[#allocation8 + $0x4] ss:$24 sps:$4 sm:$0xff]  }
  0xab   : > { %476 = vadd.xlane.f32.xlu1 %v475_v25  ;;  %v481_v51 = vadd.f32 %v480_v39, %v374_v16  ;;  %v599_v52 = vmul.f32 %v375_v31, %v375_v31  ;;  %v703_v53 = vadd.f32 %v702_v41, %v596_v29  ;;  %v603_v54 = vmul.f32 %v379_v19, %v379_v19  ;;  %v392_v16 = vld [vmem:[%s5698_s17 + $0x2f0] sm:$0xff]  ;;  %v4764_v18 = vld [vmem:[#allocation8 + $0xc0] ss:$24 sps:$4 sm:$0xff]   ;;  %v4768_v29 = vld [vmem:[#allocation8 + $0x394] ss:$24 sps:$4 sm:$0xff]  }
  0xac   : > { %v699_v56 = vadd.f32 %v698_v44, %v593_v15  ;;  %v488_v57 = vadd.f32 %v487_v45, %v380_v28  ;;  %v604_v58 = vmul.f32 %v380_v28, %v380_v28  ;;  %v709_v59 = vadd.f32 %v601_v46, %v600_v42  ;;  %v387_v15 = vld [vmem:[%s5698_s17 + $0x2c8] sm:$0xff]  ;;  %3185 = vmatprep.subr.bf16.mxu1 %v4762_v7  ;;  %v4766_v28 = vld [vmem:[#allocation8 + $0x94] ss:$24 sps:$4 sm:$0xff]   ;;  %v4771_v42 = vld [vmem:[#allocation8 + $0x390] ss:$24 sps:$4 sm:$0xff]  }
  0xad   : > { %693 = vadd.xlane.f32.xlu0 %v692_v38  ;;  %v482_v61 = vadd.f32 %v481_v51, %v375_v31  ;;  %v704_v62 = vadd.f32 %v703_v53, %v597_v33  ;;  %v492_v0 = vadd.f32 %v383_v36, %v382_v35  ;;  %v499_v2 = vadd.f32 %v389_v49, %v388_v43  ;;  %v393_v31 = vld [vmem:[%s5698_s17 + $0x2f8] sm:$0xff]  ;;  %v4774_v46 = vld [vmem:[#allocation8 + $0x364] ss:$24 sps:$4 sm:$0xff]   ;;  %v4776_v51 = vld [vmem:[#allocation8 + $0x60] ss:$24 sps:$4 sm:$0xff]  }
  0xae   : > { %v489_v3 = vadd.f32 %v488_v57, %v381_v40  ;;  %v710_v4 = vadd.f32 %v709_v59, %v602_v47  ;;  %v606_v5 = vmul.f32 %v382_v35, %v382_v35  ;;  %v607_v6 = vmul.f32 %v383_v36, %v383_v36  ;;  %3073 = vmatpush1.bf16.msra.mxu0 %v4764_v18  ;;  %v4770_v38 = vld [vmem:[#allocation8 + $0x90] ss:$24 sps:$4 sm:$0xff]   ;;  %v4777_v53 = vld [vmem:[#allocation8 + $0x360] ss:$24 sps:$4 sm:$0xff]  }
  0xaf   : > { %700 = vadd.xlane.f32.xlu1 %v699_v56  ;;  %v705_v8 = vadd.f32 %v704_v62, %v598_v34  ;;  %v493_v10 = vadd.f32 %v492_v0, %v384_v48  ;;  %v500_v11 = vadd.f32 %v499_v2, %v390_v55  ;;  %v608_v12 = vmul.f32 %v384_v48, %v384_v48  ;;  %v4780_v56 = vld [vmem:[#allocation8 + $0x334] ss:$24 sps:$4 sm:$0xff]   ;;  %v4783_v59 = vld [vmem:[#allocation8 + $0x330] ss:$24 sps:$4 sm:$0xff]   ;;  %v4788_v62 = vld [vmem:[#allocation8] ss:$24 sps:$4 sm:$0xff]  }
  0xb0   : > { %v605_v13 = vmul.f32 %v381_v40, %v381_v40  ;;  %v711_v14 = vadd.f32 %v710_v4, %v603_v54  ;;  %v609_v17 = vmul.f32 %v385_v63, %v385_v63  ;;  %v716_v22 = vadd.f32 %v607_v6, %v606_v5  ;;  %3186 = vmatpush1.bf16.msra.mxu1 %v4765_v23  ;;  %v4790_v0 = vld [vmem:[#allocation8 + $0x2d4] ss:$24 sps:$4 sm:$0xff]   ;;  %v4794_v2 = vld [vmem:[#allocation8 + $0x2d0] ss:$24 sps:$4 sm:$0xff]   ;;  %v4796_v4 = vld [vmem:[#allocation8 + $0x2a4] ss:$24 sps:$4 sm:$0xff]  }
  0xb1   : > { %483 = vadd.xlane.f32.xlu0 %v482_v61  ;;  %v706_v19 = vadd.f32 %v705_v8, %v599_v52  ;;  %v494_v20 = vadd.f32 %v493_v10, %v385_v63  ;;  %v501_v21 = vadd.f32 %v500_v11, %v391_v1  ;;  %v612_v25 = vmul.f32 %v388_v43, %v388_v43  ;;  %v4772_v43 = vld [vmem:[#allocation8 + $0x64] ss:$24 sps:$4 sm:$0xff]   ;;  %v4789_v63 = vld [vmem:[#allocation8 + $0x300] ss:$24 sps:$4 sm:$0xff]   ;;  %v4802_v8 = vld [vmem:[#allocation8 + $0x274] ss:$24 sps:$4 sm:$0xff]  }
  0xb2   : > { %v712_v24 = vadd.f32 %v711_v14, %v604_v58  ;;  %v613_v26 = vmul.f32 %v389_v49, %v389_v49  ;;  %v614_v27 = vmul.f32 %v390_v55, %v390_v55  ;;  %v610_v33 = vmul.f32 %v386_v9, %v386_v9  ;;  %3074 = vmatprep.subr.bf16.mxu0 %v4766_v28  ;;  %v4778_v55 = vld [vmem:[#allocation8 + $0x34] ss:$24 sps:$4 sm:$0xff]   ;;  %v4782_v58 = vld [vmem:[#allocation8 + $0x30] ss:$24 sps:$4 sm:$0xff]   ;;  %v4786_v61 = vld [vmem:[#allocation8 + $0x304] ss:$24 sps:$4 sm:$0xff]  }
  0xb3   : > { %490 = vadd.xlane.f32.xlu1 %v489_v3  ;;  %v495_v30 = vadd.f32 %v494_v20, %v386_v9  ;;  %v502_v32 = vadd.f32 %v501_v21, %v392_v16  ;;  %v717_v34 = vadd.f32 %v716_v22, %v608_v12  ;;  %v615_v36 = vmul.f32 %v391_v1, %v391_v1  ;;  %v4792_v1 = vld [vmem:[#allocation8 + $0x5d4] ss:$24 sps:$4 sm:$0xff]   ;;  %v4795_v3 = vld [vmem:[#allocation8 + $0x5d0] ss:$24 sps:$4 sm:$0xff]   ;;  %v4798_v5 = vld [vmem:[#allocation8 + $0x5a4] ss:$24 sps:$4 sm:$0xff]  }
  0xb4   : > { %v713_v35 = vadd.f32 %v712_v24, %v605_v13  ;;  %v723_v37 = vadd.f32 %v613_v26, %v612_v25  ;;  %v611_v40 = vmul.f32 %v387_v15, %v387_v15  ;;  %v616_v44 = vmul.f32 %v392_v16, %v392_v16  ;;  %3187 = vmatprep.subr.bf16.mxu1 %v4768_v29  ;;  %v4800_v6 = vld [vmem:[#allocation8 + $0x2a0] ss:$24 sps:$4 sm:$0xff]   ;;  %v4804_v9 = vld [vmem:[#allocation8 + $0x574] ss:$24 sps:$4 sm:$0xff]   ;;  %v4806_v10 = vld [vmem:[#allocation8 + $0x270] ss:$24 sps:$4 sm:$0xff]  }
  0xb5   : > { %707 = vadd.xlane.f32.xlu0 %v706_v19  ;;  %v496_v39 = vadd.f32 %v495_v30, %v387_v15  ;;  %v718_v41 = vadd.f32 %v717_v34, %v609_v17  ;;  %v503_v47 = vadd.f32 %v502_v32, %v393_v31  ;;  %v617_v49 = vmul.f32 %v393_v31, %v393_v31  ;;  %v4801_v7 = vld [vmem:[#allocation8 + $0x5a0] ss:$24 sps:$4 sm:$0xff]   ;;  %v4807_v11 = vld [vmem:[#allocation8 + $0x570] ss:$24 sps:$4 sm:$0xff]   ;;  %v4808_v12 = vld [vmem:[#allocation8 + $0x244] ss:$24 sps:$4 sm:$0xff]  }
  0xb6   : > { %v724_v45 = vadd.f32 %v723_v37, %v614_v27  ;;  %3075 = vmatpush1.bf16.msra.mxu0 %v4770_v38  ;;  %3188 = vmatpush1.bf16.msra.mxu1 %v4771_v42  ;;  %v4810_v13 = vld [vmem:[#allocation8 + $0x544] ss:$24 sps:$4 sm:$0xff]   ;;  %v4812_v14 = vld [vmem:[#allocation8 + $0x240] ss:$24 sps:$4 sm:$0xff]   ;;  %v4814_v16 = vld [vmem:[#allocation8 + $0x214] ss:$24 sps:$4 sm:$0xff]   ;;  %v908_v34 = vlaneseq }
  0xb7   : > { %714 = vadd.xlane.f32.xlu1 %v713_v35  ;;  %v719_v48 = vadd.f32 %v718_v41, %v610_v33  ;;  %3076 = vmatprep.subr.bf16.mxu0 %v4772_v43  ;;  %v4813_v15 = vld [vmem:[#allocation8 + $0x540] ss:$24 sps:$4 sm:$0xff]   ;;  %v4816_v17 = vld [vmem:[#allocation8 + $0x514] ss:$24 sps:$4 sm:$0xff]   ;;  %v4818_v18 = vld [vmem:[#allocation8 + $0x210] ss:$24 sps:$4 sm:$0xff]  }
  0xb8   : > { %v725_v50 = vadd.f32 %v724_v45, %v615_v36  ;;  %3189 = vmatprep.subr.bf16.mxu1 %v4774_v46  ;;  %v4819_v19 = vld [vmem:[#allocation8 + $0x510] ss:$24 sps:$4 sm:$0xff]   ;;  %v4820_v20 = vld [vmem:[#allocation8 + $0x1e4] ss:$24 sps:$4 sm:$0xff]   ;;  %v4824_v22 = vld [vmem:[#allocation8 + $0x1e0] ss:$24 sps:$4 sm:$0xff]  }
  0xb9   : > { %497 = vadd.xlane.f32.xlu0 %v496_v39  ;;  %v720_v52 = vadd.f32 %v719_v48, %v611_v40  ;;  %v4822_v21 = vld [vmem:[#allocation8 + $0x4e4] ss:$24 sps:$4 sm:$0xff]   ;;  %v4825_v23 = vld [vmem:[#allocation8 + $0x4e0] ss:$24 sps:$4 sm:$0xff]   ;;  %v4826_v24 = vld [vmem:[#allocation8 + $0x1b4] ss:$24 sps:$4 sm:$0xff]  }
  0xba   : > { %v726_v54 = vadd.f32 %v725_v50, %v616_v44  ;;  %3077 = vmatpush1.bf16.msra.mxu0 %v4776_v51  ;;  %3190 = vmatpush1.bf16.msra.mxu1 %v4777_v53  ;;  %v4828_v25 = vld [vmem:[#allocation8 + $0x4b4] ss:$24 sps:$4 sm:$0xff]   ;;  %v4830_v26 = vld [vmem:[#allocation8 + $0x1b0] ss:$24 sps:$4 sm:$0xff]   ;;  %v4832_v28 = vld [vmem:[#allocation8 + $0x184] ss:$24 sps:$4 sm:$0xff]  }
  0xbb   : > { %504 = vadd.xlane.f32.xlu1 %v503_v47  ;;  %3078 = vmatprep.subr.bf16.mxu0 %v4778_v55  ;;  %v4831_v27 = vld [vmem:[#allocation8 + $0x4b0] ss:$24 sps:$4 sm:$0xff]   ;;  %v4834_v29 = vld [vmem:[#allocation8 + $0x484] ss:$24 sps:$4 sm:$0xff]   ;;  %v4836_v30 = vld [vmem:[#allocation8 + $0x180] ss:$24 sps:$4 sm:$0xff]  }
  0xbc   : > { %v727_v57 = vadd.f32 %v726_v54, %v617_v49  ;;  %3191 = vmatprep.subr.bf16.mxu1 %v4780_v56  ;;  %v4837_v31 = vld [vmem:[#allocation8 + $0x480] ss:$24 sps:$4 sm:$0xff]   ;;  %v4840_v32 = vld [vmem:[#allocation8 + $0x754] ss:$24 sps:$4 sm:$0xff]   ;;  %v909_v35 = vshrl.u32 %v908_v34, 7 }
  0xbd   : > { %721 = vadd.xlane.f32.xlu0 %v720_v52  ;;  %v4843_v33 = vld [vmem:[#allocation8 + $0x15c] ss:$24 sps:$4 sm:$0xff]  }
  0xbe   : > { %3079 = vmatpush1.bf16.msra.mxu0 %v4782_v58  ;;  %3192 = vmatpush1.bf16.msra.mxu1 %v4783_v59  ;;  %v5810_v39 = vsub.s32 1, %v909_v35  ;;  %v906_v42 = vld [vmem:[#allocation5] sm:$0x3f]  ;;  %v5814_v43 = vsub.s32 3, %v909_v35  ;;  %v1130_v45 = vld [vmem:[#allocation7] sm:$0x3f] }
  0xbf   : > { %728 = vadd.xlane.f32.xlu1 %v727_v57  ;;  %3080 = vmatprep.subr.bf16.mxu0 %v4784_v60  ;;  %v5816_v46 = vsub.s32 0, %v909_v35  ;;  %v5820_v49 = vsub.s32 2, %v909_v35  ;;  %v5825_v52 = vsub.s32 5, %v909_v35  ;;  %v5827_v53 = vsub.s32 4, %v909_v35 }
  0xc0   : > { %3193 = vmatprep.subr.bf16.mxu1 %v4786_v61  ;;  %7705 = vst [vmem:[#allocation17_spill] sm:$0xff] %v5810_v39  ;;  %7706 = vst [vmem:[#allocation18_spill] sm:$0xff] %v5814_v43  ;;  %v5823_v51 = vrot.slane %v906_v42, %v5810_v39  ;;  %v5832_v57 = vrot.slane %v906_v42, %v5814_v43  ;;  %v5835_v59 = vrot.slane %v1130_v45, %v5810_v39 }
  0xc1   : > { %7707 = vst [vmem:[#allocation19_spill] sm:$0xff] %v5816_v46  ;;  %7708 = vst [vmem:[#allocation20_spill] sm:$0xff] %v5820_v49  ;;  %v5838_v60 = vrot.slane %v1130_v45, %v5814_v43  ;;  %v5841_v61 = vrot.slane %v906_v42, %v5816_v46 }
  0xc2   : > { %3081 = vmatpush1.bf16.msra.mxu0 %v4788_v62  ;;  %3194 = vmatpush1.bf16.msra.mxu1 %v4789_v63  ;;  %7709 = vst [vmem:[#allocation21_spill] sm:$0xff] %v5825_v52  ;;  %7710 = vst [vmem:[#allocation22_spill] sm:$0xff] %v5827_v53  ;;  %v5844_v62 = vrot.slane %v1130_v45, %v5816_v46 }
  0xc3   : > { %3082 = vmatprep.subr.bf16.mxu0 %v4790_v0  ;;  %3195 = vmatprep.subr.bf16.mxu1 %v4792_v1  ;;  %v5849_v1 = vrot.slane %v906_v42, %v5820_v49 }
  0xc6   : > { %3083 = vmatpush2.bf16.msra.mxu0 %v4794_v2  ;;  %3196 = vmatpush2.bf16.msra.mxu1 %v4795_v3  ;;  %v5852_v3 = vrot.slane %v1130_v45, %v5820_v49 }
  0xc7   : > { %3084 = vmatprep.subr.bf16.mxu0 %v4796_v4  ;;  %3197 = vmatprep.subr.bf16.mxu1 %v4798_v5  ;;  %v5855_v4 = vrot.slane %v906_v42, %v5825_v52  ;;  %v5858_v5 = vrot.slane %v1130_v45, %v5825_v52 }
  0xca   : > { %3085 = vmatpush2.bf16.msra.mxu0 %v4800_v6  ;;  %3198 = vmatpush2.bf16.msra.mxu1 %v4801_v7  ;;  %v5861_v6 = vrot.slane %v906_v42, %v5827_v53  ;;  %v5928_v42 = vld [vmem:[%s5698_s17 + $0x68] sm:$0xff] }
  0xcb   : > { %3086 = vmatprep.subr.bf16.mxu0 %v4802_v8  ;;  %3199 = vmatprep.subr.bf16.mxu1 %v4804_v9 }
  0xce   : > { %3087 = vmatpush2.bf16.msra.mxu0 %v4806_v10  ;;  %3200 = vmatpush2.bf16.msra.mxu1 %v4807_v11  ;;  %v5868_v10 = vrot.slane %v1130_v45, %v5827_v53  ;;  %v5933_v45 = vld [vmem:[%s5698_s17 + $0x78] sm:$0xff] }
  0xcf   : > { %3088 = vmatprep.subr.bf16.mxu0 %v4808_v12  ;;  %3201 = vmatprep.subr.bf16.mxu1 %v4810_v13  ;;  %v5871_v12 = vld [vmem:[%s5698_s17 + $0x8] sm:$0xff] }
  0xd0   : > { %7711 = vst [vmem:[#allocation23_spill] sm:$0xff] %v5868_v10  ;;  %v6047_v10 = vld [vmem:[%s5698_s17 + $0x108] sm:$0xff] }
  0xd2   : > { %3089 = vmatpush2.bf16.msra.mxu0 %v4812_v14  ;;  %3202 = vmatpush2.bf16.msra.mxu1 %v4813_v15  ;;  %v5876_v14 = vld [vmem:[%s5698_s17 + $0x18] sm:$0xff] }
  0xd3   : > { %3090 = vmatprep.subr.bf16.mxu0 %v4814_v16  ;;  %3203 = vmatprep.subr.bf16.mxu1 %v4816_v17  ;;  %v5881_v16 = vld [vmem:[%s5698_s17] sm:$0xff] }
  0xd6   : > { %3091 = vmatpush2.bf16.msra.mxu0 %v4818_v18  ;;  %3204 = vmatpush2.bf16.msra.mxu1 %v4819_v19  ;;  %v5886_v18 = vld [vmem:[%s5698_s17 + $0x10] sm:$0xff] }
  0xd7   : > { %3092 = vmatprep.subr.bf16.mxu0 %v4820_v20  ;;  %3205 = vmatprep.subr.bf16.mxu1 %v4822_v21  ;;  %v5891_v21 = vld [vmem:[%s5698_s17 + $0x28] sm:$0xff] }
  0xda   : > { %3093 = vmatpush2.bf16.msra.mxu0 %v4824_v22  ;;  %3206 = vmatpush2.bf16.msra.mxu1 %v4825_v23  ;;  %v5896_v23 = vld [vmem:[%s5698_s17 + $0x20] sm:$0xff]  ;;  %v6011_v22 = vld [vmem:[%s5698_s17 + $0xf8] sm:$0xff] }
  0xdb   : > { %3094 = vmatprep.subr.bf16.mxu0 %v4826_v24  ;;  %3207 = vmatprep.subr.bf16.mxu1 %v4828_v25  ;;  %7712 = vst [vmem:[#allocation24_spill] sm:$0xff] %v5896_v23  ;;  %v5960_v24 = vld [vmem:[%s5698_s17 + $0xa8] sm:$0xff] }
  0xde   : > { %3095 = vmatpush2.bf16.msra.mxu0 %v4830_v26  ;;  %3208 = vmatpush2.bf16.msra.mxu1 %v4831_v27  ;;  %v5901_v26 = vld [vmem:[%s5698_s17 + $0x38] sm:$0xff] }
  0xdf   : > { %3096 = vmatprep.subr.bf16.mxu0 %v4832_v28  ;;  %3209 = vmatprep.subr.bf16.mxu1 %v4834_v29  ;;  %v5906_v28 = vld [vmem:[%s5698_s17 + $0x48] sm:$0xff] }
  0xe2   : > { %3097 = vmatpush2.bf16.msra.mxu0 %v4836_v30  ;;  %3210 = vmatpush2.bf16.msra.mxu1 %v4837_v31  ;;  %v5911_v30 = vld [vmem:[%s5698_s17 + $0x30] sm:$0xff] }
  0xe3   : > { %3292 = vmatprep.subr.bf16.mxu0 %v4840_v32  ;;  %3405 = vmatprep.subr.bf16.mxu1 %v4843_v33  ;;  %v5916_v32 = vld [vmem:[%s5698_s17 + $0x40] sm:$0xff]  ;;  %v5999_v33 = vld [vmem:[%s5698_s17 + $0xc8] sm:$0xff]  ;;  %v6021_v31 = vld [vmem:[%s5698_s17 + $0xd0] sm:$0xff] }
 0x10a   : > { %v400_v36 = vpop.xlane.xlu0 %399 }
 0x10b   : > { %v5808_v37 = vmul.f32 0.0013020834, %v400_v36 }
 0x10c   : > { %v624_v38 = vpop.xlane.xlu1 %623 }
 0x10d   : > { %7704 = vst [vmem:[#allocation16_spill] sm:$0xff] %v5808_v37  ;;  %v730_v40 = vmul.f32 0.0013020834, %v624_v38  ;;  %v746_v41 = vmul.f32 %v5808_v37, %v5808_v37  ;;  %v5923_v38 = vld [vmem:[%s5698_s17 + $0x58] sm:$0xff] }
 0x10e   : > { %v407_v44 = vpop.xlane.xlu0 %406 }
 0x10f   : > { %v762_v47 = vsub.f32 %v730_v40, %v746_v41  ;;  %v5818_v48 = vmul.f32 0.0013020834, %v407_v44 }
 0x110   : > { %v631_v50 = vpop.xlane.xlu1 %630 }
 0x111   : > { %v778_v54 = vadd.f32 1e-05, %v762_v47  ;;  %v731_v55 = vmul.f32 0.0013020834, %v631_v50  ;;  %v747_v56 = vmul.f32 %v5818_v48, %v5818_v48  ;;  %v5938_v50 = vld [vmem:[%s5698_s17 + $0x60] sm:$0xff] }
 0x112   : > { %v414_v58 = vpop.xlane.xlu0 %413  ;;  %v5979_v47 = vld [vmem:[%s5698_s17 + $0xa0] sm:$0xff] }
 0x113   : > { %5174 = vrsqrt.f32 %v778_v54  ;;  %v763_v63 = vsub.f32 %v731_v55, %v747_v56  ;;  %v5846_v0 = vmul.f32 0.0013020834, %v414_v58  ;;  %v5943_v55 = vld [vmem:[%s5698_s17 + $0x50] sm:$0xff]  ;;  %v6004_v56 = vld [vmem:[%s5698_s17 + $0xd8] sm:$0xff] }
 0x114   : > { %v421_v2 = vpop.xlane.xlu1 %420  ;;  %7713 = vst [vmem:[#allocation25_spill] sm:$0xff] %v5943_v55 }
 0x115   : > { %v779_v7 = vadd.f32 1e-05, %v763_v63  ;;  %v5863_v8 = vmul.f32 0.0013020834, %v421_v2  ;;  %v748_v9 = vmul.f32 %v5846_v0, %v5846_v0 }
 0x116   : > { %v638_v11 = vpop.xlane.xlu0 %637 }
 0x117   : > { %5176 = vrsqrt.f32 %v779_v7  ;;  %v732_v20 = vmul.f32 0.0013020834, %v638_v11  ;;  %v749_v35 = vmul.f32 %v5863_v8, %v5863_v8  ;;  %v5950_v7 = vld [vmem:[%s5698_s17 + $0x70] sm:$0xff] }
 0x118   : > { %v645_v25 = vpop.xlane.xlu1 %644 }
 0x119   : > { %v764_v34 = vsub.f32 %v732_v20, %v748_v9  ;;  %v733_v36 = vmul.f32 0.0013020834, %v645_v25  ;;  %v5955_v20 = vld [vmem:[%s5698_s17 + $0x98] sm:$0xff] }
 0x11a   : > { %v428_v41 = vpop.xlane.xlu0 %427  ;;  %v5984_v25 = vld [vmem:[%s5698_s17 + $0xb8] sm:$0xff] }
 0x11b   : > { %v780_v58 = vadd.f32 1e-05, %v764_v34  ;;  %v765_v63 = vsub.f32 %v733_v36, %v749_v35  ;;  %v5947_v2 = vmul.f32 0.0013020834, %v428_v41  ;;  %v5965_v35 = vld [vmem:[%s5698_s17 + $0x90] sm:$0xff]  ;;  %v5970_v41 = vld [vmem:[%s5698_s17 + $0x88] sm:$0xff] }
 0x11c   : > { %v435_v11 = vpop.xlane.xlu1 %434  ;;  %7714 = vst [vmem:[#allocation26_spill] sm:$0xff] %v5970_v41  ;;  %7715 = vst [vmem:[#allocation27_spill] sm:$0xff] %v5984_v25  ;;  %v7721_v41 = vsub.f32 %v5881_v16, %v5808_v37 }
 0x11d   : > { %5178 = vrsqrt.f32 %v780_v58  ;;  %v781_v40 = vadd.f32 1e-05, %v765_v63  ;;  %v5974_v9 = vmul.f32 0.0013020834, %v435_v11  ;;  %v750_v54 = vmul.f32 %v5947_v2, %v5947_v2  ;;  %v5989_v58 = vld [vmem:[%s5698_s17 + $0x80] sm:$0xff]  ;;  %v5994_v11 = vld [vmem:[%s5698_s17 + $0xb0] sm:$0xff] }
 0x11e   : > { %v652_v34 = vpop.xlane.xlu0 %651  ;;  %7716 = vst [vmem:[#allocation28_spill] sm:$0xff] %v5989_v58  ;;  %7717 = vst [vmem:[#allocation29_spill] sm:$0xff] %v5994_v11  ;;  %v7720_v58 = vsub.f32 %v5876_v14, %v5808_v37  ;;  %v7723_v14 = vsub.f32 %v5886_v18, %v5808_v37  ;;  %v7724_v18 = vsub.f32 %v5901_v26, %v5818_v48 }
 0x11f   : > { %5180 = vrsqrt.f32 %v781_v40  ;;  %v734_v36 = vmul.f32 0.0013020834, %v652_v34  ;;  %v751_v63 = vmul.f32 %v5974_v9, %v5974_v9  ;;  %v6016_v34 = vld [vmem:[%s5698_s17 + $0xc0] sm:$0xff] }
 0x120   : > { %v5175_v27 = vpop.eup %5174  ;;  %v659_v19 = vpop.xlane.xlu1 %658 }
 0x121   : > { %v766_v17 = vsub.f32 %v734_v36, %v750_v54  ;;  %v735_v15 = vmul.f32 0.0013020834, %v659_v19  ;;  %v939_v13 = vmul.f32 %v5175_v27, %v5823_v51  ;;  %v941_v52 = vmul.f32 %v5175_v27, %v5832_v57 }
 0x122   : > { %v442_v53 = vpop.xlane.xlu0 %441  ;;  %v938_v40 = vmul.f32 %v5175_v27, %v5841_v61  ;;  %v940_v43 = vmul.f32 %v5175_v27, %v5849_v1  ;;  %v943_v49 = vmul.f32 %v5175_v27, %v5855_v4  ;;  %v6031_v44 = vmul.f32 %v5175_v27, %v5861_v6 }
 0x123   : > { %v782_v39 = vadd.f32 1e-05, %v766_v17  ;;  %v767_v46 = vsub.f32 %v735_v15, %v751_v63  ;;  %v6033_v29 = vmul.f32 0.0013020834, %v442_v53  ;;  %v7719_v19 = vsub.f32 %v5871_v12, %v5808_v37 }
 0x124   : > { %7718 = vst [vmem:[#allocation30_spill] sm:$0xff] %v6031_v44  ;;  %v6038_v36 = vpop.eup %5176  ;;  %v449_v11 = vpop.xlane.xlu1 %448  ;;  %v1037_v25 = vmul.f32 %v941_v52, %v7720_v58  ;;  %v1034_v27 = vmul.f32 %v938_v40, %v7721_v41  ;;  %v7722_v12 = vsub.f32 %v5891_v21, %v5808_v37  ;;  %v1036_v16 = vmul.f32 %v940_v43, %v7723_v14 }
 0x125   : > { %v1035_v54 = vmul.f32 %v939_v13, %v7719_v19  ;;  %v783_v15 = vadd.f32 1e-05, %v767_v46  ;;  %v6056_v17 = vmul.f32 0.0013020834, %v449_v11  ;;  %v752_v52 = vmul.f32 %v6033_v29, %v6033_v29 }
 0x126   : > { %v6054_v13 = vmul.f32 %v943_v49, %v7722_v12  ;;  %5182 = vrsqrt.f32 %v782_v39  ;;  %v666_v41 = vpop.xlane.xlu0 %665  ;;  %v945_v58 = vmul.f32 %v6038_v36, %v5823_v51  ;;  %v947_v49 = vmul.f32 %v6038_v36, %v5832_v57 }
 0x127   : > { %v1163_v63 = vadd.f32 %v5835_v59, %v1035_v54  ;;  %5184 = vrsqrt.f32 %v783_v15  ;;  %v736_v46 = vmul.f32 0.0013020834, %v666_v41  ;;  %v1165_v21 = vadd.f32 %v5838_v60, %v1037_v25 }
 0x128   : > { %v944_v11 = vmul.f32 %v6038_v36, %v5841_v61  ;;  %v753_v43 = vmul.f32 %v6056_v17, %v6056_v17  ;;  %v673_v39 = vpop.xlane.xlu1 %672  ;;  %v1041_v40 = vmul.f32 %v945_v58, %v7724_v18  ;;  %v7725_v19 = vsub.f32 %v5906_v28, %v5818_v48  ;;  %v4838_v28 = vld [vmem:[#allocation8 + $0x750] ss:$24 sps:$4 sm:$0xff]  }
 0x129   : > { %v946_v12 = vmul.f32 %v6038_v36, %v5849_v1  ;;  %v768_v15 = vsub.f32 %v736_v46, %v752_v52  ;;  %v737_v25 = vmul.f32 0.0013020834, %v673_v39  ;;  %v7726_v14 = vsub.f32 %v5911_v30, %v5818_v48 }
 0x12a   : > { %v1043_v54 = vmul.f32 %v947_v49, %v7725_v19  ;;  %v1162_v53 = vadd.f32 %v5844_v62, %v1034_v27  ;;  %v6085_v55 = vpop.eup %5178  ;;  %v456_v44 = vpop.xlane.xlu0 %455  ;;  %v1169_v26 = vadd.f32 %v5835_v59, %v1041_v40  ;;  %v7727_v49 = vsub.f32 %v5916_v32, %v5818_v48 }
 0x12b   : > { %v1040_v41 = vmul.f32 %v944_v11, %v7726_v14  ;;  %v1164_v52 = vadd.f32 %v5852_v3, %v1036_v16  ;;  %v784_v46 = vadd.f32 1e-05, %v768_v15  ;;  %v769_v30 = vsub.f32 %v737_v25, %v753_v43  ;;  %v4841_v15 = vld [vmem:[#allocation8 + $0x158] ss:$24 sps:$4 sm:$0xff]   ;;  %v6110_v25 = vld [vmem:[%s5698_s17 + $0xf0] sm:$0xff] }
 0x12c   : > { %v1171_v58 = vadd.f32 %v5838_v60, %v1043_v54  ;;  %v1042_v18 = vmul.f32 %v946_v12, %v7727_v49  ;;  %v6093_v11 = vmul.f32 0.0013020834, %v456_v44  ;;  %v6096_v39 = vpop.eup %5180  ;;  %v463_v40 = vpop.xlane.xlu1 %462  ;;  %v6098_v19 = vpack.c.bf16 %v1169_v26, %v1163_v63  ;;  %v4846_v44 = vld [vmem:[#allocation8 + $0x724] ss:$24 sps:$4 sm:$0xff]   ;;  %v6115_v63 = vld [vmem:[%s5698_s17 + $0x100] sm:$0xff] }
 0x12d   : > { %v1168_v27 = vadd.f32 %v5844_v62, %v1040_v41  ;;  %v951_v12 = vmul.f32 %v6085_v55, %v5823_v51  ;;  %v6105_v16 = vmul.f32 0.0013020834, %v463_v40  ;;  %v4849_v49 = vld [vmem:[#allocation8 + $0x12c] ss:$24 sps:$4 sm:$0xff]   ;;  %5186 = vrsqrt.f32 %v784_v46 }
 0x12e   : > { %7728 = vst [vmem:[#allocation31_spill] sm:$0xff] %v6098_v19  ;;  %v6100_v54 = vpack.c.bf16 %v1171_v58, %v1165_v21  ;;  %v1170_v32 = vadd.f32 %v5852_v3, %v1042_v18  ;;  %3098 = vmatprep.mubr.bf16.mxu0 %v6098_v19  ;;  %v680_v26 = vpop.xlane.xlu0 %679  ;;  %v4844_v58 = vld [vmem:[#allocation8 + $0x720] ss:$24 sps:$4 sm:$0xff]   ;;  %v957_v18 = vmul.f32 %v6096_v39, %v5823_v51  ;;  %v785_v21 = vadd.f32 1e-05, %v769_v30 }
 0x12f   : > { %v6107_v43 = vpack.c.bf16 %v1168_v27, %v1162_v53  ;;  %v754_v53 = vmul.f32 %v6093_v11, %v6093_v11  ;;  %v738_v27 = vmul.f32 0.0013020834, %v680_v26  ;;  %v755_v40 = vmul.f32 %v6105_v16, %v6105_v16 }
 0x130   : > { %7729 = vst [vmem:[#allocation32_spill] sm:$0xff] %v6100_v54  ;;  %3211 = vmatprep.mubr.bf16.mxu1 %v6100_v54  ;;  %v6121_v41 = vpack.c.bf16 %v1170_v32, %v1164_v52  ;;  %v7732_v52 = vsub.f32 %v5928_v42, %v5846_v0  ;;  %v687_v14 = vpop.xlane.xlu1 %686  ;;  %v7733_v54 = vsub.f32 %v5955_v20, %v5863_v8  ;;  %v4847_v42 = vld [vmem:[#allocation8 + $0x128] ss:$24 sps:$4 sm:$0xff]   ;;  %5188 = vrsqrt.f32 %v785_v21 }
 0x131   : > { %7730 = vst [vmem:[#allocation33_spill] sm:$0xff] %v6107_v43  ;;  %3099 = vmatmul.mubr.bf16.vlgmr.msra.gmra.mxu0 %v6107_v43  ;;  %v953_v46 = vmul.f32 %v6085_v55, %v5832_v57  ;;  %v959_v26 = vmul.f32 %v6096_v39, %v5832_v57  ;;  %v770_v43 = vsub.f32 %v738_v27, %v754_v53  ;;  %v739_v37 = vmul.f32 0.0013020834, %v687_v14  ;;  %v4855_v53 = vld [vmem:[#allocation8 + $0xfc] ss:$24 sps:$4 sm:$0xff]  }
 0x132   : > { %7731 = vst [vmem:[#allocation34_spill] sm:$0xff] %v6121_v41  ;;  %v1047_v32 = vmul.f32 %v951_v12, %v7732_v52  ;;  %3212 = vmatmul.mubr.bf16.vlgmr.msra.gmra.mxu1 %v6121_v41  ;;  %3293 = vmatpush1.bf16.msra.mxu0 %v4838_v28  ;;  %v1053_v19 = vmul.f32 %v957_v18, %v7733_v54  ;;  %v4852_v12 = vld [vmem:[#allocation8 + $0x6f4] ss:$24 sps:$4 sm:$0xff]   ;;  %v470_v20 = vpop.xlane.xlu0 %469 }
 0x133   : > { %3406 = vmatpush1.bf16.msra.mxu1 %v4841_v15  ;;  %3294 = vmatprep.subr.bf16.mxu0 %v4846_v44  ;;  %v950_v28 = vmul.f32 %v6085_v55, %v5841_v61  ;;  %v7734_v18 = vsub.f32 %v5933_v45, %v5846_v0  ;;  %v7735_v15 = vsub.f32 %v5960_v24, %v5863_v8  ;;  %v4850_v44 = vld [vmem:[#allocation8 + $0x6f0] ss:$24 sps:$4 sm:$0xff]   ;;  %v786_v41 = vadd.f32 1e-05, %v770_v43 }
 0x134   : > { %v1175_v30 = vadd.f32 %v5835_v59, %v1047_v32  ;;  %3407 = vmatprep.subr.bf16.mxu1 %v4849_v49  ;;  %v1181_v54 = vadd.f32 %v5835_v59, %v1053_v19  ;;  %v956_v27 = vmul.f32 %v6096_v39, %v5841_v61  ;;  %v6153_v32 = vpop.eup %5182  ;;  %v771_v49 = vsub.f32 %v739_v37, %v755_v40  ;;  %v477_v24 = vpop.xlane.xlu1 %476 }
 0x135   : > { %v1049_v52 = vmul.f32 %v953_v46, %v7734_v18  ;;  %v1055_v14 = vmul.f32 %v959_v26, %v7735_v15  ;;  %v6155_v23 = vmul.f32 0.0013020834, %v470_v20  ;;  %v7737_v19 = vsub.f32 %v5938_v50, %v5846_v0  ;;  %v6160_v46 = vpop.eup %5184  ;;  %v4853_v50 = vld [vmem:[#allocation8 + $0xf8] ss:$24 sps:$4 sm:$0xff]  }
 0x136   : > { %3295 = vmatpush1.bf16.msra.mxu0 %v4844_v58  ;;  %v6162_v26 = vpack.c.bf16 %v1181_v54, %v1175_v30  ;;  %v7739_v37 = vsub.f32 %v5965_v35, %v5863_v8  ;;  %v6169_v40 = vmul.f32 0.0013020834, %v477_v24  ;;  %v4858_v58 = vld [vmem:[#allocation8 + $0x6c4] ss:$24 sps:$4 sm:$0xff]   ;;  %v787_v54 = vadd.f32 1e-05, %v771_v49 }
 0x137   : > { %7736 = vst [vmem:[#allocation35_spill] sm:$0xff] %v6155_v23  ;;  %v1046_v45 = vmul.f32 %v950_v28, %v7737_v19  ;;  %v1177_v18 = vadd.f32 %v5838_v60, %v1049_v52  ;;  %v1183_v15 = vadd.f32 %v5838_v60, %v1055_v14  ;;  %3408 = vmatpush1.bf16.msra.mxu1 %v4847_v42  ;;  %v6173_v30 = vld [vmem:[%s5698_s17 + $0xe8] sm:$0xff]  ;;  %v4861_v14 = vld [vmem:[#allocation8 + $0xcc] ss:$24 sps:$4 sm:$0xff]   ;;  %5190 = vrsqrt.f32 %v786_v41 }
 0x138   : > { %7738 = vst [vmem:[#allocation36_spill] sm:$0xff] %v6162_v26  ;;  %v1052_v43 = vmul.f32 %v956_v27, %v7739_v37  ;;  %7740 = vst [vmem:[#allocation37_spill] sm:$0xff] %v6169_v40  ;;  %3296 = vmatprep.subr.bf16.mxu0 %v4852_v12  ;;  %3108 = vmatprep.mubr.bf16.mxu0 %v6162_v26  ;;  %v952_v42 = vmul.f32 %v6085_v55, %v5849_v1  ;;  %v694_v12 = vpop.xlane.xlu0 %693  ;;  %v4856_v52 = vld [vmem:[#allocation8 + $0x6c0] ss:$24 sps:$4 sm:$0xff]   ;;  %5192 = vrsqrt.f32 %v787_v54 }
 0x139   : > { %v1174_v28 = vadd.f32 %v5844_v62, %v1046_v45  ;;  %v6178_v35 = vpack.c.bf16 %v1183_v15, %v1177_v18  ;;  %3409 = vmatprep.subr.bf16.mxu1 %v4855_v53  ;;  %v958_v27 = vmul.f32 %v6096_v39, %v5849_v1  ;;  %v756_v19 = vmul.f32 %v6155_v23, %v6155_v23  ;;  %v6188_v45 = vld [vmem:[%s5698_s17 + $0x128] sm:$0xff]  ;;  %v4865_v54 = vld [vmem:[#allocation8 + $0x98] ss:$24 sps:$4 sm:$0xff]  }
 0x13a   : > { %v1180_v21 = vadd.f32 %v5844_v62, %v1052_v43  ;;  %v740_v49 = vmul.f32 0.0013020834, %v694_v12  ;;  %v7743_v18 = vsub.f32 %v5950_v7, %v5846_v0  ;;  %3297 = vmatpush1.bf16.msra.mxu0 %v4850_v44  ;;  %v757_v37 = vmul.f32 %v6169_v40, %v6169_v40  ;;  %v701_v43 = vpop.xlane.xlu1 %700 }
 0x13b   : > { %7741 = vst [vmem:[#allocation38_spill] sm:$0xff] %v6178_v35  ;;  %3221 = vmatprep.mubr.bf16.mxu1 %v6178_v35  ;;  %v7744_v12 = vsub.f32 %v5979_v47, %v5863_v8  ;;  %3410 = vmatpush1.bf16.msra.mxu1 %v4853_v50  ;;  %v741_v41 = vmul.f32 0.0013020834, %v701_v43  ;;  %v4859_v35 = vld [vmem:[#allocation8 + $0xc8] ss:$24 sps:$4 sm:$0xff]   ;;  %v969_v47 = vmul.f32 %v6160_v46, %v5823_v51  ;;  %v6214_v43 = vpop.eup %5186 }
 0x13c   : > { %v6193_v24 = vpack.c.bf16 %v1180_v21, %v1174_v28  ;;  %v1048_v15 = vmul.f32 %v952_v42, %v7743_v18  ;;  %v772_v53 = vsub.f32 %v740_v49, %v756_v19  ;;  %3298 = vmatprep.subr.bf16.mxu0 %v4858_v58  ;;  %v963_v28 = vmul.f32 %v6153_v32, %v5823_v51  ;;  %v4864_v21 = vld [vmem:[#allocation8 + $0x694] ss:$24 sps:$4 sm:$0xff]   ;;  %v484_v44 = vpop.xlane.xlu0 %483  ;;  %v4862_v42 = vld [vmem:[#allocation8 + $0x690] ss:$24 sps:$4 sm:$0xff]  }
 0x13d   : > { %v1054_v20 = vmul.f32 %v958_v27, %v7744_v12  ;;  %3411 = vmatprep.subr.bf16.mxu1 %v4861_v14  ;;  %v965_v50 = vmul.f32 %v6153_v32, %v5832_v57  ;;  %v4867_v58 = vld [vmem:[#allocation8 + $0x9c] ss:$24 sps:$4 sm:$0xff]   ;;  %v773_v49 = vsub.f32 %v741_v41, %v757_v37  ;;  %v6212_v18 = vmul.f32 0.0013020834, %v484_v44  ;;  %7745 = vst [vmem:[#allocation40_spill] sm:$0xff] %v6214_v43 }
 0x13e   : > { %7742 = vst [vmem:[#allocation39_spill] sm:$0xff] %v6193_v24  ;;  %3109 = vmatmul.mubr.bf16.gmra.mxu0 %v6193_v24  ;;  %v1176_v7 = vadd.f32 %v5852_v3, %v1048_v15  ;;  %v788_v19 = vadd.f32 1e-05, %v772_v53  ;;  %v491_v14 = vpop.xlane.xlu1 %490  ;;  %v7746_v15 = vsub.f32 %v5999_v33, %v5947_v2  ;;  %v7747_v24 = vsub.f32 %v6011_v22, %v5974_v9  ;;  %v4870_v33 = vld [vmem:[#allocation8 + $0x664] ss:$24 sps:$4 sm:$0xff]  }
 0x13f   : > { %v1182_v27 = vadd.f32 %v5852_v3, %v1054_v20  ;;  %3299 = vmatpush1.bf16.msra.mxu0 %v4856_v52  ;;  %v971_v20 = vmul.f32 %v6160_v46, %v5832_v57  ;;  %v7748_v53 = vsub.f32 %v6004_v56, %v5947_v2  ;;  %v789_v52 = vadd.f32 1e-05, %v773_v49  ;;  %3412 = vmatpush1.bf16.msra.mxu1 %v4859_v35 }
 0x140   : > { %v1059_v12 = vmul.f32 %v963_v28, %v7746_v15  ;;  %v1065_v26 = vmul.f32 %v969_v47, %v7747_v24  ;;  %5194 = vrsqrt.f32 %v788_v19  ;;  %v6229_v44 = vmul.f32 0.0013020834, %v491_v14  ;;  %3300 = vmatprep.subr.bf16.mxu0 %v4864_v21  ;;  %3413 = vmatprep.subr.bf16.mxu1 %v4867_v58  ;;  %v4868_v14 = vld [vmem:[#allocation8 + $0x660] ss:$24 sps:$4 sm:$0xff]  }
 0x141   : > { %v1061_v37 = vmul.f32 %v965_v50, %v7748_v53  ;;  %v6227_v41 = vpack.c.bf16 %v1182_v27, %v1176_v7  ;;  %v7750_v24 = vsub.f32 %v6047_v10, %v5974_v9  ;;  %v708_v7 = vpop.xlane.xlu0 %707  ;;  %v4873_v50 = vld [vmem:[#allocation8 + $0x6c] ss:$24 sps:$4 sm:$0xff]   ;;  %5196 = vrsqrt.f32 %v789_v52 }
 0x142   : > { %v1187_v28 = vadd.f32 %v5835_v59, %v1059_v12  ;;  %v1193_v22 = vadd.f32 %v5835_v59, %v1065_v26  ;;  %v962_v35 = vmul.f32 %v6153_v32, %v5841_v61  ;;  %v968_v21 = vmul.f32 %v6160_v46, %v5841_v61  ;;  %v715_v49 = vpop.xlane.xlu1 %714 }
 0x143   : > { %7749 = vst [vmem:[#allocation41_spill] sm:$0xff] %v6227_v41  ;;  %v1067_v47 = vmul.f32 %v971_v20, %v7750_v24  ;;  %v1189_v56 = vadd.f32 %v5838_v60, %v1061_v37  ;;  %3222 = vmatmul.mubr.bf16.gmra.mxu1 %v6227_v41  ;;  %v964_v26 = vmul.f32 %v6153_v32, %v5849_v1  ;;  %v6260_v24 = vpop.eup %5188  ;;  %v5246_v41 = vld [vmem:[%s5698_s17 + $0x160] sm:$0xff] }
 0x144   : > { %v6244_v27 = vpack.c.bf16 %v1193_v22, %v1187_v28  ;;  %v970_v58 = vmul.f32 %v6160_v46, %v5849_v1  ;;  %3301 = vmatpush1.bf16.msra.mxu0 %v4862_v42  ;;  %v758_v19 = vmul.f32 %v6212_v18, %v6212_v18  ;;  %v7752_v15 = vsub.f32 %v6016_v34, %v5947_v2  ;;  %v4871_v42 = vld [vmem:[#allocation8 + $0x68] ss:$24 sps:$4 sm:$0xff]   ;;  %v4876_v22 = vld [vmem:[#allocation8 + $0x634] ss:$24 sps:$4 sm:$0xff]  }
 0x145   : > { %v1195_v10 = vadd.f32 %v5838_v60, %v1067_v47  ;;  %v7753_v20 = vsub.f32 %v6110_v25, %v5974_v9  ;;  %v7754_v37 = vsub.f32 %v6021_v31, %v5947_v2  ;;  %3414 = vmatpush1.bf16.msra.mxu1 %v4865_v54  ;;  %v742_v28 = vmul.f32 0.0013020834, %v708_v7  ;;  %3302 = vmatprep.subr.bf16.mxu0 %v4870_v33  ;;  %v4879_v54 = vld [vmem:[#allocation8 + $0x3c] ss:$24 sps:$4 sm:$0xff]  }
 0x146   : > { %7751 = vst [vmem:[#allocation42_spill] sm:$0xff] %v6244_v27  ;;  %v1058_v12 = vmul.f32 %v962_v35, %v7752_v15  ;;  %3118 = vmatprep.mubr.bf16.mxu0 %v6244_v27  ;;  %v7756_v34 = vsub.f32 %v6115_v63, %v5974_v9  ;;  %v759_v31 = vmul.f32 %v6229_v44, %v6229_v44  ;;  %v743_v35 = vmul.f32 0.0013020834, %v715_v49  ;;  %v505_v49 = vpop.xlane.xlu1 %504 }
 0x147   : > { %v1064_v53 = vmul.f32 %v968_v21, %v7753_v20  ;;  %v1060_v52 = vmul.f32 %v964_v26, %v7754_v37  ;;  %v6263_v47 = vpack.c.bf16 %v1195_v10, %v1189_v56  ;;  %3415 = vmatprep.subr.bf16.mxu1 %v4873_v50  ;;  %v774_v26 = vsub.f32 %v742_v28, %v758_v19  ;;  %v498_v56 = vpop.xlane.xlu0 %497  ;;  %v5240_v50 = vld [vmem:[%s5698_s17 + $0x158] sm:$0xff]  ;;  %v6279_v20 = vpop.eup %5190 }
 0x148   : > { %v1066_v25 = vmul.f32 %v970_v58, %v7756_v34  ;;  %v1186_v33 = vadd.f32 %v5844_v62, %v1058_v12  ;;  %v775_v10 = vsub.f32 %v743_v35, %v759_v31  ;;  %3303 = vmatpush1.bf16.msra.mxu0 %v4868_v14  ;;  %v6275_v58 = vmul.f32 0.0013020834, %v498_v56  ;;  %v4874_v12 = vld [vmem:[#allocation8 + $0x630] ss:$24 sps:$4 sm:$0xff]  }
 0x149   : > { %7755 = vst [vmem:[#allocation43_spill] sm:$0xff] %v6263_v47  ;;  %v1192_v7 = vadd.f32 %v5844_v62, %v1064_v53  ;;  %v1188_v21 = vadd.f32 %v5852_v3, %v1060_v52  ;;  %3231 = vmatprep.mubr.bf16.mxu1 %v6263_v47  ;;  %v853_v15 = vsub.f32 %v5240_v50, %v6056_v17  ;;  %v790_v19 = vadd.f32 1e-05, %v774_v26  ;;  %v4877_v52 = vld [vmem:[#allocation8 + $0x38] ss:$24 sps:$4 sm:$0xff]  }
 0x14a   : > { %v1194_v63 = vadd.f32 %v5852_v3, %v1066_v25  ;;  %3416 = vmatpush1.bf16.msra.mxu1 %v4871_v42  ;;  %v6283_v37 = vmul.f32 0.0013020834, %v505_v49  ;;  %v975_v14 = vmul.f32 %v6214_v43, %v5823_v51  ;;  %3304 = vmatprep.subr.bf16.mxu0 %v4876_v22  ;;  %v791_v34 = vadd.f32 1e-05, %v775_v10  ;;  %v5241_v31 = vld [vmem:[%s5698_s17 + $0x138] sm:$0xff]  ;;  %v5243_v49 = vld [vmem:[%s5698_s17 + $0x120] sm:$0xff] }
 0x14b   : > { %v6281_v53 = vpack.c.bf16 %v1192_v7, %v1186_v33  ;;  %v981_v25 = vmul.f32 %v6260_v24, %v5823_v51  ;;  %v849_v35 = vsub.f32 %v5241_v31, %v6033_v29  ;;  %3417 = vmatprep.subr.bf16.mxu1 %v4879_v54  ;;  %v4882_v42 = vld [vmem:[#allocation8 + $0x604] ss:$24 sps:$4 sm:$0xff]   ;;  %v6293_v33 = vpop.eup %5192  ;;  %5198 = vrsqrt.f32 %v790_v19  ;;  %v4880_v50 = vld [vmem:[#allocation8 + $0x600] ss:$24 sps:$4 sm:$0xff]  }
 0x14c   : > { %v6287_v28 = vpack.c.bf16 %v1194_v63, %v1188_v21  ;;  %v7759_v22 = vsub.f32 %v6188_v45, %v6033_v29  ;;  %v5242_v21 = vld [vmem:[%s5698_s17 + $0x168] sm:$0xff]  ;;  %v977_v56 = vmul.f32 %v6214_v43, %v5832_v57  ;;  %v4885_v63 = vld [vmem:[#allocation8 + $0xc] ss:$24 sps:$4 sm:$0xff]   ;;  %5200 = vrsqrt.f32 %v791_v34  ;;  %3305 = vmatpush1.bf16.msra.mxu0 %v4874_v12 }
 0x14d   : > { %7757 = vst [vmem:[#allocation44_spill] sm:$0xff] %v6281_v53  ;;  %3119 = vmatmul.mubr.bf16.gmra.mxu0 %v6281_v53  ;;  %v855_v26 = vsub.f32 %v5242_v21, %v6056_v17  ;;  %v1077_v54 = vmul.f32 %v981_v25, %v853_v15  ;;  %v983_v10 = vmul.f32 %v6260_v24, %v5832_v57  ;;  %v5244_v31 = vld [vmem:[%s5698_s17 + $0x150] sm:$0xff]  ;;  %v4888_v25 = vld [vmem:[#allocation8 + $0x8d4] ss:$24 sps:$4 sm:$0xff]   ;;  %v6313_v21 = vpop.eup %5194 }
 0x14e   : > { %7758 = vst [vmem:[#allocation45_spill] sm:$0xff] %v6287_v28  ;;  %v1071_v7 = vmul.f32 %v975_v14, %v7759_v22  ;;  %3232 = vmatmul.mubr.bf16.gmra.mxu1 %v6287_v28  ;;  %v846_v45 = vsub.f32 %v5243_v49, %v6033_v29  ;;  %v1073_v14 = vmul.f32 %v977_v56, %v849_v35  ;;  %v4883_v15 = vld [vmem:[#allocation8 + $0x8] ss:$24 sps:$4 sm:$0xff]   ;;  %7760 = vst [vmem:[#allocation46_spill] sm:$0xff] %v6313_v21  ;;  %v722_v56 = vpop.xlane.xlu0 %721 }
 0x14f   : > { %v852_v22 = vsub.f32 %v5244_v31, %v6056_v17  ;;  %v974_v34 = vmul.f32 %v6214_v43, %v5841_v61  ;;  %3418 = vmatpush1.bf16.msra.mxu1 %v4877_v52  ;;  %v1205_v28 = vadd.f32 %v5835_v59, %v1077_v54  ;;  %v1079_v49 = vmul.f32 %v983_v10, %v855_v26  ;;  %v4891_v54 = vld [vmem:[#allocation8 + $0x2dc] ss:$24 sps:$4 sm:$0xff]   ;;  %v6325_v26 = vpop.eup %5196 }
 0x150   : > { %v1199_v19 = vadd.f32 %v5835_v59, %v1071_v7  ;;  %v980_v12 = vmul.f32 %v6260_v24, %v5841_v61  ;;  %v5245_v7 = vld [vmem:[%s5698_s17 + $0x130] sm:$0xff]  ;;  %3306 = vmatprep.subr.bf16.mxu0 %v4882_v42  ;;  %v1201_v31 = vadd.f32 %v5838_v60, %v1073_v14  ;;  %v854_v52 = vsub.f32 %v5246_v41, %v6056_v17  ;;  %v729_v14 = vpop.xlane.xlu1 %728 }
 0x151   : > { %v848_v35 = vsub.f32 %v5245_v7, %v6033_v29  ;;  %v1070_v47 = vmul.f32 %v974_v34, %v846_v45  ;;  %v976_v53 = vmul.f32 %v6214_v43, %v5849_v1  ;;  %3419 = vmatprep.subr.bf16.mxu1 %v4885_v63  ;;  %7761 = vst [vmem:[#allocation47_spill] sm:$0xff] %v6325_v26  ;;  %v744_v34 = vmul.f32 0.0013020834, %v722_v56  ;;  %v4886_v43 = vld [vmem:[#allocation8 + $0x8d0] ss:$24 sps:$4 sm:$0xff]  }
 0x152   : > { %v6327_v10 = vpack.c.bf16 %v1205_v28, %v1199_v19  ;;  %v1207_v27 = vadd.f32 %v5838_v60, %v1079_v49  ;;  %v1076_v7 = vmul.f32 %v980_v12, %v852_v22  ;;  %v982_v42 = vmul.f32 %v6260_v24, %v5849_v1  ;;  %3307 = vmatpush1.bf16.msra.mxu0 %v4880_v50  ;;  %v4889_v28 = vld [vmem:[#allocation8 + $0x2d8] ss:$24 sps:$4 sm:$0xff]   ;;  %v4897_v56 = vld [vmem:[#allocation8 + $0x2ac] ss:$24 sps:$4 sm:$0xff]  }
 0x153   : > { %v1198_v45 = vadd.f32 %v5844_v62, %v1070_v47  ;;  %v1072_v41 = vmul.f32 %v976_v53, %v848_v35  ;;  %v760_v63 = vmul.f32 %v6275_v58, %v6275_v58  ;;  %3420 = vmatpush1.bf16.msra.mxu1 %v4883_v15  ;;  %3308 = vmatprep.subr.bf16.mxu0 %v4888_v25  ;;  %v745_v12 = vmul.f32 0.0013020834, %v729_v14  ;;  %v5247_v15 = vld [vmem:[%s5698_s17 + $0x188] sm:$0xff] }
 0x154   : > { %7762 = vst [vmem:[#allocation48_spill] sm:$0xff] %v6327_v10  ;;  %3128 = vmatprep.mubr.bf16.mxu0 %v6327_v10  ;;  %v6336_v19 = vpack.c.bf16 %v1207_v27, %v1201_v31  ;;  %v1204_v22 = vadd.f32 %v5844_v62, %v1076_v7  ;;  %v1078_v50 = vmul.f32 %v982_v42, %v854_v52  ;;  %v4894_v35 = vld [vmem:[#allocation8 + $0x8a4] ss:$24 sps:$4 sm:$0xff]   ;;  %v5248_v52 = vld [vmem:[%s5698_s17 + $0x1b8] sm:$0xff] }
 0x155   : > { %v761_v47 = vmul.f32 %v6283_v37, %v6283_v37  ;;  %v1200_v53 = vadd.f32 %v5852_v3, %v1072_v41  ;;  %v776_v49 = vsub.f32 %v744_v34, %v760_v63  ;;  %v859_v25 = vsub.f32 %v5247_v15, %v6093_v11  ;;  %3421 = vmatprep.subr.bf16.mxu1 %v4891_v54  ;;  %v5249_v63 = vld [vmem:[%s5698_s17 + $0x198] sm:$0xff] }
 0x156   : > { %7763 = vst [vmem:[#allocation49_spill] sm:$0xff] %v6336_v19  ;;  %3241 = vmatprep.mubr.bf16.mxu1 %v6336_v19  ;;  %v6345_v27 = vpack.c.bf16 %v1204_v22, %v1198_v45  ;;  %v1206_v31 = vadd.f32 %v5852_v3, %v1078_v50  ;;  %v865_v7 = vsub.f32 %v5248_v52, %v6105_v16  ;;  %v4892_v45 = vld [vmem:[#allocation8 + $0x8a0] ss:$24 sps:$4 sm:$0xff]  }
 0x157   : > { %v987_v42 = vmul.f32 %v6279_v20, %v5823_v51  ;;  %v792_v14 = vadd.f32 1e-05, %v776_v49  ;;  %v777_v41 = vsub.f32 %v745_v12, %v761_v47  ;;  %v993_v54 = vmul.f32 %v6293_v33, %v5823_v51  ;;  %3309 = vmatpush2.bf16.msra.mxu0 %v4886_v43  ;;  %3422 = vmatpush2.bf16.msra.mxu1 %v4889_v28  ;;  %v4895_v22 = vld [vmem:[#allocation8 + $0x2a8] ss:$24 sps:$4 sm:$0xff]   ;;  %v4900_v12 = vld [vmem:[#allocation8 + $0x874] ss:$24 sps:$4 sm:$0xff]  }
 0x158   : > { %7764 = vst [vmem:[#allocation50_spill] sm:$0xff] %v6345_v27  ;;  %v861_v34 = vsub.f32 %v5249_v63, %v6093_v11  ;;  %3129 = vmatmul.mubr.bf16.gmra.mxu0 %v6345_v27  ;;  %v6357_v50 = vpack.c.bf16 %v1206_v31, %v1200_v53  ;;  %v5250_v52 = vld [vmem:[%s5698_s17 + $0x1c8] sm:$0xff]  ;;  %v989_v47 = vmul.f32 %v6279_v20, %v5832_v57  ;;  %v6365_v31 = vpop.eup %5198 }
 0x159   : > { %v1083_v15 = vmul.f32 %v987_v42, %v859_v25  ;;  %v867_v49 = vsub.f32 %v5250_v52, %v6105_v16  ;;  %5202 = vrsqrt.f32 %v792_v14  ;;  %v793_v63 = vadd.f32 1e-05, %v777_v41  ;;  %3310 = vmatprep.subr.bf16.mxu0 %v4894_v35  ;;  %3423 = vmatprep.subr.bf16.mxu1 %v4897_v56  ;;  %v4903_v53 = vld [vmem:[#allocation8 + $0x27c] ss:$24 sps:$4 sm:$0xff]   ;;  %v5252_v41 = vld [vmem:[%s5698_s17 + $0x1b0] sm:$0xff] }
 0x15a   : > { %7765 = vst [vmem:[#allocation51_spill] sm:$0xff] %v6357_v50  ;;  %v1089_v43 = vmul.f32 %v993_v54, %v865_v7  ;;  %v995_v28 = vmul.f32 %v6293_v33, %v5832_v57  ;;  %3242 = vmatmul.mubr.bf16.gmra.mxu1 %v6357_v50  ;;  %v1085_v42 = vmul.f32 %v989_v47, %v861_v34  ;;  %v5251_v52 = vld [vmem:[%s5698_s17 + $0x180] sm:$0xff]  ;;  %v6373_v54 = vpop.eup %5200  ;;  %v5253_v47 = vld [vmem:[%s5698_s17 + $0x190] sm:$0xff] }
 0x15b   : > { %v1211_v25 = vadd.f32 %v5835_v59, %v1083_v15  ;;  %v858_v14 = vsub.f32 %v5251_v52, %v6093_v11  ;;  %v864_v7 = vsub.f32 %v5252_v41, %v6105_v16  ;;  %5204 = vrsqrt.f32 %v793_v63  ;;  %3311 = vmatpush2.bf16.msra.mxu0 %v4892_v45  ;;  %3424 = vmatpush2.bf16.msra.mxu1 %v4895_v22  ;;  %v5254_v41 = vld [vmem:[%s5698_s17 + $0x1c0] sm:$0xff] }
 0x15c   : > { %v1217_v35 = vadd.f32 %v5835_v59, %v1089_v43  ;;  %v1091_v56 = vmul.f32 %v995_v28, %v867_v49  ;;  %v986_v50 = vmul.f32 %v6279_v20, %v5841_v61  ;;  %v1213_v34 = vadd.f32 %v5838_v60, %v1085_v42  ;;  %v4898_v43 = vld [vmem:[#allocation8 + $0x870] ss:$24 sps:$4 sm:$0xff]   ;;  %3312 = vmatprep.subr.bf16.mxu0 %v4900_v12 }
 0x15d   : > { %v992_v15 = vmul.f32 %v6293_v33, %v5841_v61  ;;  %v860_v52 = vsub.f32 %v5253_v47, %v6093_v11  ;;  %v866_v63 = vsub.f32 %v5254_v41, %v6105_v16  ;;  %v988_v28 = vmul.f32 %v6279_v20, %v5849_v1  ;;  %3425 = vmatprep.subr.bf16.mxu1 %v4903_v53  ;;  %v5255_v47 = vld [vmem:[%s5698_s17 + $0x1e8] sm:$0xff]  ;;  %v5256_v41 = vld [vmem:[%s5698_s17 + $0x218] sm:$0xff] }
 0x15e   : > { %v6385_v49 = vpack.c.bf16 %v1217_v35, %v1211_v25  ;;  %v1219_v45 = vadd.f32 %v5838_v60, %v1091_v56  ;;  %v1082_v22 = vmul.f32 %v986_v50, %v858_v14  ;;  %v994_v19 = vmul.f32 %v6293_v33, %v5849_v1  ;;  %v4901_v25 = vld [vmem:[#allocation8 + $0x278] ss:$24 sps:$4 sm:$0xff]   ;;  %v4906_v35 = vld [vmem:[#allocation8 + $0x844] ss:$24 sps:$4 sm:$0xff]  }
 0x15f   : > { %v1088_v42 = vmul.f32 %v992_v15, %v864_v7  ;;  %v871_v27 = vsub.f32 %v5255_v47, %v6155_v23  ;;  %v877_v12 = vsub.f32 %v5256_v41, %v6169_v40  ;;  %v1084_v53 = vmul.f32 %v988_v28, %v860_v52  ;;  %v5257_v41 = vld [vmem:[%s5698_s17 + $0x1f8] sm:$0xff]  ;;  %3313 = vmatpush2.bf16.msra.mxu0 %v4898_v43 }
 0x160   : > { %7766 = vst [vmem:[#allocation52_spill] sm:$0xff] %v6385_v49  ;;  %3138 = vmatprep.mubr.bf16.mxu0 %v6385_v49  ;;  %v6397_v50 = vpack.c.bf16 %v1219_v45, %v1213_v34  ;;  %v1210_v14 = vadd.f32 %v5844_v62, %v1082_v22  ;;  %v999_v7 = vmul.f32 %v6313_v21, %v5823_v51  ;;  %v5258_v45 = vld [vmem:[%s5698_s17 + $0x228] sm:$0xff] }
 0x161   : > { %v1216_v56 = vadd.f32 %v5844_v62, %v1088_v42  ;;  %v1090_v15 = vmul.f32 %v994_v19, %v866_v63  ;;  %v1005_v47 = vmul.f32 %v6325_v26, %v5823_v51  ;;  %v873_v10 = vsub.f32 %v5257_v41, %v6155_v23  ;;  %v4909_v63 = vld [vmem:[#allocation8 + $0x24c] ss:$24 sps:$4 sm:$0xff]   ;;  %3426 = vmatpush2.bf16.msra.mxu1 %v4901_v25 }
 0x162   : > { %7767 = vst [vmem:[#allocation53_spill] sm:$0xff] %v6397_v50  ;;  %3251 = vmatprep.mubr.bf16.mxu1 %v6397_v50  ;;  %v1212_v34 = vadd.f32 %v5852_v3, %v1084_v53  ;;  %v1095_v52 = vmul.f32 %v999_v7, %v871_v27  ;;  %v879_v22 = vsub.f32 %v5258_v45, %v6169_v40  ;;  %v5259_v53 = vld [vmem:[%s5698_s17 + $0x1e0] sm:$0xff]  ;;  %v5260_v45 = vld [vmem:[%s5698_s17 + $0x210] sm:$0xff] }
 0x163   : > { %v1001_v19 = vmul.f32 %v6313_v21, %v5832_v57  ;;  %v6413_v28 = vpack.c.bf16 %v1216_v56, %v1210_v14  ;;  %v1218_v42 = vadd.f32 %v5852_v3, %v1090_v15  ;;  %v1101_v41 = vmul.f32 %v1005_v47, %v877_v12  ;;  %v4904_v14 = vld [vmem:[#allocation8 + $0x840] ss:$24 sps:$4 sm:$0xff]   ;;  %3314 = vmatprep.subr.bf16.mxu0 %v4906_v35 }
 0x164   : > { %v1007_v43 = vmul.f32 %v6325_v26, %v5832_v57  ;;  %v1223_v50 = vadd.f32 %v5835_v59, %v1095_v52  ;;  %v870_v7 = vsub.f32 %v5259_v53, %v6155_v23  ;;  %v876_v49 = vsub.f32 %v5260_v45, %v6169_v40  ;;  %v4907_v56 = vld [vmem:[#allocation8 + $0x248] ss:$24 sps:$4 sm:$0xff]   ;;  %v5262_v53 = vld [vmem:[%s5698_s17 + $0x220] sm:$0xff]  ;;  %3427 = vmatprep.subr.bf16.mxu1 %v4909_v63 }
 0x165   : > { %7768 = vst [vmem:[#allocation54_spill] sm:$0xff] %v6413_v28  ;;  %v1097_v27 = vmul.f32 %v1001_v19, %v873_v10  ;;  %3139 = vmatmul.mubr.bf16.gmra.mxu0 %v6413_v28  ;;  %v6424_v12 = vpack.c.bf16 %v1218_v42, %v1212_v34  ;;  %v1229_v25 = vadd.f32 %v5835_v59, %v1101_v41  ;;  %v5261_v19 = vld [vmem:[%s5698_s17 + $0x1f0] sm:$0xff]  ;;  %v4912_v34 = vld [vmem:[#allocation8 + $0x814] ss:$24 sps:$4 sm:$0xff]   ;;  %v5263_v63 = vld [vmem:[%s5698_s17 + $0x248] sm:$0xff] }
 0x166   : > { %v1103_v15 = vmul.f32 %v1007_v43, %v879_v22  ;;  %v998_v10 = vmul.f32 %v6313_v21, %v5841_v61  ;;  %v1004_v52 = vmul.f32 %v6325_v26, %v5841_v61  ;;  %v872_v35 = vsub.f32 %v5261_v19, %v6155_v23  ;;  %v6436_v42 = vpop.eup %5202  ;;  %3315 = vmatpush2.bf16.msra.mxu0 %v4904_v14  ;;  %v4910_v14 = vld [vmem:[#allocation8 + $0x810] ss:$24 sps:$4 sm:$0xff]   ;;  %v4918_v23 = vld [vmem:[#allocation8 + $0x7e4] ss:$24 sps:$4 sm:$0xff]  }
 0x167   : > { %7769 = vst [vmem:[#allocation55_spill] sm:$0xff] %v6424_v12  ;;  %v1225_v47 = vadd.f32 %v5838_v60, %v1097_v27  ;;  %v878_v45 = vsub.f32 %v5262_v53, %v6169_v40  ;;  %3252 = vmatmul.mubr.bf16.gmra.mxu1 %v6424_v12  ;;  %v6439_v22 = vpack.c.bf16 %v1229_v25, %v1223_v50  ;;  %v4915_v40 = vld [vmem:[#allocation8 + $0x21c] ss:$24 sps:$4 sm:$0xff]  }
 0x168   : > { %v1231_v41 = vadd.f32 %v5838_v60, %v1103_v15  ;;  %v1094_v43 = vmul.f32 %v998_v10, %v870_v7  ;;  %v1000_v27 = vmul.f32 %v6313_v21, %v5849_v1  ;;  %v1100_v28 = vmul.f32 %v1004_v52, %v876_v49  ;;  %3428 = vmatpush2.bf16.msra.mxu1 %v4907_v56  ;;  %v6448_v50 = vpop.eup %5204  ;;  %v5264_v15 = vld [vmem:[%s5698_s17 + $0x278] sm:$0xff] }
 0x169   : > { %7770 = vst [vmem:[#allocation56_spill] sm:$0xff] %v6439_v22  ;;  %v1006_v19 = vmul.f32 %v6325_v26, %v5849_v1  ;;  %v883_v53 = vsub.f32 %v5263_v63, %v6212_v18  ;;  %3148 = vmatprep.mubr.bf16.mxu0 %v6439_v22  ;;  %v889_v10 = vsub.f32 %v5264_v15, %v6229_v44  ;;  %v5267_v26 = vld [vmem:[%s5698_s17 + $0x240] sm:$0xff] }
 0x16a   : > { %v6451_v7 = vpack.c.bf16 %v1231_v41, %v1225_v47  ;;  %v1222_v25 = vadd.f32 %v5844_v62, %v1094_v43  ;;  %v1096_v49 = vmul.f32 %v1000_v27, %v872_v35  ;;  %v1228_v56 = vadd.f32 %v5844_v62, %v1100_v28  ;;  %3316 = vmatprep.subr.bf16.mxu0 %v4912_v34  ;;  %v5265_v35 = vld [vmem:[%s5698_s17 + $0x258] sm:$0xff]  ;;  %v5266_v43 = vld [vmem:[%s5698_s17 + $0x288] sm:$0xff] }
 0x16b   : > { %v1102_v52 = vmul.f32 %v1006_v19, %v878_v45  ;;  %v1011_v63 = vmul.f32 %v6365_v31, %v5823_v51  ;;  %v1017_v12 = vmul.f32 %v6373_v54, %v5823_v51  ;;  %v885_v41 = vsub.f32 %v5265_v35, %v6212_v18  ;;  %v4913_v27 = vld [vmem:[#allocation8 + $0x218] ss:$24 sps:$4 sm:$0xff]   ;;  %3429 = vmatprep.subr.bf16.mxu1 %v4915_v40 }
 0x16c   : > { %7771 = vst [vmem:[#allocation57_spill] sm:$0xff] %v6451_v7  ;;  %3261 = vmatprep.mubr.bf16.mxu1 %v6451_v7  ;;  %v1224_v47 = vadd.f32 %v5852_v3, %v1096_v49  ;;  %v891_v28 = vsub.f32 %v5266_v43, %v6229_v44  ;;  %v1013_v45 = vmul.f32 %v6365_v31, %v5832_v57  ;;  %v5268_v43 = vld [vmem:[%s5698_s17 + $0x270] sm:$0xff] }
 0x16d   : > { %v6469_v19 = vpack.c.bf16 %v1228_v56, %v1222_v25  ;;  %v1230_v34 = vadd.f32 %v5852_v3, %v1102_v52  ;;  %v1107_v15 = vmul.f32 %v1011_v63, %v883_v53  ;;  %v1113_v22 = vmul.f32 %v1017_v12, %v889_v10  ;;  %3317 = vmatpush2.bf16.msra.mxu0 %v4910_v14  ;;  %v4921_v25 = vld [vmem:[#allocation8 + $0x1ec] ss:$24 sps:$4 sm:$0xff]   ;;  %v4916_v56 = vld [vmem:[#allocation8 + $0x7e0] ss:$24 sps:$4 sm:$0xff]  }
 0x16e   : > { %v1019_v49 = vmul.f32 %v6373_v54, %v5832_v57  ;;  %v1109_v7 = vmul.f32 %v1013_v45, %v885_v41  ;;  %v882_v35 = vsub.f32 %v5267_v26, %v6212_v18  ;;  %v888_v21 = vsub.f32 %v5268_v43, %v6229_v44  ;;  %v5269_v63 = vld [vmem:[%s5698_s17 + $0x250] sm:$0xff]  ;;  %3430 = vmatpush2.bf16.msra.mxu1 %v4913_v27 }
 0x16f   : > { %3149 = vmatmul.mubr.bf16.gmra.mxu0 %v6469_v19  ;;  %v6479_v53 = vpack.c.bf16 %v1230_v34, %v1224_v47  ;;  %v1235_v40 = vadd.f32 %v5835_v59, %v1107_v15  ;;  %v1241_v12 = vadd.f32 %v5835_v59, %v1113_v22  ;;  %v1010_v10 = vmul.f32 %v6365_v31, %v5841_v61  ;;  %v4919_v47 = vld [vmem:[#allocation8 + $0x1e8] ss:$24 sps:$4 sm:$0xff]   ;;  %v5270_v34 = vld [vmem:[%s5698_s17 + $0x280] sm:$0xff] }
 0x170   : > { %v1115_v26 = vmul.f32 %v1019_v49, %v891_v28  ;;  %v1237_v52 = vadd.f32 %v5838_v60, %v1109_v7  ;;  %v1016_v14 = vmul.f32 %v6373_v54, %v5841_v61  ;;  %v884_v41 = vsub.f32 %v5269_v63, %v6212_v18  ;;  %v4924_v28 = vld [vmem:[#allocation8 + $0x7b4] ss:$24 sps:$4 sm:$0xff]   ;;  %3318 = vmatprep.subr.bf16.mxu0 %v4918_v23 }
 0x171   : > { %7772 = vst [vmem:[#allocation58_spill] sm:$0xff] %v6479_v53  ;;  %3262 = vmatmul.mubr.bf16.gmra.mxu1 %v6479_v53  ;;  %v6491_v45 = vpack.c.bf16 %v1241_v12, %v1235_v40  ;;  %v1106_v22 = vmul.f32 %v1010_v10, %v882_v35  ;;  %v890_v15 = vsub.f32 %v5270_v34, %v6229_v44  ;;  %v5271_v12 = vld [vmem:[%s5698_s17 + $0x2a8] sm:$0xff]  ;;  %v5272_v23 = vld [vmem:[%s5698_s17 + $0x2d8] sm:$0xff] }
 0x172   : > { %v1012_v7 = vmul.f32 %v6365_v31, %v5849_v1  ;;  %v1243_v49 = vadd.f32 %v5838_v60, %v1115_v26  ;;  %v1112_v43 = vmul.f32 %v1016_v14, %v888_v21  ;;  %v1018_v27 = vmul.f32 %v6373_v54, %v5849_v1  ;;  %3431 = vmatprep.subr.bf16.mxu1 %v4921_v25  ;;  %v4927_v63 = vld [vmem:[#allocation8 + $0x1bc] ss:$24 sps:$4 sm:$0xff]  }
 0x173   : > { %3158 = vmatprep.mubr.bf16.mxu0 %v6491_v45  ;;  %v1234_v35 = vadd.f32 %v5844_v62, %v1106_v22  ;;  %3319 = vmatpush2.bf16.msra.mxu0 %v4916_v56  ;;  %v895_v10 = vsub.f32 %v5271_v12, %v6275_v58  ;;  %v901_v25 = vsub.f32 %v5272_v23, %v6283_v37  ;;  %v5273_v22 = vld [vmem:[%s5698_s17 + $0x2b8] sm:$0xff] }
 0x174   : > { %v1108_v40 = vmul.f32 %v1012_v7, %v884_v41  ;;  %v6504_v34 = vpack.c.bf16 %v1243_v49, %v1237_v52  ;;  %v1240_v21 = vadd.f32 %v5844_v62, %v1112_v43  ;;  %v1114_v26 = vmul.f32 %v1018_v27, %v890_v15  ;;  %3432 = vmatpush2.bf16.msra.mxu1 %v4919_v47  ;;  %v4922_v7 = vld [vmem:[#allocation8 + $0x7b0] ss:$24 sps:$4 sm:$0xff]   ;;  %v5274_v49 = vld [vmem:[%s5698_s17 + $0x2e8] sm:$0xff] }
 0x175   : > { %v1023_v41 = vmul.f32 %v6436_v42, %v5823_v51  ;;  %v1029_v56 = vmul.f32 %v6448_v50, %v5823_v51  ;;  %v897_v52 = vsub.f32 %v5273_v22, %v6275_v58  ;;  %3320 = vmatprep.subr.bf16.mxu0 %v4924_v28  ;;  %v903_v43 = vsub.f32 %v5274_v49, %v6283_v37  ;;  %v4925_v23 = vld [vmem:[#allocation8 + $0x1b8] ss:$24 sps:$4 sm:$0xff]  }
 0x176   : > { %7773 = vst [vmem:[#allocation59_spill] sm:$0xff] %v6504_v34  ;;  %v1236_v14 = vadd.f32 %v5852_v3, %v1108_v40  ;;  %3271 = vmatprep.mubr.bf16.mxu1 %v6504_v34  ;;  %v6517_v47 = vpack.c.bf16 %v1240_v21, %v1234_v35  ;;  %v1242_v15 = vadd.f32 %v5852_v3, %v1114_v26  ;;  %v5275_v28 = vld [vmem:[%s5698_s17 + $0x2a0] sm:$0xff]  ;;  %v5276_v26 = vld [vmem:[%s5698_s17 + $0x2d0] sm:$0xff] }
 0x177   : > { %v1025_v27 = vmul.f32 %v6436_v42, %v5832_v57  ;;  %v1119_v51 = vmul.f32 %v1023_v41, %v895_v10  ;;  %v1125_v40 = vmul.f32 %v1029_v56, %v901_v25  ;;  %v1031_v12 = vmul.f32 %v6448_v50, %v5832_v57  ;;  %3433 = vmatprep.subr.bf16.mxu1 %v4927_v63  ;;  %v4930_v25 = vld [vmem:[#allocation8 + $0x784] ss:$24 sps:$4 sm:$0xff]  }
 0x178   : > { %v894_v22 = vsub.f32 %v5275_v28, %v6275_v58  ;;  %3159 = vmatmul.mubr.bf16.gmra.mxu0 %v6517_v47  ;;  %v6529_v35 = vpack.c.bf16 %v1242_v15, %v1236_v14  ;;  %v900_v49 = vsub.f32 %v5276_v26, %v6283_v37  ;;  %v1022_v10 = vmul.f32 %v6436_v42, %v5841_v61  ;;  %v4933_v14 = vld [vmem:[#allocation8 + $0x18c] ss:$24 sps:$4 sm:$0xff]   ;;  %v5278_v26 = vld [vmem:[%s5698_s17 + $0x2e0] sm:$0xff] }
 0x179   : > { %v1121_v21 = vmul.f32 %v1025_v27, %v897_v52  ;;  %v1247_v57 = vadd.f32 %v5835_v59, %v1119_v51  ;;  %v1253_v63 = vadd.f32 %v5835_v59, %v1125_v40  ;;  %v1127_v41 = vmul.f32 %v1031_v12, %v903_v43  ;;  %3321 = vmatpush2.bf16.msra.mxu0 %v4922_v7  ;;  %v5277_v27 = vld [vmem:[%s5698_s17 + $0x2b0] sm:$0xff]  ;;  %v4928_v51 = vld [vmem:[#allocation8 + $0x780] ss:$24 sps:$4 sm:$0xff]  }
 0x17a   : > { %v1028_v56 = vmul.f32 %v6448_v50, %v5841_v61  ;;  %3272 = vmatmul.mubr.bf16.gmra.mxu1 %v6529_v35  ;;  %v1118_v15 = vmul.f32 %v1022_v10, %v894_v22  ;;  %v896_v28 = vsub.f32 %v5277_v27, %v6275_v58  ;;  %v902_v34 = vsub.f32 %v5278_v26, %v6283_v37  ;;  %v4931_v7 = vld [vmem:[#allocation8 + $0x188] ss:$24 sps:$4 sm:$0xff]   ;;  %v4936_v10 = vld [vmem:[#allocation8 + $0x45c] ss:$24 sps:$4 sm:$0xff]  }
 0x17b   : > { %v1249_v52 = vadd.f32 %v5838_v60, %v1121_v21  ;;  %v6545_v53 = vpack.c.bf16 %v1253_v63, %v1247_v57  ;;  %v1255_v59 = vadd.f32 %v5838_v60, %v1127_v41  ;;  %v1024_v61 = vmul.f32 %v6436_v42, %v5849_v1  ;;  %3434 = vmatpush2.bf16.msra.mxu1 %v4925_v23  ;;  %v4939_v60 = vld [vmem:[#allocation8 + $0x75c] ss:$24 sps:$4 sm:$0xff]  }
 0x17c   : > { %v1124_v43 = vmul.f32 %v1028_v56, %v900_v49  ;;  %v1246_v40 = vadd.f32 %v5844_v62, %v1118_v15  ;;  %v1030_v12 = vmul.f32 %v6448_v50, %v5849_v1  ;;  %v949_v22 = vmul.f32 %v6038_v36, %v5855_v4  ;;  %3322 = vmatprep.subr.bf16.mxu0 %v4930_v25  ;;  %v7775_v25 = vld [vmem:[#allocation24_spill] sm:$0xff]  ;;  %v7778_v27 = vld [vmem:[#allocation30_spill] sm:$0xff] }
 0x17d   : > { %v1167_v21 = vadd.f32 %v5858_v5, %v6054_v13  ;;  %3168 = vmatprep.mubr.bf16.mxu0 %v6545_v53  ;;  %v6558_v49 = vpack.c.bf16 %v1255_v59, %v1249_v52  ;;  %v1120_v57 = vmul.f32 %v1024_v61, %v896_v28  ;;  %3435 = vmatprep.subr.bf16.mxu1 %v4933_v14  ;;  %v7776_v56 = vld [vmem:[#allocation16_spill] sm:$0xff]  ;;  %v7781_v59 = vld [vmem:[#allocation23_spill] sm:$0xff] }
 0x17e   : > { %v1252_v23 = vadd.f32 %v5844_v62, %v1124_v43  ;;  %v1126_v63 = vmul.f32 %v1030_v12, %v902_v34  ;;  %v7774_v1 = vsub.f32 %v5923_v38, %v5818_v48  ;;  %3323 = vmatpush2.bf16.msra.mxu0 %v4928_v51  ;;  %v948_v13 = vmul.f32 %v6038_v36, %v5861_v6  ;;  %v7779_v36 = vld [vmem:[#allocation25_spill] sm:$0xff] }
 0x17f   : > { %v7777_v15 = vsub.f32 %v7775_v25, %v7776_v56  ;;  %3281 = vmatprep.mubr.bf16.mxu1 %v6558_v49  ;;  %v1248_v62 = vadd.f32 %v5852_v3, %v1120_v57  ;;  %3436 = vmatpush2.bf16.msra.mxu1 %v4931_v7  ;;  %v955_v38 = vmul.f32 %v6085_v55, %v5855_v4  ;;  %v7782_v7 = vld [vmem:[#allocation26_spill] sm:$0xff]  ;;  %v5279_v25 = vld [vmem:[%s5698_s17 + $0x118] sm:$0xff] }
 0x180   : > { %v1045_v41 = vmul.f32 %v949_v22, %v7774_v1  ;;  %v6571_v52 = vpack.c.bf16 %v1252_v23, %v1246_v40  ;;  %v1254_v34 = vadd.f32 %v5852_v3, %v1126_v63  ;;  %3518 = vmatprep.subr.bf16.mxu0 %v4936_v10  ;;  %3631 = vmatprep.subr.bf16.mxu1 %v4939_v60  ;;  %v7784_v23 = vld [vmem:[#allocation27_spill] sm:$0xff] }
 0x181   : > { %v1038_v26 = vmul.f32 %v7778_v27, %v7777_v15  ;;  %v7780_v28 = vsub.f32 %v7779_v36, %v5818_v48  ;;  %v961_v61 = vmul.f32 %v6096_v39, %v5855_v4  ;;  %v7783_v40 = vsub.f32 %v7782_v7, %v5846_v0 }
 0x182   : > { %v1173_v14 = vadd.f32 %v5858_v5, %v1045_v41  ;;  %3169 = vmatmul.mubr.bf16.gmra.mxu0 %v6571_v52  ;;  %v954_v12 = vmul.f32 %v6085_v55, %v5861_v6  ;;  %v6590_v22 = vpack.c.bf16 %v1254_v34, %v1248_v62  ;;  %v960_v60 = vmul.f32 %v6096_v39, %v5861_v6  ;;  %v7786_v41 = vld [vmem:[#allocation28_spill] sm:$0xff]  ;;  %v7788_v39 = vld [vmem:[#allocation29_spill] sm:$0xff]  ;;  %v7790_v62 = vld [vmem:[#allocation31_spill] sm:$0xff] }
 0x183   : > { %v1044_v51 = vmul.f32 %v948_v13, %v7780_v28  ;;  %v1166_v43 = vadd.f32 %v7781_v59, %v1038_v26  ;;  %v1051_v3 = vmul.f32 %v955_v38, %v7783_v40  ;;  %v7785_v57 = vsub.f32 %v7784_v23, %v5863_v8  ;;  %v4934_v28 = vld [vmem:[#allocation8 + $0x458] ss:$24 sps:$4 sm:$0xff]   ;;  %v5282_v23 = vld [vmem:[%s5698_s17 + $0x148] sm:$0xff] }
 0x184   : > { %v6592_v10 = vpack.c.bf16 %v1173_v14, %v1167_v21  ;;  %v7787_v13 = vsub.f32 %v7786_v41, %v5846_v0  ;;  %v845_v21 = vsub.f32 %v5279_v25, %v5974_v9  ;;  %3282 = vmatmul.mubr.bf16.gmra.mxu1 %v6590_v22  ;;  %v7789_v15 = vsub.f32 %v7788_v39, %v5863_v8  ;;  %v5280_v14 = vld [vmem:[%s5698_s17 + $0xe0] sm:$0xff]  ;;  %v4945_v39 = vld [vmem:[#allocation8 + $0x72c] ss:$24 sps:$4 sm:$0xff]  }
 0x185   : > { %v1172_v48 = vadd.f32 %v7781_v59, %v1044_v51  ;;  %v1057_v63 = vmul.f32 %v961_v61, %v7785_v57  ;;  %v1179_v1 = vadd.f32 %v5858_v5, %v1051_v3  ;;  %v967_v26 = vmul.f32 %v6153_v32, %v5855_v4  ;;  %3437 = vmatprep.mubr.bf16.mxu1 %v7790_v62  ;;  %v5281_v61 = vld [vmem:[%s5698_s17 + $0x110] sm:$0xff] }
 0x186   : > { %v1050_v55 = vmul.f32 %v954_v12, %v7787_v13  ;;  %3324 = vmatprep.mubr.bf16.mxu0 %v6592_v10  ;;  %v1056_v27 = vmul.f32 %v960_v60, %v7789_v15  ;;  %v973_v34 = vmul.f32 %v6160_v46, %v5855_v4  ;;  %v838_v36 = vsub.f32 %v5280_v14, %v5947_v2  ;;  %v4942_v12 = vld [vmem:[#allocation8 + $0x42c] ss:$24 sps:$4 sm:$0xff]  }
 0x187   : > { %v6608_v56 = vpack.c.bf16 %v1172_v48, %v1166_v43  ;;  %v1185_v0 = vadd.f32 %v5858_v5, %v1057_v63  ;;  %v7791_v51 = vsub.f32 %v6173_v30, %v5947_v2  ;;  %v844_v7 = vsub.f32 %v5281_v61, %v5974_v9  ;;  %v5283_v9 = vld [vmem:[%s5698_s17 + $0x178] sm:$0xff] }
 0x188   : > { %v1178_v38 = vadd.f32 %v7781_v59, %v1050_v55  ;;  %v1184_v8 = vadd.f32 %v7781_v59, %v1056_v27  ;;  %v966_v40 = vmul.f32 %v6153_v32, %v5861_v6  ;;  %v1069_v48 = vmul.f32 %v973_v34, %v845_v21  ;;  %v4937_v32 = vld [vmem:[#allocation8 + $0x758] ss:$24 sps:$4 sm:$0xff]   ;;  %v4940_v21 = vld [vmem:[#allocation8 + $0x428] ss:$24 sps:$4 sm:$0xff]  }
 0x189   : > { %v1063_v43 = vmul.f32 %v967_v26, %v7791_v51  ;;  %v6630_v3 = vpack.c.bf16 %v1185_v0, %v1179_v1  ;;  %v972_v60 = vmul.f32 %v6160_v46, %v5861_v6  ;;  %v851_v57 = vsub.f32 %v5282_v23, %v6033_v29  ;;  %v7792_v46 = vld [vmem:[#allocation40_spill] sm:$0xff]  ;;  %v5284_v27 = vld [vmem:[%s5698_s17 + $0x140] sm:$0xff] }
 0x18a   : > { %v6636_v63 = vpack.c.bf16 %v1184_v8, %v1178_v38  ;;  %v1062_v30 = vmul.f32 %v966_v40, %v838_v36  ;;  %v857_v41 = vsub.f32 %v5283_v9, %v6056_v17  ;;  %3325 = vmatmul.mubr.bf16.vlgmr.msra.gmra.mxu0 %v6608_v56  ;;  %v1197_v1 = vadd.f32 %v5858_v5, %v1069_v48  ;;  %v4948_v0 = vld [vmem:[#allocation8 + $0x3fc] ss:$24 sps:$4 sm:$0xff]   ;;  %v7794_v40 = vld [vmem:[#allocation36_spill] sm:$0xff]  ;;  %v4946_v23 = vld [vmem:[#allocation8 + $0x3f8] ss:$24 sps:$4 sm:$0xff]  }
 0x18b   : > { %v1191_v2 = vadd.f32 %v5858_v5, %v1063_v43  ;;  %v1068_v13 = vmul.f32 %v972_v60, %v844_v7  ;;  %v979_v55 = vmul.f32 %v7792_v46, %v5855_v4  ;;  %v985_v25 = vmul.f32 %v6260_v24, %v5855_v4  ;;  %3519 = vmatpush1.bf16.msra.mxu0 %v4934_v28  ;;  %v7793_v8 = vld [vmem:[#allocation33_spill] sm:$0xff]  ;;  %v5285_v28 = vld [vmem:[%s5698_s17 + $0x170] sm:$0xff] }
 0x18c   : > { %3334 = vmatprep.mubr.bf16.mxu0 %v6630_v3  ;;  %v1190_v15 = vadd.f32 %v7781_v59, %v1062_v30  ;;  %v850_v26 = vsub.f32 %v5284_v27, %v6033_v29  ;;  %3520 = vmatprep.subr.bf16.mxu0 %v4942_v12  ;;  %v856_v51 = vsub.f32 %v5285_v28, %v6056_v17  ;;  %v5286_v29 = vld [vmem:[%s5698_s17 + $0x1a8] sm:$0xff]  ;;  %v4954_v9 = vld [vmem:[#allocation8 + $0x3cc] ss:$24 sps:$4 sm:$0xff]   ;;  %v4949_v27 = vld [vmem:[#allocation8 + $0x6f8] ss:$24 sps:$4 sm:$0xff]  }
 0x18d   : > { %v6651_v38 = vpack.c.bf16 %v1197_v1, %v1191_v2  ;;  %v1196_v34 = vadd.f32 %v7781_v59, %v1068_v13  ;;  %v1075_v14 = vmul.f32 %v979_v55, %v851_v57  ;;  %v1081_v36 = vmul.f32 %v985_v25, %v857_v41  ;;  %3438 = vmatmul.mubr.bf16.vlgmr.msra.gmra.mxu1 %v7793_v8  ;;  %v4943_v12 = vld [vmem:[#allocation8 + $0x728] ss:$24 sps:$4 sm:$0xff]   ;;  %v4951_v57 = vld [vmem:[#allocation8 + $0x6fc] ss:$24 sps:$4 sm:$0xff]  }
 0x18e   : > { %v978_v43 = vmul.f32 %v7792_v46, %v5861_v6  ;;  %v984_v61 = vmul.f32 %v6260_v24, %v5861_v6  ;;  %v863_v7 = vsub.f32 %v5286_v29, %v6093_v11  ;;  %3632 = vmatpush1.bf16.msra.mxu1 %v4937_v32  ;;  %3447 = vmatprep.mubr.bf16.mxu1 %v7794_v40  ;;  %v5287_v32 = vld [vmem:[%s5698_s17 + $0x1d8] sm:$0xff]  ;;  %v5288_v46 = vld [vmem:[%s5698_s17 + $0x1a0] sm:$0xff]  ;;  %v5290_v29 = vld [vmem:[%s5698_s17 + $0x208] sm:$0xff] }
 0x18f   : > { %v6664_v48 = vpack.c.bf16 %v1196_v34, %v1190_v15  ;;  %v1203_v60 = vadd.f32 %v5858_v5, %v1075_v14  ;;  %v1209_v17 = vadd.f32 %v5858_v5, %v1081_v36  ;;  %3633 = vmatprep.subr.bf16.mxu1 %v4945_v39  ;;  %3521 = vmatpush1.bf16.msra.mxu0 %v4940_v21  ;;  %v4952_v14 = vld [vmem:[#allocation8 + $0x3c8] ss:$24 sps:$4 sm:$0xff]   ;;  %v4957_v36 = vld [vmem:[#allocation8 + $0x6cc] ss:$24 sps:$4 sm:$0xff]  }
 0x190   : > { %v1074_v24 = vmul.f32 %v978_v43, %v850_v26  ;;  %v1080_v2 = vmul.f32 %v984_v61, %v856_v51  ;;  %v991_v30 = vmul.f32 %v6279_v20, %v5855_v4  ;;  %3522 = vmatprep.subr.bf16.mxu0 %v4948_v0  ;;  %v869_v1 = vsub.f32 %v5287_v32, %v6105_v16  ;;  %v5289_v0 = vld [vmem:[%s5698_s17 + $0x1d0] sm:$0xff]  ;;  %v4960_v43 = vld [vmem:[#allocation8 + $0x39c] ss:$24 sps:$4 sm:$0xff]  }
 0x191   : > { %7795 = vst [vmem:[#allocation24_spill] sm:$0xff] %v6664_v48  ;;  %v6670_v41 = vpack.c.bf16 %v1209_v17, %v1203_v60  ;;  %v997_v13 = vmul.f32 %v6293_v33, %v5855_v4  ;;  %v862_v55 = vsub.f32 %v5288_v46, %v6093_v11  ;;  %v990_v15 = vmul.f32 %v6279_v20, %v5861_v6  ;;  %v5291_v17 = vld [vmem:[%s5698_s17 + $0x238] sm:$0xff]  ;;  %v7803_v32 = vld [vmem:[#allocation42_spill] sm:$0xff] }
 0x192   : > { %v1202_v25 = vadd.f32 %v7781_v59, %v1074_v24  ;;  %v1208_v21 = vadd.f32 %v7781_v59, %v1080_v2  ;;  %v1087_v39 = vmul.f32 %v991_v30, %v863_v7  ;;  %3634 = vmatpush1.bf16.msra.mxu1 %v4943_v12  ;;  %3335 = vmatmul.mubr.bf16.gmra.mxu0 %v6636_v63  ;;  %v7799_v12 = vld [vmem:[#allocation39_spill] sm:$0xff]  ;;  %v7801_v24 = vld [vmem:[#allocation46_spill] sm:$0xff] }
 0x193   : > { %7796 = vst [vmem:[#allocation16_spill] sm:$0xff] %v6670_v41  ;;  %v1093_v26 = vmul.f32 %v997_v13, %v869_v1  ;;  %v868_v34 = vsub.f32 %v5289_v0, %v6105_v16  ;;  %v996_v11 = vmul.f32 %v6293_v33, %v5861_v6  ;;  %3635 = vmatprep.subr.bf16.mxu1 %v4951_v57  ;;  %v7798_v33 = vld [vmem:[#allocation35_spill] sm:$0xff] }
 0x194   : > { %3523 = vmatpush1.bf16.msra.mxu0 %v4946_v23  ;;  %v6687_v28 = vpack.c.bf16 %v1208_v21, %v1202_v25  ;;  %v1215_v20 = vadd.f32 %v5858_v5, %v1087_v39  ;;  %v1086_v51 = vmul.f32 %v990_v15, %v862_v55  ;;  %3344 = vmatprep.mubr.bf16.mxu0 %v6651_v38  ;;  %v7800_v23 = vld [vmem:[#allocation37_spill] sm:$0xff]  ;;  %v7802_v30 = vld [vmem:[#allocation47_spill] sm:$0xff] }
 0x195   : > { %3524 = vmatprep.subr.bf16.mxu0 %v4954_v9  ;;  %v1221_v16 = vadd.f32 %v5858_v5, %v1093_v26  ;;  %v1092_v61 = vmul.f32 %v996_v11, %v868_v34  ;;  %v875_v7 = vsub.f32 %v5290_v29, %v7798_v33  ;;  %3448 = vmatmul.mubr.bf16.gmra.mxu1 %v7799_v12  ;;  %v4955_v1 = vld [vmem:[#allocation8 + $0x6c8] ss:$24 sps:$4 sm:$0xff]   ;;  %v5292_v55 = vld [vmem:[%s5698_s17 + $0x200] sm:$0xff]  ;;  %v4966_v0 = vld [vmem:[#allocation8 + $0x36c] ss:$24 sps:$4 sm:$0xff]  }
 0x196   : > { %7797 = vst [vmem:[#allocation30_spill] sm:$0xff] %v6687_v28  ;;  %v1214_v60 = vadd.f32 %v7781_v59, %v1086_v51  ;;  %v881_v57 = vsub.f32 %v5291_v17, %v7800_v23  ;;  %v1003_v2 = vmul.f32 %v7801_v24, %v5855_v4  ;;  %v1009_v9 = vmul.f32 %v7802_v30, %v5855_v4  ;;  %v4958_v21 = vld [vmem:[#allocation8 + $0x398] ss:$24 sps:$4 sm:$0xff]   ;;  %v4963_v39 = vld [vmem:[#allocation8 + $0x69c] ss:$24 sps:$4 sm:$0xff]   ;;  %v5293_v11 = vld [vmem:[%s5698_s17 + $0x230] sm:$0xff] }
 0x197   : > { %3636 = vmatpush1.bf16.msra.mxu1 %v4949_v27  ;;  %3457 = vmatprep.mubr.bf16.mxu1 %v7803_v32  ;;  %v6703_v13 = vpack.c.bf16 %v1221_v16, %v1215_v20  ;;  %v1220_v46 = vadd.f32 %v7781_v59, %v1092_v61  ;;  %v874_v25 = vsub.f32 %v5292_v55, %v7798_v33  ;;  %v4961_v33 = vld [vmem:[#allocation8 + $0x698] ss:$24 sps:$4 sm:$0xff]  }
 0x198   : > { %3637 = vmatprep.subr.bf16.mxu1 %v4957_v36  ;;  %3525 = vmatpush1.bf16.msra.mxu0 %v4952_v14  ;;  %v1099_v15 = vmul.f32 %v1003_v2, %v875_v7  ;;  %v1105_v26 = vmul.f32 %v1009_v9, %v881_v57  ;;  %v1002_v27 = vmul.f32 %v7801_v24, %v5861_v6  ;;  %v5294_v36 = vld [vmem:[%s5698_s17 + $0x268] sm:$0xff]  ;;  %v4969_v24 = vld [vmem:[#allocation8 + $0x66c] ss:$24 sps:$4 sm:$0xff]  }
 0x199   : > { %3526 = vmatprep.subr.bf16.mxu0 %v4960_v43  ;;  %v6710_v34 = vpack.c.bf16 %v1220_v46, %v1214_v60  ;;  %v880_v20 = vsub.f32 %v5293_v11, %v7800_v23  ;;  %v1008_v51 = vmul.f32 %v7802_v30, %v5861_v6  ;;  %v887_v14 = vsub.f32 %v5294_v36, %v6212_v18  ;;  %v5295_v60 = vld [vmem:[%s5698_s17 + $0x298] sm:$0xff]  ;;  %v4964_v57 = vld [vmem:[#allocation8 + $0x368] ss:$24 sps:$4 sm:$0xff]  }
 0x19a   : > { %v1227_v16 = vadd.f32 %v5858_v5, %v1099_v15  ;;  %v1233_v61 = vadd.f32 %v5858_v5, %v1105_v26  ;;  %v1098_v29 = vmul.f32 %v1002_v27, %v874_v25  ;;  %v1015_v43 = vmul.f32 %v6365_v31, %v5855_v4  ;;  %3345 = vmatmul.mubr.bf16.gmra.mxu0 %v6664_v48  ;;  %v5296_v25 = vld [vmem:[%s5698_s17 + $0x260] sm:$0xff]  ;;  %v7804_v15 = vld [vmem:[#allocation44_spill] sm:$0xff] }
 0x19b   : > { %3638 = vmatpush1.bf16.msra.mxu1 %v4955_v1  ;;  %v1104_v7 = vmul.f32 %v1008_v51, %v880_v20  ;;  %v893_v17 = vsub.f32 %v5295_v60, %v6229_v44  ;;  %v1021_v23 = vmul.f32 %v6373_v54, %v5855_v4  ;;  %3354 = vmatprep.mubr.bf16.mxu0 %v6670_v41  ;;  %v4972_v1 = vld [vmem:[#allocation8 + $0x33c] ss:$24 sps:$4 sm:$0xff]   ;;  %v5297_v26 = vld [vmem:[%s5698_s17 + $0x290] sm:$0xff] }
 0x19c   : > { %3639 = vmatprep.subr.bf16.mxu1 %v4963_v39  ;;  %3527 = vmatpush1.bf16.msra.mxu0 %v4958_v21  ;;  %v6727_v2 = vpack.c.bf16 %v1233_v61, %v1227_v16  ;;  %v1226_v30 = vadd.f32 %v7781_v59, %v1098_v29  ;;  %v1111_v9 = vmul.f32 %v1015_v43, %v887_v14  ;;  %v7805_v20 = vld [vmem:[#allocation48_spill] sm:$0xff]  ;;  %v5298_v14 = vld [vmem:[%s5698_s17 + $0x2c8] sm:$0xff] }
 0x19d   : > { %3528 = vmatprep.subr.bf16.mxu0 %v4966_v0  ;;  %v1232_v46 = vadd.f32 %v7781_v59, %v1104_v7  ;;  %v1117_v55 = vmul.f32 %v1021_v23, %v893_v17  ;;  %v886_v39 = vsub.f32 %v5296_v25, %v6212_v18  ;;  %3458 = vmatmul.mubr.bf16.gmra.mxu1 %v7804_v15  ;;  %v4967_v51 = vld [vmem:[#allocation8 + $0x668] ss:$24 sps:$4 sm:$0xff]   ;;  %v4978_v43 = vld [vmem:[#allocation8 + $0x30c] ss:$24 sps:$4 sm:$0xff]   ;;  %v5300_v23 = vld [vmem:[%s5698_s17 + $0x2c0] sm:$0xff] }
 0x19e   : > { %v1239_v21 = vadd.f32 %v5858_v5, %v1111_v9  ;;  %v892_v27 = vsub.f32 %v5297_v26, %v6229_v44  ;;  %v1014_v11 = vmul.f32 %v6365_v31, %v5861_v6  ;;  %v1020_v0 = vmul.f32 %v6373_v54, %v5861_v6  ;;  %3467 = vmatprep.mubr.bf16.mxu1 %v7805_v20  ;;  %v4970_v44 = vld [vmem:[#allocation8 + $0x338] ss:$24 sps:$4 sm:$0xff]   ;;  %v4975_v31 = vld [vmem:[#allocation8 + $0x63c] ss:$24 sps:$4 sm:$0xff]   ;;  %v5301_v25 = vld [vmem:[%s5698_s17 + $0x2f0] sm:$0xff] }
 0x19f   : > { %3640 = vmatpush1.bf16.msra.mxu1 %v4961_v33  ;;  %v6743_v36 = vpack.c.bf16 %v1232_v46, %v1226_v30  ;;  %v1245_v18 = vadd.f32 %v5858_v5, %v1117_v55  ;;  %v899_v16 = vsub.f32 %v5298_v14, %v6275_v58  ;;  %v1027_v54 = vmul.f32 %v6436_v42, %v5855_v4  ;;  %v5299_v7 = vld [vmem:[%s5698_s17 + $0x2f8] sm:$0xff] }
 0x1a0   : > { %3641 = vmatprep.subr.bf16.mxu1 %v4969_v24  ;;  %3529 = vmatpush1.bf16.msra.mxu0 %v4964_v57  ;;  %v1110_v61 = vmul.f32 %v1014_v11, %v886_v39  ;;  %v1116_v29 = vmul.f32 %v1020_v0, %v892_v27  ;;  %v905_v60 = vsub.f32 %v5299_v7, %v6283_v37  ;;  %v4973_v46 = vld [vmem:[#allocation8 + $0x638] ss:$24 sps:$4 sm:$0xff]   ;;  %v4984_v11 = vld [vmem:[#allocation8 + $0x5dc] ss:$24 sps:$4 sm:$0xff]  }
 0x1a1   : > { %3530 = vmatprep.subr.bf16.mxu0 %v4972_v1  ;;  %v6750_v33 = vpack.c.bf16 %v1245_v18, %v1239_v21  ;;  %v1033_v17 = vmul.f32 %v6448_v50, %v5855_v4  ;;  %v898_v57 = vsub.f32 %v5300_v23, %v6275_v58  ;;  %v1123_v9 = vmul.f32 %v1027_v54, %v899_v16  ;;  %v4976_v58 = vld [vmem:[#allocation8 + $0x308] ss:$24 sps:$4 sm:$0xff]   ;;  %v4981_v21 = vld [vmem:[#allocation8 + $0x60c] ss:$24 sps:$4 sm:$0xff]   ;;  %v7811_v7 = vld [vmem:[#allocation54_spill] sm:$0xff] }
 0x1a2   : > { %v1238_v24 = vadd.f32 %v7781_v59, %v1110_v61  ;;  %v1244_v30 = vadd.f32 %v7781_v59, %v1116_v29  ;;  %v1026_v1 = vmul.f32 %v6436_v42, %v5861_v6  ;;  %3355 = vmatmul.mubr.bf16.gmra.mxu0 %v6687_v28  ;;  %v904_v39 = vsub.f32 %v5301_v25, %v6283_v37  ;;  %v7807_v37 = vld [vmem:[#allocation50_spill] sm:$0xff]  ;;  %v4979_v18 = vld [vmem:[#allocation8 + $0x608] ss:$24 sps:$4 sm:$0xff]   ;;  %v4990_v61 = vld [vmem:[#allocation8 + $0x5ac] ss:$24 sps:$4 sm:$0xff]  }
 0x1a3   : > { %3642 = vmatpush1.bf16.msra.mxu1 %v4967_v51  ;;  %v1129_v55 = vmul.f32 %v1033_v17, %v905_v60  ;;  %v1032_v4 = vmul.f32 %v6448_v50, %v5861_v6  ;;  %v1251_v27 = vadd.f32 %v5858_v5, %v1123_v9  ;;  %3364 = vmatprep.mubr.bf16.mxu0 %v6703_v13  ;;  %v7808_v50 = vld [vmem:[#allocation52_spill] sm:$0xff]  ;;  %v4985_v29 = vld [vmem:[#allocation8 + $0x8d8] ss:$24 sps:$4 sm:$0xff]  }
 0x1a4   : > { %3643 = vmatprep.subr.bf16.mxu1 %v4975_v31  ;;  %3531 = vmatpush1.bf16.msra.mxu0 %v4970_v44  ;;  %v6767_v26 = vpack.c.bf16 %v1244_v30, %v1238_v24  ;;  %v1122_v42 = vmul.f32 %v1026_v1, %v898_v57  ;;  %v4982_v44 = vld [vmem:[#allocation8 + $0x5d8] ss:$24 sps:$4 sm:$0xff]   ;;  %v4987_v31 = vld [vmem:[#allocation8 + $0x8dc] ss:$24 sps:$4 sm:$0xff]   ;;  %v4988_v54 = vld [vmem:[#allocation8 + $0x5a8] ss:$24 sps:$4 sm:$0xff]  }
 0x1a5   : > { %3532 = vmatprep.subr.bf16.mxu0 %v4978_v43  ;;  %v1257_v0 = vadd.f32 %v5858_v5, %v1129_v55  ;;  %v1128_v51 = vmul.f32 %v1032_v4, %v904_v39  ;;  %3468 = vmatmul.mubr.bf16.gmra.mxu1 %v7807_v37  ;;  %v4993_v43 = vld [vmem:[#allocation8 + $0x8ac] ss:$24 sps:$4 sm:$0xff]   ;;  %v4991_v17 = vld [vmem:[#allocation8 + $0x8a8] ss:$24 sps:$4 sm:$0xff]   ;;  %v4994_v23 = vld [vmem:[#allocation8 + $0x578] ss:$24 sps:$4 sm:$0xff]  }
 0x1a6   : > { %7806 = vst [vmem:[#allocation25_spill] sm:$0xff] %v6767_v26  ;;  %v1250_v6 = vadd.f32 %v7781_v59, %v1122_v42  ;;  %3477 = vmatprep.mubr.bf16.mxu1 %v7808_v50  ;;  %v7812_v60 = vld [vmem:[#allocation56_spill] sm:$0xff]  ;;  %v4999_v57 = vld [vmem:[#allocation8 + $0x87c] ss:$24 sps:$4 sm:$0xff]   ;;  %v4997_v30 = vld [vmem:[#allocation8 + $0x878] ss:$24 sps:$4 sm:$0xff]  }
 0x1a7   : > { %3644 = vmatpush1.bf16.msra.mxu1 %v4973_v46  ;;  %v6775_v14 = vpack.c.bf16 %v1257_v0, %v1251_v27  ;;  %v1256_v16 = vadd.f32 %v7781_v59, %v1128_v51  ;;  %v4996_v59 = vld [vmem:[#allocation8 + $0x57c] ss:$24 sps:$4 sm:$0xff]   ;;  %v5002_v24 = vld [vmem:[#allocation8 + $0x54c] ss:$24 sps:$4 sm:$0xff]   ;;  %v5000_v9 = vld [vmem:[#allocation8 + $0x548] ss:$24 sps:$4 sm:$0xff]  }
 0x1a8   : > { %3645 = vmatprep.subr.bf16.mxu1 %v4981_v21  ;;  %3533 = vmatpush1.bf16.msra.mxu0 %v4976_v58  ;;  %v5005_v1 = vld [vmem:[#allocation8 + $0x84c] ss:$24 sps:$4 sm:$0xff]   ;;  %v5008_v46 = vld [vmem:[#allocation8 + $0x51c] ss:$24 sps:$4 sm:$0xff]   ;;  %v5003_v55 = vld [vmem:[#allocation8 + $0x848] ss:$24 sps:$4 sm:$0xff]  }
 0x1a9   : > { %7809 = vst [vmem:[#allocation23_spill] sm:$0xff] %v6775_v14  ;;  %3534 = vmatprep.subr.bf16.mxu0 %v4984_v11  ;;  %v6778_v5 = vpack.c.bf16 %v1256_v16, %v1250_v6  ;;  %v5006_v25 = vld [vmem:[#allocation8 + $0x518] ss:$24 sps:$4 sm:$0xff]   ;;  %v5011_v39 = vld [vmem:[#allocation8 + $0x81c] ss:$24 sps:$4 sm:$0xff]  }
 0x1aa   : > { %3365 = vmatmul.mubr.bf16.gmra.mxu0 %v6710_v34  ;;  %v5014_v4 = vld [vmem:[#allocation8 + $0x4ec] ss:$24 sps:$4 sm:$0xff]   ;;  %v5009_v58 = vld [vmem:[#allocation8 + $0x818] ss:$24 sps:$4 sm:$0xff]   ;;  %v5012_v21 = vld [vmem:[#allocation8 + $0x4e8] ss:$24 sps:$4 sm:$0xff]  }
 0x1ab   : > { %7810 = vst [vmem:[#allocation26_spill] sm:$0xff] %v6778_v5  ;;  %3646 = vmatpush1.bf16.msra.mxu1 %v4979_v18  ;;  %3374 = vmatprep.mubr.bf16.mxu0 %v6727_v2  ;;  %v5017_v27 = vld [vmem:[#allocation8 + $0x7ec] ss:$24 sps:$4 sm:$0xff]   ;;  %v5020_v42 = vld [vmem:[#allocation8 + $0x4bc] ss:$24 sps:$4 sm:$0xff]  }
 0x1ac   : > { %3647 = vmatprep.subr.bf16.mxu1 %v4987_v31  ;;  %3535 = vmatpush2.bf16.msra.mxu0 %v4982_v44  ;;  %v5015_v11 = vld [vmem:[#allocation8 + $0x7e8] ss:$24 sps:$4 sm:$0xff]   ;;  %v5018_v0 = vld [vmem:[#allocation8 + $0x4b8] ss:$24 sps:$4 sm:$0xff]   ;;  %v5023_v51 = vld [vmem:[#allocation8 + $0x7bc] ss:$24 sps:$4 sm:$0xff]  }
 0x1ad   : > { %3536 = vmatprep.subr.bf16.mxu0 %v4990_v61  ;;  %3478 = vmatmul.mubr.bf16.gmra.mxu1 %v7811_v7  ;;  %v5026_v6 = vld [vmem:[#allocation8 + $0x48c] ss:$24 sps:$4 sm:$0xff]   ;;  %v5021_v18 = vld [vmem:[#allocation8 + $0x7b8] ss:$24 sps:$4 sm:$0xff]   ;;  %v5024_v16 = vld [vmem:[#allocation8 + $0x488] ss:$24 sps:$4 sm:$0xff]  }
 0x1ae   : > { %3487 = vmatprep.mubr.bf16.mxu1 %v7812_v60  ;;  %v5029_v44 = vld [vmem:[#allocation8 + $0x78c] ss:$24 sps:$4 sm:$0xff]  }
 0x1af   : > { %3648 = vmatpush2.bf16.msra.mxu1 %v4985_v29  ;;  %v7813_v31 = vld [vmem:[#allocation32_spill] sm:$0xff] }
 0x1b0   : > { %3649 = vmatprep.subr.bf16.mxu1 %v4993_v43  ;;  %3537 = vmatpush2.bf16.msra.mxu0 %v4988_v54  ;;  %v5032_v61 = vld [vmem:[#allocation8 + $0x164] ss:$24 sps:$4 sm:$0xff]   ;;  %v5027_v29 = vld [vmem:[#allocation8 + $0x788] ss:$24 sps:$4 sm:$0xff]  }
 0x1b1   : > { %3538 = vmatprep.subr.bf16.mxu0 %v4996_v59  ;;  %v5030_v54 = vld [vmem:[#allocation8 + $0x160] ss:$24 sps:$4 sm:$0xff]   ;;  %v5035_v43 = vld [vmem:[#allocation8 + $0x464] ss:$24 sps:$4 sm:$0xff]   ;;  %v5038_v59 = vld [vmem:[#allocation8 + $0x134] ss:$24 sps:$4 sm:$0xff]  }
 0x1b2   : > { %3375 = vmatmul.mubr.bf16.gmra.mxu0 %v6743_v36 }
 0x1b3   : > { %3650 = vmatpush2.bf16.msra.mxu1 %v4991_v17  ;;  %3384 = vmatprep.mubr.bf16.mxu0 %v6750_v33  ;;  %v5033_v17 = vld [vmem:[#allocation8 + $0x460] ss:$24 sps:$4 sm:$0xff]  }
 0x1b4   : > { %3651 = vmatprep.subr.bf16.mxu1 %v4999_v57  ;;  %3539 = vmatpush2.bf16.msra.mxu0 %v4994_v23  ;;  %v7814_v23 = vld [vmem:[#allocation34_spill] sm:$0xff]  ;;  %v5036_v57 = vld [vmem:[#allocation8 + $0x130] ss:$24 sps:$4 sm:$0xff]  }
 0x1b5   : > { %3540 = vmatprep.subr.bf16.mxu0 %v5002_v24  ;;  %3488 = vmatmul.mubr.bf16.gmra.mxu1 %v6469_v19  ;;  %v5041_v24 = vld [vmem:[#allocation8 + $0x434] ss:$24 sps:$4 sm:$0xff]  }
 0x1b6   : > { %3497 = vmatprep.mubr.bf16.mxu1 %v6491_v45 }
 0x1b7   : > { %3652 = vmatpush2.bf16.msra.mxu1 %v4997_v30  ;;  %v7815_v30 = vld [vmem:[#allocation38_spill] sm:$0xff] }
 0x1b8   : > { %3653 = vmatprep.subr.bf16.mxu1 %v5005_v1  ;;  %3541 = vmatpush2.bf16.msra.mxu0 %v5000_v9  ;;  %v5044_v9 = vld [vmem:[#allocation8 + $0x104] ss:$24 sps:$4 sm:$0xff]   ;;  %v5039_v1 = vld [vmem:[#allocation8 + $0x430] ss:$24 sps:$4 sm:$0xff]  }
 0x1b9   : > { %3542 = vmatprep.subr.bf16.mxu0 %v5008_v46  ;;  %v5042_v46 = vld [vmem:[#allocation8 + $0x100] ss:$24 sps:$4 sm:$0xff]  }
 0x1ba   : > { %3385 = vmatmul.mubr.bf16.gmra.mxu0 %v6767_v26 }
 0x1bb   : > { %3654 = vmatpush2.bf16.msra.mxu1 %v5003_v55  ;;  %3394 = vmatprep.mubr.bf16.mxu0 %v6775_v14  ;;  %v5047_v55 = vld [vmem:[#allocation8 + $0x404] ss:$24 sps:$4 sm:$0xff]  }
 0x1bc   : > { %3655 = vmatprep.subr.bf16.mxu1 %v5011_v39  ;;  %3543 = vmatpush2.bf16.msra.mxu0 %v5006_v25  ;;  %v5050_v25 = vld [vmem:[#allocation8 + $0xd4] ss:$24 sps:$4 sm:$0xff]   ;;  %v5045_v39 = vld [vmem:[#allocation8 + $0x400] ss:$24 sps:$4 sm:$0xff]  }
 0x1bd   : > { %3544 = vmatprep.subr.bf16.mxu0 %v5014_v4  ;;  %3498 = vmatmul.mubr.bf16.gmra.mxu1 %v6517_v47  ;;  %v7816_v4 = vld [vmem:[#allocation41_spill] sm:$0xff] }
 0x1be   : > { %3507 = vmatprep.mubr.bf16.mxu1 %v6545_v53 }
 0x1bf   : > { %3656 = vmatpush2.bf16.msra.mxu1 %v5009_v58  ;;  %v5048_v58 = vld [vmem:[#allocation8 + $0xd0] ss:$24 sps:$4 sm:$0xff]  }
 0x1c0   : > { %3657 = vmatprep.subr.bf16.mxu1 %v5017_v27  ;;  %3545 = vmatpush2.bf16.msra.mxu0 %v5012_v21  ;;  %v5053_v21 = vld [vmem:[#allocation8 + $0x3d4] ss:$24 sps:$4 sm:$0xff]   ;;  %v7817_v27 = vld [vmem:[#allocation43_spill] sm:$0xff] }
 0x1c1   : > { %3546 = vmatprep.subr.bf16.mxu0 %v5020_v42  ;;  %v5056_v42 = vld [vmem:[#allocation8 + $0xa4] ss:$24 sps:$4 sm:$0xff]  }
 0x1c2   : > { %3395 = vmatmul.mubr.bf16.gmra.mxu0 %v6778_v5 }
 0x1c3   : > { %3658 = vmatpush2.bf16.msra.mxu1 %v5015_v11  ;;  %3550 = vmatprep.mubr.bf16.mxu0 %v7813_v31  ;;  %v5051_v11 = vld [vmem:[#allocation8 + $0x3d0] ss:$24 sps:$4 sm:$0xff]  }
 0x1c4   : > { %3659 = vmatprep.subr.bf16.mxu1 %v5023_v51  ;;  %3547 = vmatpush2.bf16.msra.mxu0 %v5018_v0  ;;  %v5054_v0 = vld [vmem:[#allocation8 + $0xa0] ss:$24 sps:$4 sm:$0xff]   ;;  %v5059_v51 = vld [vmem:[#allocation8 + $0x3a4] ss:$24 sps:$4 sm:$0xff]  }
 0x1c5   : > { %3548 = vmatprep.subr.bf16.mxu0 %v5026_v6  ;;  %3508 = vmatmul.mubr.bf16.gmra.mxu1 %v6571_v52  ;;  %v5062_v6 = vld [vmem:[#allocation8 + $0x74] ss:$24 sps:$4 sm:$0xff]  }
 0x1c6   : > { %3663 = vmatprep.mubr.bf16.mxu1 %v6592_v10 }
 0x1c7   : > { %3660 = vmatpush2.bf16.msra.mxu1 %v5021_v18  ;;  %v5057_v18 = vld [vmem:[#allocation8 + $0x3a0] ss:$24 sps:$4 sm:$0xff]  }
 0x1c8   : > { %3661 = vmatprep.subr.bf16.mxu1 %v5029_v44  ;;  %3549 = vmatpush2.bf16.msra.mxu0 %v5024_v16  ;;  %v7818_v16 = vld [vmem:[#allocation45_spill] sm:$0xff] }
 0x1c9   : > { %3744 = vmatprep.subr.bf16.mxu0 %v5032_v61  ;;  %v5060_v44 = vld [vmem:[#allocation8 + $0x70] ss:$24 sps:$4 sm:$0xff]   ;;  %v5065_v61 = vld [vmem:[#allocation8 + $0x374] ss:$24 sps:$4 sm:$0xff]  }
 0x1cb   : > { %3662 = vmatpush2.bf16.msra.mxu1 %v5027_v29  ;;  %3551 = vmatmul.mubr.bf16.vlgmr.msra.gmra.mxu0 %v7814_v23  ;;  %v7819_v29 = vld [vmem:[#allocation49_spill] sm:$0xff] }
 0x1cc   : > { %3857 = vmatprep.subr.bf16.mxu1 %v5035_v43  ;;  %3745 = vmatpush1.bf16.msra.mxu0 %v5030_v54  ;;  %v5068_v54 = vld [vmem:[#allocation8 + $0x44] ss:$24 sps:$4 sm:$0xff]   ;;  %v5063_v43 = vld [vmem:[#allocation8 + $0x370] ss:$24 sps:$4 sm:$0xff]  }
 0x1cd   : > { %3560 = vmatprep.mubr.bf16.mxu0 %v7815_v30  ;;  %3746 = vmatprep.subr.bf16.mxu0 %v5038_v59  ;;  %v5066_v59 = vld [vmem:[#allocation8 + $0x40] ss:$24 sps:$4 sm:$0xff]  }
 0x1ce   : > { %3664 = vmatmul.mubr.bf16.vlgmr.msra.gmra.mxu1 %v6608_v56 }
 0x1cf   : > { %3858 = vmatpush1.bf16.msra.mxu1 %v5033_v17  ;;  %3673 = vmatprep.mubr.bf16.mxu1 %v6630_v3  ;;  %v5071_v17 = vld [vmem:[#allocation8 + $0x344] ss:$24 sps:$4 sm:$0xff]  }
 0x1d0   : > { %3859 = vmatprep.subr.bf16.mxu1 %v5041_v24  ;;  %3747 = vmatpush1.bf16.msra.mxu0 %v5036_v57  ;;  %v5074_v57 = vld [vmem:[#allocation8 + $0x14] ss:$24 sps:$4 sm:$0xff]   ;;  %v5069_v24 = vld [vmem:[#allocation8 + $0x340] ss:$24 sps:$4 sm:$0xff]  }
 0x1d1   : > { %3748 = vmatprep.subr.bf16.mxu0 %v5044_v9  ;;  %v7820_v9 = vld [vmem:[#allocation51_spill] sm:$0xff] }
 0x1d3   : > { %3860 = vmatpush1.bf16.msra.mxu1 %v5039_v1  ;;  %3561 = vmatmul.mubr.bf16.gmra.mxu0 %v7816_v4  ;;  %v5072_v1 = vld [vmem:[#allocation8 + $0x10] ss:$24 sps:$4 sm:$0xff]  }
 0x1d4   : > { %3861 = vmatprep.subr.bf16.mxu1 %v5047_v55  ;;  %3749 = vmatpush1.bf16.msra.mxu0 %v5042_v46  ;;  %v5077_v46 = vld [vmem:[#allocation8 + $0x314] ss:$24 sps:$4 sm:$0xff]  }
 0x1d5   : > { %3570 = vmatprep.mubr.bf16.mxu0 %v7817_v27  ;;  %3750 = vmatprep.subr.bf16.mxu0 %v5050_v25  ;;  %v7821_v55 = vld [vmem:[#allocation53_spill] sm:$0xff]  ;;  %v5080_v25 = vld [vmem:[#allocation8 + $0x2e4] ss:$24 sps:$4 sm:$0xff]  }
 0x1d6   : > { %3674 = vmatmul.mubr.bf16.gmra.mxu1 %v6636_v63 }
 0x1d7   : > { %3862 = vmatpush1.bf16.msra.mxu1 %v5045_v39  ;;  %3683 = vmatprep.mubr.bf16.mxu1 %v6651_v38  ;;  %v5075_v39 = vld [vmem:[#allocation8 + $0x310] ss:$24 sps:$4 sm:$0xff]  }
 0x1d8   : > { %3863 = vmatprep.subr.bf16.mxu1 %v5053_v21  ;;  %3751 = vmatpush1.bf16.msra.mxu0 %v5048_v58  ;;  %v5078_v58 = vld [vmem:[#allocation8 + $0x2e0] ss:$24 sps:$4 sm:$0xff]   ;;  %v5083_v21 = vld [vmem:[#allocation8 + $0x5e4] ss:$24 sps:$4 sm:$0xff]  }
 0x1d9   : > { %3752 = vmatprep.subr.bf16.mxu0 %v5056_v42  ;;  %v5086_v42 = vld [vmem:[#allocation8 + $0x2b4] ss:$24 sps:$4 sm:$0xff]  }
 0x1db   : > { %3864 = vmatpush1.bf16.msra.mxu1 %v5051_v11  ;;  %3571 = vmatmul.mubr.bf16.gmra.mxu0 %v7818_v16  ;;  %v5081_v11 = vld [vmem:[#allocation8 + $0x5e0] ss:$24 sps:$4 sm:$0xff]  }
 0x1dc   : > { %3865 = vmatprep.subr.bf16.mxu1 %v5059_v51  ;;  %3753 = vmatpush1.bf16.msra.mxu0 %v5054_v0  ;;  %v7822_v0 = vld [vmem:[#allocation55_spill] sm:$0xff]  ;;  %v5084_v51 = vld [vmem:[#allocation8 + $0x2b0] ss:$24 sps:$4 sm:$0xff]  }
 0x1dd   : > { %3580 = vmatprep.mubr.bf16.mxu0 %v7819_v29  ;;  %3754 = vmatprep.subr.bf16.mxu0 %v5062_v6  ;;  %v5089_v6 = vld [vmem:[#allocation8 + $0x5b4] ss:$24 sps:$4 sm:$0xff]  }
 0x1de   : > { %3684 = vmatmul.mubr.bf16.gmra.mxu1 %v6664_v48 }
 0x1df   : > { %3866 = vmatpush1.bf16.msra.mxu1 %v5057_v18  ;;  %3693 = vmatprep.mubr.bf16.mxu1 %v6670_v41  ;;  %v7823_v18 = vld [vmem:[#allocation57_spill] sm:$0xff] }
 0x1e0   : > { %3867 = vmatprep.subr.bf16.mxu1 %v5065_v61  ;;  %3755 = vmatpush1.bf16.msra.mxu0 %v5060_v44  ;;  %v5092_v44 = vld [vmem:[#allocation8 + $0x284] ss:$24 sps:$4 sm:$0xff]   ;;  %v5087_v61 = vld [vmem:[#allocation8 + $0x5b0] ss:$24 sps:$4 sm:$0xff]  }
 0x1e1   : > { %3756 = vmatprep.subr.bf16.mxu0 %v5068_v54  ;;  %v5090_v54 = vld [vmem:[#allocation8 + $0x280] ss:$24 sps:$4 sm:$0xff]  }
 0x1e3   : > { %3868 = vmatpush1.bf16.msra.mxu1 %v5063_v43  ;;  %3581 = vmatmul.mubr.bf16.gmra.mxu0 %v7820_v9  ;;  %v5095_v43 = vld [vmem:[#allocation8 + $0x584] ss:$24 sps:$4 sm:$0xff]  }
 0x1e4   : > { %3869 = vmatprep.subr.bf16.mxu1 %v5071_v17  ;;  %3757 = vmatpush1.bf16.msra.mxu0 %v5066_v59  ;;  %v5098_v59 = vld [vmem:[#allocation8 + $0x254] ss:$24 sps:$4 sm:$0xff]   ;;  %v5093_v17 = vld [vmem:[#allocation8 + $0x580] ss:$24 sps:$4 sm:$0xff]  }
 0x1e5   : > { %3590 = vmatprep.mubr.bf16.mxu0 %v7821_v55  ;;  %3758 = vmatprep.subr.bf16.mxu0 %v5074_v57  ;;  %v7824_v57 = vld [vmem:[#allocation58_spill] sm:$0xff] }
 0x1e6   : > { %3694 = vmatmul.mubr.bf16.gmra.mxu1 %v6687_v28  ;;  %v5125_v28 = vld [vmem:[#allocation8 + $0x494] ss:$24 sps:$4 sm:$0xff]  }
 0x1e7   : > { %3870 = vmatpush1.bf16.msra.mxu1 %v5069_v24  ;;  %3703 = vmatprep.mubr.bf16.mxu1 %v6703_v13  ;;  %v5096_v24 = vld [vmem:[#allocation8 + $0x250] ss:$24 sps:$4 sm:$0xff]  }
 0x1e8   : > { %3871 = vmatprep.subr.bf16.mxu1 %v5077_v46  ;;  %3759 = vmatpush1.bf16.msra.mxu0 %v5072_v1  ;;  %v5101_v1 = vld [vmem:[#allocation8 + $0x554] ss:$24 sps:$4 sm:$0xff]   ;;  %v7825_v46 = vld [vmem:[#allocation59_spill] sm:$0xff] }
 0x1e9   : > { %3760 = vmatprep.subr.bf16.mxu0 %v5080_v25  ;;  %v5104_v25 = vld [vmem:[#allocation8 + $0x224] ss:$24 sps:$4 sm:$0xff]  }
 0x1eb   : > { %3872 = vmatpush1.bf16.msra.mxu1 %v5075_v39  ;;  %3591 = vmatmul.mubr.bf16.gmra.mxu0 %v7822_v0  ;;  %v5099_v39 = vld [vmem:[#allocation8 + $0x550] ss:$24 sps:$4 sm:$0xff]  }
 0x1ec   : > { %3873 = vmatprep.subr.bf16.mxu1 %v5083_v21  ;;  %3761 = vmatpush2.bf16.msra.mxu0 %v5078_v58  ;;  %v5102_v58 = vld [vmem:[#allocation8 + $0x220] ss:$24 sps:$4 sm:$0xff]   ;;  %v5107_v21 = vld [vmem:[#allocation8 + $0x524] ss:$24 sps:$4 sm:$0xff]  }
 0x1ed   : > { %3600 = vmatprep.mubr.bf16.mxu0 %v7823_v18  ;;  %3762 = vmatprep.subr.bf16.mxu0 %v5086_v42  ;;  %v5110_v42 = vld [vmem:[#allocation8 + $0x1f4] ss:$24 sps:$4 sm:$0xff]  }
 0x1ee   : > { %3704 = vmatmul.mubr.bf16.gmra.mxu1 %v6710_v34 }
 0x1ef   : > { %3874 = vmatpush2.bf16.msra.mxu1 %v5081_v11  ;;  %3713 = vmatprep.mubr.bf16.mxu1 %v6727_v2 }
 0x1f0   : > { %3875 = vmatprep.subr.bf16.mxu1 %v5089_v6  ;;  %3763 = vmatpush2.bf16.msra.mxu0 %v5084_v51  ;;  %v5105_v6 = vld [vmem:[#allocation8 + $0x520] ss:$24 sps:$4 sm:$0xff]  }
 0x1f1   : > { %3764 = vmatprep.subr.bf16.mxu0 %v5092_v44  ;;  %v6820_v11 = vpop.f32.mrf.mxu0 }
 0x1f2   : > { %v6822_v51 = vpop.f32.mrf.mxu1 }
 0x1f3   : > { %3876 = vmatpush2.bf16.msra.mxu1 %v5087_v61  ;;  %3601 = vmatmul.mubr.bf16.gmra.mxu0 %v7824_v57  ;;  %v6825_v44 = vpop.f32.mrf.mxu0  ;;  %v5108_v61 = vld [vmem:[#allocation8 + $0x1f0] ss:$24 sps:$4 sm:$0xff]  }
 0x1f4   : > { %3877 = vmatprep.subr.bf16.mxu1 %v5095_v43  ;;  %3765 = vmatpush2.bf16.msra.mxu0 %v5090_v54  ;;  %v5113_v54 = vld [vmem:[#allocation8 + $0x4f4] ss:$24 sps:$4 sm:$0xff]   ;;  %v5116_v43 = vld [vmem:[#allocation8 + $0x1c4] ss:$24 sps:$4 sm:$0xff]  }
 0x1f5   : > { %3610 = vmatprep.mubr.bf16.mxu0 %v7825_v46  ;;  %3766 = vmatprep.subr.bf16.mxu0 %v5098_v59  ;;  %v6828_v59 = vpop.f32.mrf.mxu1 }
 0x1f6   : > { %3714 = vmatmul.mubr.bf16.gmra.mxu1 %v6743_v36 }
 0x1f7   : > { %3878 = vmatpush2.bf16.msra.mxu1 %v5093_v17  ;;  %3723 = vmatprep.mubr.bf16.mxu1 %v6750_v33  ;;  %v6830_v17 = vpop.f32.mrf.mxu0 }
 0x1f8   : > { %3879 = vmatprep.subr.bf16.mxu1 %v5101_v1  ;;  %3767 = vmatpush2.bf16.msra.mxu0 %v5096_v24  ;;  %v5111_v24 = vld [vmem:[#allocation8 + $0x4f0] ss:$24 sps:$4 sm:$0xff]   ;;  %v5114_v1 = vld [vmem:[#allocation8 + $0x1c0] ss:$24 sps:$4 sm:$0xff]  }
 0x1f9   : > { %3768 = vmatprep.subr.bf16.mxu0 %v5104_v25  ;;  %v5119_v25 = vld [vmem:[#allocation8 + $0x4c4] ss:$24 sps:$4 sm:$0xff]  }
 0x1fb   : > { %3880 = vmatpush2.bf16.msra.mxu1 %v5099_v39  ;;  %3611 = vmatmul.mubr.bf16.gmra.mxu0 %v6529_v35  ;;  %v6834_v39 = vpop.f32.mrf.mxu0 }
 0x1fc   : > { %3881 = vmatprep.subr.bf16.mxu1 %v5107_v21  ;;  %3769 = vmatpush2.bf16.msra.mxu0 %v5102_v58  ;;  %v5122_v58 = vld [vmem:[#allocation8 + $0x194] ss:$24 sps:$4 sm:$0xff]   ;;  %v6836_v21 = vpop.f32.mrf.mxu1 }
 0x1fd   : > { %3620 = vmatprep.mubr.bf16.mxu0 %v6558_v49  ;;  %3770 = vmatprep.subr.bf16.mxu0 %v5110_v42  ;;  %v5117_v42 = vld [vmem:[#allocation8 + $0x4c0] ss:$24 sps:$4 sm:$0xff]  }
 0x1fe   : > { %3724 = vmatmul.mubr.bf16.gmra.mxu1 %v6767_v26 }
 0x1ff   : > { %3882 = vmatpush2.bf16.msra.mxu1 %v5105_v6  ;;  %3733 = vmatprep.mubr.bf16.mxu1 %v6775_v14  ;;  %v5120_v6 = vld [vmem:[#allocation8 + $0x190] ss:$24 sps:$4 sm:$0xff]   ;;  %v6839_v14 = vpop.f32.mrf.mxu0 }
 0x200   : > { %3883 = vmatprep.subr.bf16.mxu1 %v5113_v54  ;;  %3771 = vmatpush2.bf16.msra.mxu0 %v5108_v61  ;;  %v5128_v61 = vld [vmem:[#allocation8 + $0x764] ss:$24 sps:$4 sm:$0xff]   ;;  %v6842_v54 = vpop.f32.mrf.mxu1 }
 0x201   : > { %3772 = vmatprep.subr.bf16.mxu0 %v5116_v43  ;;  %v6845_v43 = vpop.f32.mrf.mxu0 }
 0x203   : > { %3884 = vmatpush2.bf16.msra.mxu1 %v5111_v24  ;;  %3621 = vmatmul.mubr.bf16.gmra.mxu0 %v6590_v22  ;;  %v5123_v24 = vld [vmem:[#allocation8 + $0x490] ss:$24 sps:$4 sm:$0xff]   ;;  %v6848_v26 = vpop.f32.mrf.mxu1 }
 0x204   : > { %3885 = vmatprep.subr.bf16.mxu1 %v5119_v25  ;;  %3773 = vmatpush2.bf16.msra.mxu0 %v5114_v1  ;;  %v5126_v1 = vld [vmem:[#allocation8 + $0x760] ss:$24 sps:$4 sm:$0xff]   ;;  %v5131_v25 = vld [vmem:[#allocation8 + $0x734] ss:$24 sps:$4 sm:$0xff]  }
 0x205   : > { %3776 = vmatprep.mubr.bf16.mxu0 %v7790_v62  ;;  %3774 = vmatprep.subr.bf16.mxu0 %v5122_v58  ;;  %v6850_v62 = vpop.f32.mrf.mxu0  ;;  %v6853_v58 = vpop.f32.mrf.mxu1 }
 0x206   : > { %3734 = vmatmul.mubr.bf16.gmra.mxu1 %v6778_v5 }
 0x207   : > { %3886 = vmatpush2.bf16.msra.mxu1 %v5117_v42  ;;  %3889 = vmatprep.mubr.bf16.mxu1 %v7813_v31  ;;  %v5129_v42 = vld [vmem:[#allocation8 + $0x730] ss:$24 sps:$4 sm:$0xff]   ;;  %v6856_v31 = vpop.f32.mrf.mxu1 }
 0x208   : > { %3887 = vmatprep.subr.bf16.mxu1 %v5125_v28  ;;  %3775 = vmatpush2.bf16.msra.mxu0 %v5120_v6  ;;  %v5134_v28 = vld [vmem:[#allocation8 + $0x704] ss:$24 sps:$4 sm:$0xff]   ;;  %v6858_v6 = vpop.f32.mrf.mxu0 }
 0x209   : > { %3970 = vmatprep.subr.bf16.mxu0 %v5128_v61 }
 0x20b   : > { %3888 = vmatpush2.bf16.msra.mxu1 %v5123_v24  ;;  %3777 = vmatmul.mubr.bf16.vlgmr.msra.gmra.mxu0 %v7793_v8  ;;  %v6862_v24 = vpop.f32.mrf.mxu1  ;;  %v5132_v8 = vld [vmem:[#allocation8 + $0x700] ss:$24 sps:$4 sm:$0xff]  }
 0x20c   : > { %4613 = vmatprep.subr.bf16.mxu1 %v5128_v61  ;;  %3971 = vmatpush1.bf16.msra.mxu0 %v5126_v1  ;;  %v5137_v61 = vld [vmem:[#allocation8 + $0x6d4] ss:$24 sps:$4 sm:$0xff]  }
 0x20d   : > { %3786 = vmatprep.mubr.bf16.mxu0 %v7794_v40  ;;  %3972 = vmatprep.subr.bf16.mxu0 %v5131_v25  ;;  %v6864_v5 = vpop.f32.mrf.mxu0 }
 0x20e   : > { %3890 = vmatmul.mubr.bf16.vlgmr.msra.gmra.mxu1 %v7814_v23  ;;  %v6866_v40 = vpop.f32.mrf.mxu1  ;;  %v5135_v23 = vld [vmem:[#allocation8 + $0x6d0] ss:$24 sps:$4 sm:$0xff]  }
 0x20f   : > { %4629 = vmatpush1.bf16.msra.mxu1 %v5126_v1  ;;  %3899 = vmatprep.mubr.bf16.mxu1 %v7815_v30  ;;  %v6869_v41 = vpop.f32.mrf.mxu0  ;;  %v5140_v1 = vld [vmem:[#allocation8 + $0x6a4] ss:$24 sps:$4 sm:$0xff]  }
 0x210   : > { %4614 = vmatprep.subr.bf16.mxu1 %v5131_v25  ;;  %3973 = vmatpush1.bf16.msra.mxu0 %v5129_v42  ;;  %v6871_v30 = vpop.f32.mrf.mxu1 }
 0x211   : > { %3974 = vmatprep.subr.bf16.mxu0 %v5134_v28  ;;  %7826 = vst [vmem:[#allocation27_spill] sm:$0xff] %v6871_v30  ;;  %v6874_v25 = vpop.f32.mrf.mxu0 }
 0x212   : > { %v6877_v48 = vpop.f32.mrf.mxu1 }
 0x213   : > { %4630 = vmatpush1.bf16.msra.mxu1 %v5129_v42  ;;  %3787 = vmatmul.mubr.bf16.gmra.mxu0 %v7799_v12  ;;  %v5138_v12 = vld [vmem:[#allocation8 + $0x6a0] ss:$24 sps:$4 sm:$0xff]   ;;  %v6880_v42 = vpop.f32.mrf.mxu0 }
 0x214   : > { %4615 = vmatprep.subr.bf16.mxu1 %v5134_v28  ;;  %3975 = vmatpush1.bf16.msra.mxu0 %v5132_v8  ;;  %v5143_v28 = vld [vmem:[#allocation8 + $0x674] ss:$24 sps:$4 sm:$0xff]   ;;  %v6882_v30 = vpop.f32.mrf.mxu1 }
 0x215   : > { %3796 = vmatprep.mubr.bf16.mxu0 %v7803_v32  ;;  %3976 = vmatprep.subr.bf16.mxu0 %v5137_v61  ;;  %7827 = vst [vmem:[#allocation28_spill] sm:$0xff] %v6882_v30  ;;  %v5141_v32 = vld [vmem:[#allocation8 + $0x670] ss:$24 sps:$4 sm:$0xff]  }
 0x216   : > { %3900 = vmatmul.mubr.bf16.gmra.mxu1 %v7816_v4 }
 0x217   : > { %4631 = vmatpush1.bf16.msra.mxu1 %v5132_v8  ;;  %3909 = vmatprep.mubr.bf16.mxu1 %v7817_v27  ;;  %v5146_v27 = vld [vmem:[#allocation8 + $0x644] ss:$24 sps:$4 sm:$0xff]  }
 0x218   : > { %4616 = vmatprep.subr.bf16.mxu1 %v5137_v61  ;;  %3977 = vmatpush1.bf16.msra.mxu0 %v5135_v23  ;;  %v6885_v4 = vpop.f32.mrf.mxu0 }
 0x219   : > { %3978 = vmatprep.subr.bf16.mxu0 %v5140_v1 }
 0x21a   : > { %v6889_v8 = vpop.f32.mrf.mxu1  ;;  %v6891_v61 = vpop.f32.mrf.mxu0 }
 0x21b   : > { %4632 = vmatpush1.bf16.msra.mxu1 %v5135_v23  ;;  %3797 = vmatmul.mubr.bf16.gmra.mxu0 %v7804_v15  ;;  %v5144_v15 = vld [vmem:[#allocation8 + $0x640] ss:$24 sps:$4 sm:$0xff]  }
 0x21c   : > { %4617 = vmatprep.subr.bf16.mxu1 %v5140_v1  ;;  %3979 = vmatpush1.bf16.msra.mxu0 %v5138_v12  ;;  %v6894_v23 = vpop.f32.mrf.mxu1  ;;  %v6896_v1 = vpop.f32.mrf.mxu0 }
 0x21d   : > { %3806 = vmatprep.mubr.bf16.mxu0 %v7805_v20  ;;  %3980 = vmatprep.subr.bf16.mxu0 %v5143_v28  ;;  %v5149_v20 = vld [vmem:[#allocation8 + $0x614] ss:$24 sps:$4 sm:$0xff]  }
 0x21e   : > { %3910 = vmatmul.mubr.bf16.gmra.mxu1 %v7818_v16  ;;  %v6898_v30 = vpop.f32.mrf.mxu1  ;;  %v5147_v16 = vld [vmem:[#allocation8 + $0x610] ss:$24 sps:$4 sm:$0xff]  }
 0x21f   : > { %4633 = vmatpush1.bf16.msra.mxu1 %v5138_v12  ;;  %3919 = vmatprep.mubr.bf16.mxu1 %v7819_v29  ;;  %7828 = vst [vmem:[#allocation29_spill] sm:$0xff] %v6898_v30  ;;  %v6901_v12 = vpop.f32.mrf.mxu0  ;;  %v5152_v29 = vld [vmem:[#allocation8 + $0x8e4] ss:$24 sps:$4 sm:$0xff]  }
 0x220   : > { %4618 = vmatprep.subr.bf16.mxu1 %v5143_v28  ;;  %3981 = vmatpush1.bf16.msra.mxu0 %v5141_v32  ;;  %7829 = vst [vmem:[#allocation31_spill] sm:$0xff] %v6901_v12  ;;  %v6905_v28 = vpop.f32.mrf.mxu1 }
 0x221   : > { %3982 = vmatprep.subr.bf16.mxu0 %v5146_v27 }
 0x223   : > { %4634 = vmatpush1.bf16.msra.mxu1 %v5141_v32  ;;  %3807 = vmatmul.mubr.bf16.gmra.mxu0 %v7807_v37  ;;  %v5150_v32 = vld [vmem:[#allocation8 + $0x8e0] ss:$24 sps:$4 sm:$0xff]  }
 0x224   : > { %4619 = vmatprep.subr.bf16.mxu1 %v5146_v27  ;;  %3983 = vmatpush1.bf16.msra.mxu0 %v5144_v15  ;;  %v5155_v27 = vld [vmem:[#allocation8 + $0x8b4] ss:$24 sps:$4 sm:$0xff]  }
 0x225   : > { %3816 = vmatprep.mubr.bf16.mxu0 %v7808_v50  ;;  %3984 = vmatprep.subr.bf16.mxu0 %v5149_v20  ;;  %v6908_v37 = vpop.f32.mrf.mxu0 }
 0x226   : > { %3920 = vmatmul.mubr.bf16.gmra.mxu1 %v7820_v9  ;;  %v5153_v9 = vld [vmem:[#allocation8 + $0x8b0] ss:$24 sps:$4 sm:$0xff]  }
 0x227   : > { %4635 = vmatpush1.bf16.msra.mxu1 %v5144_v15  ;;  %3929 = vmatprep.mubr.bf16.mxu1 %v7821_v55  ;;  %v6910_v30 = vpop.f32.mrf.mxu1  ;;  %v6912_v12 = vpop.f32.mrf.mxu0  ;;  %v5158_v15 = vld [vmem:[#allocation8 + $0x884] ss:$24 sps:$4 sm:$0xff]  }
 0x228   : > { %4620 = vmatprep.subr.bf16.mxu1 %v5149_v20  ;;  %3985 = vmatpush1.bf16.msra.mxu0 %v5147_v16  ;;  %7830 = vst [vmem:[#allocation40_spill] sm:$0xff] %v6910_v30 }
 0x229   : > { %3986 = vmatprep.subr.bf16.mxu0 %v5152_v29  ;;  %v6915_v50 = vpop.f32.mrf.mxu1  ;;  %v6917_v55 = vpop.f32.mrf.mxu0 }
 0x22a   : > { %7831 = vst [vmem:[#allocation33_spill] sm:$0xff] %v6915_v50 }
 0x22b   : > { %4636 = vmatpush1.bf16.msra.mxu1 %v5147_v16  ;;  %3817 = vmatmul.mubr.bf16.gmra.mxu0 %v7811_v7  ;;  %v6921_v20 = vpop.f32.mrf.mxu1  ;;  %v6923_v30 = vpop.f32.mrf.mxu0  ;;  %v5156_v16 = vld [vmem:[#allocation8 + $0x880] ss:$24 sps:$4 sm:$0xff]  }
 0x22c   : > { %4621 = vmatprep.subr.bf16.mxu1 %v5152_v29  ;;  %3987 = vmatpush2.bf16.msra.mxu0 %v5150_v32 }
 0x22d   : > { %3826 = vmatprep.mubr.bf16.mxu0 %v7812_v60  ;;  %3988 = vmatprep.subr.bf16.mxu0 %v5155_v27  ;;  %v6926_v7 = vpop.f32.mrf.mxu1  ;;  %v5161_v60 = vld [vmem:[#allocation8 + $0x854] ss:$24 sps:$4 sm:$0xff]  }
 0x22e   : > { %3930 = vmatmul.mubr.bf16.gmra.mxu1 %v7822_v0  ;;  %7832 = vst [vmem:[#allocation36_spill] sm:$0xff] %v6926_v7  ;;  %v5164_v7 = vld [vmem:[#allocation8 + $0x824] ss:$24 sps:$4 sm:$0xff]  }
 0x22f   : > { %4637 = vmatpush2.bf16.msra.mxu1 %v5150_v32  ;;  %3939 = vmatprep.mubr.bf16.mxu1 %v7823_v18  ;;  %v6928_v29 = vpop.f32.mrf.mxu0  ;;  %v5159_v32 = vld [vmem:[#allocation8 + $0x850] ss:$24 sps:$4 sm:$0xff]  }
 0x230   : > { %4622 = vmatprep.subr.bf16.mxu1 %v5155_v27  ;;  %3989 = vmatpush2.bf16.msra.mxu0 %v5153_v9 }
 0x231   : > { %3990 = vmatprep.subr.bf16.mxu0 %v5158_v15  ;;  %v6930_v50 = vpop.f32.mrf.mxu1  ;;  %v6933_v0 = vpop.f32.mrf.mxu0 }
 0x232   : > { %7833 = vst [vmem:[#allocation35_spill] sm:$0xff] %v6930_v50 }
 0x233   : > { %4638 = vmatpush2.bf16.msra.mxu1 %v5153_v9  ;;  %3827 = vmatmul.mubr.bf16.gmra.mxu0 %v6469_v19  ;;  %v6936_v18 = vpop.f32.mrf.mxu1  ;;  %v6938_v27 = vpop.f32.mrf.mxu0 }
 0x234   : > { %4623 = vmatprep.subr.bf16.mxu1 %v5158_v15  ;;  %3991 = vmatpush2.bf16.msra.mxu0 %v5156_v16  ;;  %7834 = vst [vmem:[#allocation39_spill] sm:$0xff] %v6936_v18  ;;  %v5162_v15 = vld [vmem:[#allocation8 + $0x820] ss:$24 sps:$4 sm:$0xff]  }
 0x235   : > { %3836 = vmatprep.mubr.bf16.mxu0 %v6491_v45  ;;  %3992 = vmatprep.subr.bf16.mxu0 %v5161_v60  ;;  %v6942_v9 = vpop.f32.mrf.mxu1  ;;  %v6944_v19 = vpop.f32.mrf.mxu0  ;;  %v5167_v45 = vld [vmem:[#allocation8 + $0x7f4] ss:$24 sps:$4 sm:$0xff]  }
 0x236   : > { %3940 = vmatmul.mubr.bf16.gmra.mxu1 %v7824_v57  ;;  %7835 = vst [vmem:[#allocation37_spill] sm:$0xff] %v6942_v9 }
 0x237   : > { %4639 = vmatpush2.bf16.msra.mxu1 %v5156_v16  ;;  %3949 = vmatprep.mubr.bf16.mxu1 %v7825_v46  ;;  %v6946_v50 = vpop.f32.mrf.mxu1  ;;  %v5165_v16 = vld [vmem:[#allocation8 + $0x7f0] ss:$24 sps:$4 sm:$0xff]  }
 0x238   : > { %4624 = vmatprep.subr.bf16.mxu1 %v5161_v60  ;;  %3993 = vmatpush2.bf16.msra.mxu0 %v5159_v32  ;;  %7836 = vst [vmem:[#allocation46_spill] sm:$0xff] %v6946_v50  ;;  %v6948_v18 = vpop.f32.mrf.mxu0  ;;  %v5170_v60 = vld [vmem:[#allocation8 + $0x7c4] ss:$24 sps:$4 sm:$0xff]  }
 0x239   : > { %3994 = vmatprep.subr.bf16.mxu0 %v5164_v7 }
 0x23a   : > { %v6951_v57 = vpop.f32.mrf.mxu1  ;;  %v6953_v46 = vpop.f32.mrf.mxu0 }
 0x23b   : > { %4640 = vmatpush2.bf16.msra.mxu1 %v5159_v32  ;;  %3837 = vmatmul.mubr.bf16.gmra.mxu0 %v6517_v47  ;;  %7837 = vst [vmem:[#allocation47_spill] sm:$0xff] %v6951_v57  ;;  %7838 = vst [vmem:[#allocation42_spill] sm:$0xff] %v6953_v46  ;;  %v6961_v32 = vld [vmem:[#allocation10] sm:$0x3f]  ;;  %v5173_v57 = vld [vmem:[#allocation8 + $0x794] ss:$24 sps:$4 sm:$0xff]  }
 0x23c   : > { %4625 = vmatprep.subr.bf16.mxu1 %v5164_v7  ;;  %3995 = vmatpush2.bf16.msra.mxu0 %v5162_v15  ;;  %v6957_v50 = vpop.f32.mrf.mxu1  ;;  %v6959_v9 = vpop.f32.mrf.mxu0  ;;  %7841 = vst [vmem:[#allocation50_spill] sm:$0xff] %v6961_v32  ;;  %v7843_v46 = vld [vmem:[#allocation19_spill] sm:$0xff] }
 0x23d   : > { %3846 = vmatprep.mubr.bf16.mxu0 %v6545_v53  ;;  %3996 = vmatprep.subr.bf16.mxu0 %v5167_v45  ;;  %7839 = vst [vmem:[#allocation44_spill] sm:$0xff] %v6957_v50  ;;  %7840 = vst [vmem:[#allocation48_spill] sm:$0xff] %v6959_v9  ;;  %v5168_v53 = vld [vmem:[#allocation8 + $0x7c0] ss:$24 sps:$4 sm:$0xff]  }
 0x23e   : > { %3950 = vmatmul.mubr.bf16.gmra.mxu1 %v6529_v35  ;;  %v6964_v47 = vpop.f32.mrf.mxu1  ;;  %v6966_v7 = vpop.f32.mrf.mxu0  ;;  %v6970_v35 = vrot.slane %v6961_v32, %v7843_v46 }
 0x23f   : > { %4641 = vmatpush2.bf16.msra.mxu1 %v5162_v15  ;;  %3959 = vmatprep.mubr.bf16.mxu1 %v6558_v49  ;;  %7842 = vst [vmem:[#allocation52_spill] sm:$0xff] %v6964_v47  ;;  %v7844_v49 = vld [vmem:[#allocation17_spill] sm:$0xff] }
 0x240   : > { %4626 = vmatprep.subr.bf16.mxu1 %v5167_v45  ;;  %3997 = vmatpush2.bf16.msra.mxu0 %v5165_v16  ;;  %v6972_v50 = vpop.f32.mrf.mxu1  ;;  %v6979_v15 = vrot.slane %v6961_v32, %v7844_v49  ;;  %v5171_v45 = vld [vmem:[#allocation8 + $0x790] ss:$24 sps:$4 sm:$0xff]   ;;  %v3101_v46 = vadd.f32 %v6820_v11, %v6970_v35 }
 0x241   : > { %3998 = vmatprep.subr.bf16.mxu0 %v5170_v60 }
 0x242   : > { %v6974_v9 = vpop.f32.mrf.mxu0  ;;  %v3214_v11 = vadd.f32 %v6822_v51, %v3101_v46 }
 0x243   : > { %4642 = vmatpush2.bf16.msra.mxu1 %v5165_v16  ;;  %3847 = vmatmul.mubr.bf16.gmra.mxu0 %v6571_v52 }
 0x244   : > { %4627 = vmatprep.subr.bf16.mxu1 %v5170_v60  ;;  %3999 = vmatpush2.bf16.msra.mxu0 %v5168_v53  ;;  %v6982_v47 = vpop.f32.mrf.mxu0  ;;  %v6986_v16 = vpop.f32.mrf.mxu1  ;;  %v3103_v60 = vadd.f32 %v6825_v44, %v6979_v15 }
 0x245   : > { %4002 = vmatprep.mubr.bf16.mxu0 %v6592_v10  ;;  %4000 = vmatprep.subr.bf16.mxu0 %v5173_v57 }
 0x246   : > { %3960 = vmatmul.mubr.bf16.gmra.mxu1 %v6590_v22  ;;  %v6990_v52 = vpop.f32.mrf.mxu0  ;;  %v6994_v49 = vpop.f32.mrf.mxu1  ;;  %v3105_v22 = vadd.f32 %v6830_v17, %v6970_v35  ;;  %v3216_v44 = vadd.f32 %v6828_v59, %v3103_v60  ;;  %v3111_v17 = vadd.f32 %v6839_v14, %v6970_v35  ;;  %v3113_v14 = vadd.f32 %v6845_v43, %v6979_v15 }
 0x247   : > { %4643 = vmatpush2.bf16.msra.mxu1 %v5168_v53  ;;  %4042 = vmatprep.mubr.bf16.mxu1 %v6703_v13  ;;  %7845 = vst [vmem:[#allocation54_spill] sm:$0xff] %v6994_v49  ;;  %v3117_v43 = vadd.f32 %v6858_v6, %v6979_v15 }
 0x248   : > { %4628 = vmatprep.subr.bf16.mxu1 %v5173_v57  ;;  %4001 = vmatpush2.bf16.msra.mxu0 %v5171_v45  ;;  %v6996_v10 = vpop.f32.mrf.mxu0  ;;  %v7001_v53 = vpop.f32.mrf.mxu1  ;;  %v3107_v57 = vadd.f32 %v6834_v39, %v6979_v15  ;;  %v3218_v46 = vadd.f32 %v6836_v21, %v3105_v22 }
 0x24a   : > { %v3326_v13 = vpop.f32.mrf.mxu0  ;;  %v7007_v32 = vpop.f32.mrf.mxu1  ;;  %v3220_v39 = vadd.f32 %v6842_v54, %v3107_v57  ;;  %v3226_v54 = vadd.f32 %v6853_v58, %v3113_v14  ;;  %v3121_v57 = vadd.f32 %v6864_v5, %v6970_v35  ;;  %v3127_v14 = vadd.f32 %v6880_v42, %v6979_v15 }
 0x24b   : > { %4644 = vmatpush2.bf16.msra.mxu1 %v5171_v45  ;;  %4003 = vmatmul.mubr.bf16.vlgmr.msra.gmra.mxu0 %v6608_v56  ;;  %v3327_v49 = vadd.f32 %v3326_v13, %v3214_v11 }
 0x24c   : > { %4012 = vmatprep.mubr.bf16.mxu0 %v6630_v3  ;;  %v3328_v51 = vpop.f32.mrf.mxu0 }
 0x24d   : > { %4083 = vst [vmem:[%s7015_s24] sm:$0xff] %v3327_v49  ;;  %v7018_v56 = vpop.f32.mrf.mxu1  ;;  %v3329_v59 = vadd.f32 %v3328_v51, %v3216_v44  ;;  %v3224_v49 = vadd.f32 %v6848_v26, %v3111_v17  ;;  %v3230_v51 = vadd.f32 %v6862_v24, %v3117_v43  ;;  %v3234_v17 = vadd.f32 %v6866_v40, %v3121_v57  ;;  %v7846_v24 = vld [vmem:[#allocation24_spill] sm:$0xff] }
 0x24e   : > { %4043 = vmatmul.mubr.bf16.vlgmr.msra.gmra.mxu1 %v6710_v34  ;;  %v3330_v3 = vpop.f32.mrf.mxu0  ;;  %v3115_v34 = vadd.f32 %v6850_v62, %v6970_v35 }
 0x24f   : > { %4052 = vmatprep.mubr.bf16.mxu1 %v6727_v2  ;;  %4084 = vst [vmem:[%s7015_s24 + $0x8] sm:$0xff] %v3329_v59  ;;  %v7026_v21 = vpop.f32.mrf.mxu1  ;;  %v3331_v45 = vadd.f32 %v3330_v3, %v3218_v46 }
 0x250   : > { %v3332_v60 = vpop.f32.mrf.mxu0  ;;  %v3228_v44 = vadd.f32 %v6856_v31, %v3115_v34  ;;  %v3131_v34 = vadd.f32 %v6885_v4, %v6970_v35 }
 0x251   : > { %4089 = vst [vmem:[%s7015_s24 + $0x30] sm:$0xff] %v3331_v45  ;;  %v7032_v2 = vpop.f32.mrf.mxu1  ;;  %v3333_v11 = vadd.f32 %v3332_v60, %v3220_v39  ;;  %v7847_v39 = vld [vmem:[#allocation27_spill] sm:$0xff]  ;;  %v7848_v60 = vld [vmem:[#allocation16_spill] sm:$0xff] }
 0x252   : > { %v3336_v22 = vpop.f32.mrf.mxu0 }
 0x253   : > { %4013 = vmatmul.mubr.bf16.gmra.mxu0 %v6636_v63  ;;  %4090 = vst [vmem:[%s7015_s24 + $0x38] sm:$0xff] %v3333_v11  ;;  %v7039_v13 = vpop.f32.mrf.mxu1  ;;  %v3337_v26 = vadd.f32 %v3336_v22, %v3224_v49  ;;  %v7849_v22 = vld [vmem:[#allocation25_spill] sm:$0xff] }
 0x254   : > { %4022 = vmatprep.mubr.bf16.mxu0 %v6651_v38  ;;  %v3338_v62 = vpop.f32.mrf.mxu0  ;;  %v3123_v38 = vadd.f32 %v6869_v41, %v6979_v15 }
 0x255   : > { %4095 = vst [vmem:[%s7015_s24 + $0x60] sm:$0xff] %v3337_v26  ;;  %v7046_v63 = vpop.f32.mrf.mxu1  ;;  %v3339_v58 = vadd.f32 %v3338_v62, %v3226_v54  ;;  %v7850_v54 = vld [vmem:[#allocation23_spill] sm:$0xff]  ;;  %v7851_v26 = vld [vmem:[#allocation28_spill] sm:$0xff] }
 0x256   : > { %4053 = vmatmul.mubr.bf16.gmra.mxu1 %v6743_v36  ;;  %v3340_v6 = vpop.f32.mrf.mxu0  ;;  %v3125_v36 = vadd.f32 %v6874_v25, %v6970_v35  ;;  %v3236_v41 = vadd.f32 %v7847_v39, %v3123_v38  ;;  %v3240_v62 = vadd.f32 %v7851_v26, %v3127_v14  ;;  %v3141_v39 = vadd.f32 %v6908_v37, %v6970_v35  ;;  %v7855_v14 = vld [vmem:[#allocation26_spill] sm:$0xff]  ;;  %v7856_v37 = vld [vmem:[#allocation40_spill] sm:$0xff] }
 0x257   : > { %4062 = vmatprep.mubr.bf16.mxu1 %v6750_v33  ;;  %4096 = vst [vmem:[%s7015_s24 + $0x68] sm:$0xff] %v3339_v58  ;;  %v7054_v31 = vpop.f32.mrf.mxu1  ;;  %v3341_v46 = vadd.f32 %v3340_v6, %v3228_v44  ;;  %v3133_v44 = vadd.f32 %v6891_v61, %v6979_v15  ;;  %v3244_v58 = vadd.f32 %v6889_v8, %v3131_v34 }
 0x258   : > { %v3342_v5 = vpop.f32.mrf.mxu0  ;;  %v3238_v49 = vadd.f32 %v6877_v48, %v3125_v36  ;;  %v3135_v6 = vadd.f32 %v6896_v1, %v6970_v35 }
 0x259   : > { %4101 = vst [vmem:[%s7015_s24 + $0x90] sm:$0xff] %v3341_v46  ;;  %v7060_v33 = vpop.f32.mrf.mxu1  ;;  %v3343_v59 = vadd.f32 %v3342_v5, %v3230_v51  ;;  %v7852_v5 = vld [vmem:[#allocation30_spill] sm:$0xff]  ;;  %v3246_v61 = vadd.f32 %v6894_v23, %v3133_v44 }
 0x25a   : > { %v3346_v3 = vpop.f32.mrf.mxu0 }
 0x25b   : > { %4023 = vmatmul.mubr.bf16.gmra.mxu0 %v7846_v24  ;;  %4102 = vst [vmem:[%s7015_s24 + $0x98] sm:$0xff] %v3343_v59  ;;  %v7067_v45 = vpop.f32.mrf.mxu1  ;;  %v3347_v40 = vadd.f32 %v3346_v3, %v3234_v17  ;;  %v7853_v17 = vld [vmem:[#allocation31_spill] sm:$0xff]  ;;  %v7854_v24 = vld [vmem:[#allocation29_spill] sm:$0xff] }
 0x25c   : > { %4032 = vmatprep.mubr.bf16.mxu0 %v7848_v60  ;;  %v3348_v25 = vpop.f32.mrf.mxu0  ;;  %v3137_v36 = vadd.f32 %v7853_v17, %v6979_v15  ;;  %v3248_v1 = vadd.f32 %v7854_v24, %v3135_v6 }
 0x25d   : > { %4107 = vst [vmem:[%s7015_s24 + $0xc0] sm:$0xff] %v3347_v40  ;;  %v7074_v11 = vpop.f32.mrf.mxu1  ;;  %v3349_v42 = vadd.f32 %v3348_v25, %v3236_v41  ;;  %v3143_v25 = vadd.f32 %v6912_v12, %v6979_v15  ;;  %v3147_v12 = vadd.f32 %v6923_v30, %v6979_v15  ;;  %v3153_v30 = vadd.f32 %v6933_v0, %v6979_v15 }
 0x25e   : > { %4063 = vmatmul.mubr.bf16.gmra.mxu1 %v7849_v22  ;;  %v3350_v43 = vpop.f32.mrf.mxu0  ;;  %v3250_v60 = vadd.f32 %v6905_v28, %v3137_v36  ;;  %v3157_v0 = vadd.f32 %v6944_v19, %v6979_v15  ;;  %v7863_v19 = vld [vmem:[#allocation42_spill] sm:$0xff] }
 0x25f   : > { %4072 = vmatprep.mubr.bf16.mxu1 %v7850_v54  ;;  %4108 = vst [vmem:[%s7015_s24 + $0xc8] sm:$0xff] %v3349_v42  ;;  %v7082_v48 = vpop.f32.mrf.mxu1  ;;  %v3351_v57 = vadd.f32 %v3350_v43, %v3238_v49  ;;  %v3254_v42 = vadd.f32 %v7856_v37, %v3141_v39  ;;  %v3145_v54 = vadd.f32 %v6917_v55, %v6970_v35 }
 0x260   : > { %v3352_v4 = vpop.f32.mrf.mxu0  ;;  %v3151_v55 = vadd.f32 %v6928_v29, %v6970_v35  ;;  %v3155_v29 = vadd.f32 %v6938_v27, %v6970_v35  ;;  %v3161_v27 = vadd.f32 %v6948_v18, %v6970_v35  ;;  %v7865_v18 = vld [vmem:[#allocation48_spill] sm:$0xff] }
 0x261   : > { %4113 = vst [vmem:[%s7015_s24 + $0xf0] sm:$0xff] %v3351_v57  ;;  %v7088_v51 = vpop.f32.mrf.mxu1  ;;  %v3353_v38 = vadd.f32 %v3352_v4, %v3240_v62  ;;  %v7857_v62 = vld [vmem:[#allocation33_spill] sm:$0xff]  ;;  %v3258_v6 = vadd.f32 %v6921_v20, %v3145_v54 }
 0x262   : > { %v3356_v46 = vpop.f32.mrf.mxu0  ;;  %v3256_v44 = vadd.f32 %v7857_v62, %v3143_v25 }
 0x263   : > { %4033 = vmatmul.mubr.bf16.gmra.mxu0 %v7852_v5  ;;  %4114 = vst [vmem:[%s7015_s24 + $0xf8] sm:$0xff] %v3353_v38  ;;  %v7095_v59 = vpop.f32.mrf.mxu1  ;;  %v3357_v8 = vadd.f32 %v3356_v46, %v3244_v58 }
 0x264   : > { %v3358_v3 = vpop.f32.mrf.mxu0 }
 0x265   : > { %4119 = vst [vmem:[%s7015_s24 + $0x120] sm:$0xff] %v3357_v8  ;;  %v7101_v41 = vpop.f32.mrf.mxu1  ;;  %v3359_v23 = vadd.f32 %v3358_v3, %v3246_v61  ;;  %v7858_v61 = vld [vmem:[#allocation36_spill] sm:$0xff]  ;;  %v7859_v3 = vld [vmem:[#allocation35_spill] sm:$0xff] }
 0x266   : > { %4073 = vmatmul.mubr.bf16.gmra.mxu1 %v7855_v14  ;;  %v3360_v40 = vpop.f32.mrf.mxu0  ;;  %v3260_v17 = vadd.f32 %v7858_v61, %v3147_v12  ;;  %v3264_v24 = vadd.f32 %v7859_v3, %v3151_v55 }
 0x267   : > { %4120 = vst [vmem:[%s7015_s24 + $0x128] sm:$0xff] %v3359_v23  ;;  %v7108_v49 = vpop.f32.mrf.mxu1  ;;  %v3361_v34 = vadd.f32 %v3360_v40, %v3248_v1  ;;  %v7860_v23 = vld [vmem:[#allocation39_spill] sm:$0xff] }
 0x268   : > { %v3362_v22 = vpop.f32.mrf.mxu0  ;;  %v3266_v40 = vadd.f32 %v7860_v23, %v3153_v30  ;;  %v7866_v30 = vld [vmem:[#allocation44_spill] sm:$0xff]  ;;  %v3171_v23 = vadd.f32 %v6974_v9, %v6970_v35  ;;  %v3175_v9 = vadd.f32 %v6990_v52, %v6970_v35  ;;  %v7870_v52 = vld [vmem:[#allocation50_spill] sm:$0xff] }
 0x269   : > { %4125 = vst [vmem:[%s7015_s24 + $0x150] sm:$0xff] %v3361_v34  ;;  %v7114_v43 = vpop.f32.mrf.mxu1  ;;  %v3363_v26 = vadd.f32 %v3362_v22, %v3250_v60  ;;  %v7861_v22 = vld [vmem:[#allocation37_spill] sm:$0xff] }
 0x26a   : > { %v3366_v28 = vpop.f32.mrf.mxu0  ;;  %v3268_v37 = vadd.f32 %v7861_v22, %v3155_v29 }
 0x26b   : > { %4126 = vst [vmem:[%s7015_s24 + $0x158] sm:$0xff] %v3363_v26  ;;  %v7120_v57 = vpop.f32.mrf.mxu1  ;;  %v3367_v4 = vadd.f32 %v3366_v28, %v3254_v42  ;;  %v7862_v28 = vld [vmem:[#allocation46_spill] sm:$0xff] }
 0x26c   : > { %v3368_v58 = vpop.f32.mrf.mxu0  ;;  %v3270_v62 = vadd.f32 %v7862_v28, %v3157_v0 }
 0x26d   : > { %4131 = vst [vmem:[%s7015_s24 + $0x180] sm:$0xff] %v3367_v4  ;;  %v7126_v38 = vpop.f32.mrf.mxu1  ;;  %v3369_v46 = vadd.f32 %v3368_v58, %v3256_v44  ;;  %v3163_v44 = vadd.f32 %v7863_v19, %v6979_v15 }
 0x26e   : > { %v3370_v5 = vpop.f32.mrf.mxu0 }
 0x26f   : > { %4132 = vst [vmem:[%s7015_s24 + $0x188] sm:$0xff] %v3369_v46  ;;  %v7132_v36 = vpop.f32.mrf.mxu1  ;;  %v3371_v8 = vadd.f32 %v3370_v5, %v3258_v6  ;;  %v7864_v6 = vld [vmem:[#allocation47_spill] sm:$0xff]  ;;  %v3165_v46 = vadd.f32 %v7865_v18, %v6970_v35  ;;  %v7869_v35 = vld [vmem:[#allocation20_spill] sm:$0xff] }
 0x270   : > { %v3372_v20 = vpop.f32.mrf.mxu0  ;;  %v3274_v55 = vadd.f32 %v7864_v6, %v3161_v27  ;;  %v7197_v6 = vrot.slane %v7870_v52, %v7869_v35 }
 0x271   : > { %4137 = vst [vmem:[%s7015_s24 + $0x1b0] sm:$0xff] %v3371_v8  ;;  %v7138_v1 = vpop.f32.mrf.mxu1  ;;  %v3373_v39 = vadd.f32 %v3372_v20, %v3260_v17  ;;  %v3276_v8 = vadd.f32 %v7866_v30, %v3163_v44  ;;  %v3167_v20 = vadd.f32 %v6966_v7, %v6979_v15  ;;  %v3173_v7 = vadd.f32 %v6982_v47, %v6979_v15 }
 0x272   : > { %v3376_v14 = vpop.f32.mrf.mxu0  ;;  %v3177_v47 = vadd.f32 %v6996_v10, %v6979_v15  ;;  %v7871_v10 = vld [vmem:[#allocation18_spill] sm:$0xff]  ;;  %v3454_v35 = vadd.f32 %v7060_v33, %v7197_v6 }
 0x273   : > { %4138 = vst [vmem:[%s7015_s24 + $0x1b8] sm:$0xff] %v3373_v39  ;;  %v7144_v60 = vpop.f32.mrf.mxu1  ;;  %v3377_v25 = vadd.f32 %v3376_v14, %v3264_v24  ;;  %v7867_v39 = vld [vmem:[#allocation52_spill] sm:$0xff] }
 0x274   : > { %v3378_v34 = vpop.f32.mrf.mxu0  ;;  %v3278_v14 = vadd.f32 %v7867_v39, %v3165_v46  ;;  %v3290_v15 = vadd.f32 %v7007_v32, %v3177_v47 }
 0x275   : > { %4143 = vst [vmem:[%s7015_s24 + $0x1e0] sm:$0xff] %v3377_v25  ;;  %v7150_v42 = vpop.f32.mrf.mxu1  ;;  %v3379_v54 = vadd.f32 %v3378_v34, %v3266_v40  ;;  %v3280_v34 = vadd.f32 %v6972_v50, %v3167_v20 }
 0x276   : > { %v3380_v26 = vpop.f32.mrf.mxu0 }
 0x277   : > { %4144 = vst [vmem:[%s7015_s24 + $0x1e8] sm:$0xff] %v3379_v54  ;;  %v7156_v12 = vpop.f32.mrf.mxu1  ;;  %v3381_v4 = vadd.f32 %v3380_v26, %v3268_v37  ;;  %v3284_v54 = vadd.f32 %v6986_v16, %v3171_v23 }
 0x278   : > { %v3382_v58 = vpop.f32.mrf.mxu0 }
 0x279   : > { %4149 = vst [vmem:[%s7015_s24 + $0x210] sm:$0xff] %v3381_v4  ;;  %v7162_v5 = vpop.f32.mrf.mxu1  ;;  %v3383_v61 = vadd.f32 %v3382_v58, %v3270_v62  ;;  %v7868_v62 = vld [vmem:[#allocation54_spill] sm:$0xff]  ;;  %v3288_v58 = vadd.f32 %v7001_v53, %v3175_v9 }
 0x27a   : > { %v3386_v17 = vpop.f32.mrf.mxu0  ;;  %v3286_v19 = vadd.f32 %v7868_v62, %v3173_v7 }
 0x27b   : > { %4150 = vst [vmem:[%s7015_s24 + $0x218] sm:$0xff] %v3383_v61  ;;  %v7168_v3 = vpop.f32.mrf.mxu1  ;;  %v3387_v24 = vadd.f32 %v3386_v17, %v3274_v55  ;;  %v7205_v61 = vrot.slane %v7870_v52, %v7871_v10 }
 0x27c   : > { %v3388_v29 = vpop.f32.mrf.mxu0 }
 0x27d   : > { %4155 = vst [vmem:[%s7015_s24 + $0x240] sm:$0xff] %v3387_v24  ;;  %v7174_v40 = vpop.f32.mrf.mxu1  ;;  %v3389_v0 = vadd.f32 %v3388_v29, %v3276_v8  ;;  %v3440_v8 = vadd.f32 %v7018_v56, %v7197_v6  ;;  %v3442_v32 = vadd.f32 %v7026_v21, %v7205_v61  ;;  %v3452_v47 = vadd.f32 %v7054_v31, %v7205_v61 }
 0x27e   : > { %v3390_v25 = vpop.f32.mrf.mxu0  ;;  %v3456_v10 = vadd.f32 %v7067_v45, %v7205_v61 }
 0x27f   : > { %4156 = vst [vmem:[%s7015_s24 + $0x248] sm:$0xff] %v3389_v0  ;;  %v7180_v22 = vpop.f32.mrf.mxu1  ;;  %v3391_v37 = vadd.f32 %v3390_v25, %v3278_v14  ;;  %v3444_v0 = vadd.f32 %v7032_v2, %v7197_v6 }
 0x280   : > { %v3392_v27 = vpop.f32.mrf.mxu0 }
 0x281   : > { %4161 = vst [vmem:[%s7015_s24 + $0x270] sm:$0xff] %v3391_v37  ;;  %v7186_v26 = vpop.f32.mrf.mxu1  ;;  %v3393_v28 = vadd.f32 %v3392_v27, %v3280_v34  ;;  %v3446_v37 = vadd.f32 %v7039_v13, %v7205_v61 }
 0x282   : > { %v3396_v50 = vpop.f32.mrf.mxu0 }
 0x283   : > { %4162 = vst [vmem:[%s7015_s24 + $0x278] sm:$0xff] %v3393_v28  ;;  %v7192_v44 = vpop.f32.mrf.mxu1  ;;  %v3397_v4 = vadd.f32 %v3396_v50, %v3284_v54  ;;  %v3450_v28 = vadd.f32 %v7046_v63, %v7197_v6 }
 0x284   : > { %v3398_v16 = vpop.f32.mrf.mxu0 }
 0x285   : > { %4167 = vst [vmem:[%s7015_s24 + $0x2a0] sm:$0xff] %v3397_v4  ;;  %v7200_v55 = vpop.f32.mrf.mxu1  ;;  %v3399_v18 = vadd.f32 %v3398_v16, %v3286_v19 }
 0x286   : > { %v3400_v46 = vpop.f32.mrf.mxu0 }
 0x287   : > { %4168 = vst [vmem:[%s7015_s24 + $0x2a8] sm:$0xff] %v3399_v18  ;;  %v7208_v17 = vpop.f32.mrf.mxu1  ;;  %v3401_v53 = vadd.f32 %v3400_v46, %v3288_v58 }
 0x288   : > { %v3402_v30 = vpop.f32.mrf.mxu0 }
 0x289   : > { %4173 = vst [vmem:[%s7015_s24 + $0x2d0] sm:$0xff] %v3401_v53  ;;  %v7213_v20 = vpop.f32.mrf.mxu1  ;;  %v3403_v24 = vadd.f32 %v3402_v30, %v3290_v15 }
 0x28b   : > { %v3552_v29 = vpop.f32.mrf.mxu0  ;;  %4174 = vst [vmem:[%s7015_s24 + $0x2d8] sm:$0xff] %v3403_v24  ;;  %v7218_v39 = vpop.f32.mrf.mxu1  ;;  %v3460_v24 = vadd.f32 %v7074_v11, %v7197_v6 }
 0x28c   : > { %v3553_v14 = vadd.f32 %v3552_v29, %v3440_v8 }
 0x28d   : > { %v3554_v23 = vpop.f32.mrf.mxu0 }
 0x28e   : > { %v3665_v25 = vpop.f32.mrf.mxu1  ;;  %v3555_v56 = vadd.f32 %v3554_v23, %v3442_v32  ;;  %v3462_v23 = vadd.f32 %v7082_v48, %v7205_v61 }
 0x28f   : > { %v3666_v34 = vadd.f32 %v3665_v25, %v3553_v14  ;;  %v3556_v7 = vpop.f32.mrf.mxu0 }
 0x290   : > { %v3667_v27 = vpop.f32.mrf.mxu1  ;;  %v3557_v54 = vadd.f32 %v3556_v7, %v3444_v0 }
 0x291   : > { %4085 = vst [vmem:[%s7015_s24 + $0x10] sm:$0xff] %v3666_v34  ;;  %v3668_v21 = vadd.f32 %v3667_v27, %v3555_v56  ;;  %v3558_v9 = vpop.f32.mrf.mxu0  ;;  %v3464_v34 = vadd.f32 %v7088_v51, %v7197_v6 }
 0x292   : > { %v3669_v50 = vpop.f32.mrf.mxu1  ;;  %v3559_v62 = vadd.f32 %v3558_v9, %v3446_v37 }
 0x293   : > { %4086 = vst [vmem:[%s7015_s24 + $0x18] sm:$0xff] %v3668_v21  ;;  %v3670_v2 = vadd.f32 %v3669_v50, %v3557_v54  ;;  %v3562_v19 = vpop.f32.mrf.mxu0  ;;  %v3466_v54 = vadd.f32 %v7095_v59, %v7205_v61  ;;  %v3470_v50 = vadd.f32 %v7101_v41, %v7197_v6 }
 0x294   : > { %v3671_v4 = vpop.f32.mrf.mxu1  ;;  %v3563_v13 = vadd.f32 %v3562_v19, %v3450_v28 }
 0x295   : > { %4091 = vst [vmem:[%s7015_s24 + $0x40] sm:$0xff] %v3670_v2  ;;  %v3672_v16 = vadd.f32 %v3671_v4, %v3559_v62  ;;  %v3564_v58 = vpop.f32.mrf.mxu0 }
 0x296   : > { %v3675_v18 = vpop.f32.mrf.mxu1  ;;  %v3565_v63 = vadd.f32 %v3564_v58, %v3452_v47  ;;  %v3472_v47 = vadd.f32 %v7108_v49, %v7205_v61  ;;  %v3474_v58 = vadd.f32 %v7114_v43, %v7197_v6 }
 0x297   : > { %4092 = vst [vmem:[%s7015_s24 + $0x48] sm:$0xff] %v3672_v16  ;;  %v3676_v46 = vadd.f32 %v3675_v18, %v3563_v13  ;;  %v3566_v15 = vpop.f32.mrf.mxu0 }
 0x298   : > { %v3677_v53 = vpop.f32.mrf.mxu1  ;;  %v3567_v31 = vadd.f32 %v3566_v15, %v3454_v35 }
 0x299   : > { %4097 = vst [vmem:[%s7015_s24 + $0x70] sm:$0xff] %v3676_v46  ;;  %v3678_v30 = vadd.f32 %v3677_v53, %v3565_v63  ;;  %v3568_v8 = vpop.f32.mrf.mxu0  ;;  %v3476_v46 = vadd.f32 %v7120_v57, %v7205_v61 }
 0x29a   : > { %v3679_v29 = vpop.f32.mrf.mxu1  ;;  %v3569_v33 = vadd.f32 %v3568_v8, %v3456_v10 }
 0x29b   : > { %4098 = vst [vmem:[%s7015_s24 + $0x78] sm:$0xff] %v3678_v30  ;;  %v3680_v32 = vadd.f32 %v3679_v29, %v3567_v31  ;;  %v3572_v14 = vpop.f32.mrf.mxu0  ;;  %v3480_v31 = vadd.f32 %v7126_v38, %v7197_v6  ;;  %v3482_v29 = vadd.f32 %v7132_v36, %v7205_v61 }
 0x29c   : > { %v3681_v0 = vpop.f32.mrf.mxu1  ;;  %v3573_v45 = vadd.f32 %v3572_v14, %v3460_v24 }
 0x29d   : > { %4103 = vst [vmem:[%s7015_s24 + $0xa0] sm:$0xff] %v3680_v32  ;;  %v3682_v25 = vadd.f32 %v3681_v0, %v3569_v33  ;;  %v3574_v56 = vpop.f32.mrf.mxu0 }
 0x29e   : > { %v3685_v7 = vpop.f32.mrf.mxu1  ;;  %v3575_v11 = vadd.f32 %v3574_v56, %v3462_v23  ;;  %v3484_v23 = vadd.f32 %v7138_v1, %v7197_v6  ;;  %v3486_v56 = vadd.f32 %v7144_v60, %v7205_v61 }
 0x29f   : > { %4104 = vst [vmem:[%s7015_s24 + $0xa8] sm:$0xff] %v3682_v25  ;;  %v3686_v37 = vadd.f32 %v3685_v7, %v3573_v45  ;;  %v3576_v27 = vpop.f32.mrf.mxu0 }
 0x2a0   : > { %v3687_v21 = vpop.f32.mrf.mxu1  ;;  %v3577_v48 = vadd.f32 %v3576_v27, %v3464_v34 }
 0x2a1   : > { %4109 = vst [vmem:[%s7015_s24 + $0xd0] sm:$0xff] %v3686_v37  ;;  %v3688_v9 = vadd.f32 %v3687_v21, %v3575_v11  ;;  %v3578_v28 = vpop.f32.mrf.mxu0  ;;  %v3490_v37 = vadd.f32 %v7150_v42, %v7197_v6 }
 0x2a2   : > { %v3689_v62 = vpop.f32.mrf.mxu1  ;;  %v3579_v51 = vadd.f32 %v3578_v28, %v3466_v54 }
 0x2a3   : > { %4110 = vst [vmem:[%s7015_s24 + $0xd8] sm:$0xff] %v3688_v9  ;;  %v3690_v2 = vadd.f32 %v3689_v62, %v3577_v48  ;;  %v3582_v19 = vpop.f32.mrf.mxu0  ;;  %v3492_v48 = vadd.f32 %v7156_v12, %v7205_v61  ;;  %v3494_v62 = vadd.f32 %v7162_v5, %v7197_v6 }
 0x2a4   : > { %v3691_v4 = vpop.f32.mrf.mxu1  ;;  %v3583_v59 = vadd.f32 %v3582_v19, %v3470_v50 }
 0x2a5   : > { %4115 = vst [vmem:[%s7015_s24 + $0x100] sm:$0xff] %v3690_v2  ;;  %v3692_v13 = vadd.f32 %v3691_v4, %v3579_v51  ;;  %v3584_v16 = vpop.f32.mrf.mxu0 }
 0x2a6   : > { %v3695_v35 = vpop.f32.mrf.mxu1  ;;  %v3585_v41 = vadd.f32 %v3584_v16, %v3472_v47  ;;  %v3496_v47 = vadd.f32 %v7168_v3, %v7205_v61  ;;  %v3500_v16 = vadd.f32 %v7174_v40, %v7197_v6 }
 0x2a7   : > { %4116 = vst [vmem:[%s7015_s24 + $0x108] sm:$0xff] %v3692_v13  ;;  %v3696_v18 = vadd.f32 %v3695_v35, %v3583_v59  ;;  %v3586_v63 = vpop.f32.mrf.mxu0 }
 0x2a8   : > { %v3697_v15 = vpop.f32.mrf.mxu1  ;;  %v3587_v49 = vadd.f32 %v3586_v63, %v3474_v58 }
 0x2a9   : > { %4121 = vst [vmem:[%s7015_s24 + $0x130] sm:$0xff] %v3696_v18  ;;  %v3698_v10 = vadd.f32 %v3697_v15, %v3585_v41  ;;  %v3588_v53 = vpop.f32.mrf.mxu0  ;;  %v3502_v18 = vadd.f32 %v7180_v22, %v7205_v61 }
 0x2aa   : > { %v3699_v30 = vpop.f32.mrf.mxu1  ;;  %v3589_v43 = vadd.f32 %v3588_v53, %v3476_v46 }
 0x2ab   : > { %4122 = vst [vmem:[%s7015_s24 + $0x138] sm:$0xff] %v3698_v10  ;;  %v3700_v8 = vadd.f32 %v3699_v30, %v3587_v49  ;;  %v3592_v24 = vpop.f32.mrf.mxu0  ;;  %v3504_v49 = vadd.f32 %v7186_v26, %v7197_v6  ;;  %v3506_v30 = vadd.f32 %v7192_v44, %v7205_v61 }
 0x2ac   : > { %v3701_v33 = vpop.f32.mrf.mxu1  ;;  %v3593_v57 = vadd.f32 %v3592_v24, %v3480_v31 }
 0x2ad   : > { %4127 = vst [vmem:[%s7015_s24 + $0x160] sm:$0xff] %v3700_v8  ;;  %v3702_v32 = vadd.f32 %v3701_v33, %v3589_v43  ;;  %v3594_v14 = vpop.f32.mrf.mxu0 }
 0x2ae   : > { %v3705_v0 = vpop.f32.mrf.mxu1  ;;  %v3595_v38 = vadd.f32 %v3594_v14, %v3482_v29  ;;  %v3510_v29 = vadd.f32 %v7200_v55, %v7197_v6  ;;  %v3512_v14 = vadd.f32 %v7208_v17, %v7205_v61 }
 0x2af   : > { %4128 = vst [vmem:[%s7015_s24 + $0x168] sm:$0xff] %v3702_v32  ;;  %v3706_v45 = vadd.f32 %v3705_v0, %v3593_v57  ;;  %v3596_v25 = vpop.f32.mrf.mxu0 }
 0x2b0   : > { %v3707_v34 = vpop.f32.mrf.mxu1  ;;  %v3597_v36 = vadd.f32 %v3596_v25, %v3484_v23 }
 0x2b1   : > { %4133 = vst [vmem:[%s7015_s24 + $0x190] sm:$0xff] %v3706_v45  ;;  %v3708_v7 = vadd.f32 %v3707_v34, %v3595_v38  ;;  %v3598_v11 = vpop.f32.mrf.mxu0  ;;  %v3514_v45 = vadd.f32 %v7213_v20, %v7197_v6 }
 0x2b2   : > { %v3709_v27 = vpop.f32.mrf.mxu1  ;;  %v3599_v1 = vadd.f32 %v3598_v11, %v3486_v56 }
 0x2b3   : > { %4134 = vst [vmem:[%s7015_s24 + $0x198] sm:$0xff] %v3708_v7  ;;  %v3710_v54 = vadd.f32 %v3709_v27, %v3597_v36  ;;  %v3602_v21 = vpop.f32.mrf.mxu0  ;;  %v3516_v36 = vadd.f32 %v7218_v39, %v7205_v61 }
 0x2b4   : > { %v3711_v9 = vpop.f32.mrf.mxu1  ;;  %v3603_v60 = vadd.f32 %v3602_v21, %v3490_v37 }
 0x2b5   : > { %4139 = vst [vmem:[%s7015_s24 + $0x1c0] sm:$0xff] %v3710_v54  ;;  %v3712_v28 = vadd.f32 %v3711_v9, %v3599_v1  ;;  %v3604_v50 = vpop.f32.mrf.mxu0 }
 0x2b6   : > { %v3715_v51 = vpop.f32.mrf.mxu1  ;;  %v3605_v42 = vadd.f32 %v3604_v50, %v3492_v48 }
 0x2b7   : > { %4140 = vst [vmem:[%s7015_s24 + $0x1c8] sm:$0xff] %v3712_v28  ;;  %v3716_v2 = vadd.f32 %v3715_v51, %v3603_v60  ;;  %v3606_v19 = vpop.f32.mrf.mxu0 }
 0x2b8   : > { %v3717_v4 = vpop.f32.mrf.mxu1  ;;  %v3607_v12 = vadd.f32 %v3606_v19, %v3494_v62 }
 0x2b9   : > { %4145 = vst [vmem:[%s7015_s24 + $0x1f0] sm:$0xff] %v3716_v2  ;;  %v3718_v59 = vadd.f32 %v3717_v4, %v3605_v42  ;;  %v3608_v13 = vpop.f32.mrf.mxu0 }
 0x2ba   : > { %v3719_v58 = vpop.f32.mrf.mxu1  ;;  %v3609_v5 = vadd.f32 %v3608_v13, %v3496_v47 }
 0x2bb   : > { %4146 = vst [vmem:[%s7015_s24 + $0x1f8] sm:$0xff] %v3718_v59  ;;  %v3720_v35 = vadd.f32 %v3719_v58, %v3607_v12  ;;  %v3612_v41 = vpop.f32.mrf.mxu0 }
 0x2bc   : > { %v3721_v63 = vpop.f32.mrf.mxu1  ;;  %v3613_v3 = vadd.f32 %v3612_v41, %v3500_v16 }
 0x2bd   : > { %4151 = vst [vmem:[%s7015_s24 + $0x220] sm:$0xff] %v3720_v35  ;;  %v3722_v46 = vadd.f32 %v3721_v63, %v3609_v5  ;;  %v3614_v15 = vpop.f32.mrf.mxu0 }
 0x2be   : > { %v3725_v10 = vpop.f32.mrf.mxu1  ;;  %v3615_v40 = vadd.f32 %v3614_v15, %v3502_v18 }
 0x2bf   : > { %4152 = vst [vmem:[%s7015_s24 + $0x228] sm:$0xff] %v3722_v46  ;;  %v3726_v53 = vadd.f32 %v3725_v10, %v3613_v3  ;;  %v3616_v31 = vpop.f32.mrf.mxu0 }
 0x2c0   : > { %v3727_v43 = vpop.f32.mrf.mxu1  ;;  %v3617_v22 = vadd.f32 %v3616_v31, %v3504_v49 }
 0x2c1   : > { %4157 = vst [vmem:[%s7015_s24 + $0x250] sm:$0xff] %v3726_v53  ;;  %v3728_v8 = vadd.f32 %v3727_v43, %v3615_v40  ;;  %v3618_v24 = vpop.f32.mrf.mxu0 }
 0x2c2   : > { %v3729_v33 = vpop.f32.mrf.mxu1  ;;  %v3619_v26 = vadd.f32 %v3618_v24, %v3506_v30 }
 0x2c3   : > { %4158 = vst [vmem:[%s7015_s24 + $0x258] sm:$0xff] %v3728_v8  ;;  %v3730_v57 = vadd.f32 %v3729_v33, %v3617_v22  ;;  %v3622_v32 = vpop.f32.mrf.mxu0 }
 0x2c4   : > { %v3731_v23 = vpop.f32.mrf.mxu1  ;;  %v3623_v44 = vadd.f32 %v3622_v32, %v3510_v29 }
 0x2c5   : > { %4163 = vst [vmem:[%s7015_s24 + $0x280] sm:$0xff] %v3730_v57  ;;  %v3732_v0 = vadd.f32 %v3731_v23, %v3619_v26  ;;  %v3624_v38 = vpop.f32.mrf.mxu0 }
 0x2c6   : > { %v3735_v25 = vpop.f32.mrf.mxu1  ;;  %v3625_v55 = vadd.f32 %v3624_v38, %v3512_v14 }
 0x2c7   : > { %4164 = vst [vmem:[%s7015_s24 + $0x288] sm:$0xff] %v3732_v0  ;;  %v3736_v56 = vadd.f32 %v3735_v25, %v3623_v44  ;;  %v3626_v34 = vpop.f32.mrf.mxu0 }
 0x2c8   : > { %v3737_v17 = vpop.f32.mrf.mxu1  ;;  %v3627_v7 = vadd.f32 %v3626_v34, %v3514_v45 }
 0x2c9   : > { %4169 = vst [vmem:[%s7015_s24 + $0x2b0] sm:$0xff] %v3736_v56  ;;  %v3738_v11 = vadd.f32 %v3737_v17, %v3625_v55  ;;  %v3628_v37 = vpop.f32.mrf.mxu0  ;;  %v7877_v17 = vld [vmem:[#allocation22_spill] sm:$0xff] }
 0x2ca   : > { %v3739_v27 = vpop.f32.mrf.mxu1  ;;  %v3629_v1 = vadd.f32 %v3628_v37, %v3516_v36 }
 0x2cb   : > { %4170 = vst [vmem:[%s7015_s24 + $0x2b8] sm:$0xff] %v3738_v11  ;;  %v3740_v54 = vadd.f32 %v3739_v27, %v3627_v7  ;;  %v7310_v6 = vpop.f32.mrf.mxu0  ;;  %v7406_v7 = vrot.slane %v7870_v52, %v7877_v17  ;;  %v7878_v27 = vld [vmem:[#allocation21_spill] sm:$0xff] }
 0x2cc   : > { %v3741_v20 = vpop.f32.mrf.mxu1 }
 0x2cd   : > { %4175 = vst [vmem:[%s7015_s24 + $0x2e0] sm:$0xff] %v3740_v54  ;;  %v3742_v21 = vadd.f32 %v3741_v20, %v3629_v1  ;;  %v7313_v48 = vpop.f32.mrf.mxu0  ;;  %v7414_v1 = vrot.slane %v7870_v52, %v7878_v27 }
 0x2ce   : > { %v7315_v9 = vpop.f32.mrf.mxu1 }
 0x2cf   : > { %4176 = vst [vmem:[%s7015_s24 + $0x2e8] sm:$0xff] %v3742_v21  ;;  %v7318_v61 = vpop.f32.mrf.mxu0  ;;  %v3779_v21 = vadd.f32 %v7310_v6, %v7406_v7  ;;  %v3781_v17 = vadd.f32 %v7313_v48, %v7414_v1 }
 0x2d0   : > { %v7320_v39 = vpop.f32.mrf.mxu1 }
 0x2d1   : > { %v7322_v60 = vpop.f32.mrf.mxu0  ;;  %v3892_v27 = vadd.f32 %v7315_v9, %v3779_v21 }
 0x2d2   : > { %v7324_v28 = vpop.f32.mrf.mxu1  ;;  %v3785_v48 = vadd.f32 %v7322_v60, %v7414_v1 }
 0x2d3   : > { %v7326_v50 = vpop.f32.mrf.mxu0 }
 0x2d4   : > { %v7328_v62 = vpop.f32.mrf.mxu1 }
 0x2d5   : > { %v7330_v51 = vpop.f32.mrf.mxu0 }
 0x2d6   : > { %v7332_v42 = vpop.f32.mrf.mxu1 }
 0x2d7   : > { %v7334_v2 = vpop.f32.mrf.mxu0 }
 0x2d8   : > { %v7336_v19 = vpop.f32.mrf.mxu1 }
 0x2d9   : > { %v7338_v47 = vpop.f32.mrf.mxu0 }
 0x2da   : > { %v7340_v4 = vpop.f32.mrf.mxu1 }
 0x2db   : > { %v7342_v12 = vpop.f32.mrf.mxu0 }
 0x2dc   : > { %v7344_v59 = vpop.f32.mrf.mxu1 }
 0x2dd   : > { %v7346_v13 = vpop.f32.mrf.mxu0 }
 0x2de   : > { %v7348_v16 = vpop.f32.mrf.mxu1 }
 0x2df   : > { %v7350_v58 = vpop.f32.mrf.mxu0 }
 0x2e0   : > { %v7352_v5 = vpop.f32.mrf.mxu1 }
 0x2e1   : > { %v7354_v35 = vpop.f32.mrf.mxu0 }
 0x2e2   : > { %v7356_v41 = vpop.f32.mrf.mxu1 }
 0x2e3   : > { %v7358_v18 = vpop.f32.mrf.mxu0 }
 0x2e4   : > { %v7360_v63 = vpop.f32.mrf.mxu1 }
 0x2e5   : > { %v7362_v3 = vpop.f32.mrf.mxu0 }
 0x2e6   : > { %v7364_v46 = vpop.f32.mrf.mxu1 }
 0x2e7   : > { %v7366_v15 = vpop.f32.mrf.mxu0 }
 0x2e8   : > { %7872 = vst [vmem:[#allocation56_spill] sm:$0xff] %v7366_v15  ;;  %v7368_v49 = vpop.f32.mrf.mxu1 }
 0x2e9   : > { %7873 = vst [vmem:[#allocation32_spill] sm:$0xff] %v7368_v49  ;;  %v7370_v10 = vpop.f32.mrf.mxu0 }
 0x2ea   : > { %7874 = vst [vmem:[#allocation34_spill] sm:$0xff] %v7370_v10  ;;  %v7372_v40 = vpop.f32.mrf.mxu1 }
 0x2eb   : > { %7875 = vst [vmem:[#allocation38_spill] sm:$0xff] %v7372_v40  ;;  %v3818_v53 = vpop.f32.mrf.mxu0 }
 0x2ec   : > { %v7374_v31 = vpop.f32.mrf.mxu1  ;;  %v3819_v49 = vadd.f32 %v3818_v53, %v7406_v7 }
 0x2ed   : > { %7876 = vst [vmem:[#allocation41_spill] sm:$0xff] %v7374_v31  ;;  %v3820_v30 = vpop.f32.mrf.mxu0 }
 0x2ee   : > { %v3931_v43 = vpop.f32.mrf.mxu1 }
 0x2ef   : > { %v3822_v22 = vpop.f32.mrf.mxu0 }
 0x2f0   : > { %v3933_v8 = vpop.f32.mrf.mxu1  ;;  %v3823_v9 = vadd.f32 %v3822_v22, %v7406_v7 }
 0x2f1   : > { %v3824_v24 = vpop.f32.mrf.mxu0 }
 0x2f2   : > { %v3935_v29 = vpop.f32.mrf.mxu1  ;;  %v3825_v60 = vadd.f32 %v3824_v24, %v7414_v1 }
 0x2f3   : > { %v3828_v33 = vpop.f32.mrf.mxu0  ;;  %v3936_v22 = vadd.f32 %v3935_v29, %v3823_v9 }
 0x2f4   : > { %v7376_v26 = vpop.f32.mrf.mxu1 }
 0x2f5   : > { %v7378_v57 = vpop.f32.mrf.mxu0 }
 0x2f6   : > { %v7380_v32 = vpop.f32.mrf.mxu1 }
 0x2f7   : > { %v7382_v14 = vpop.f32.mrf.mxu0 }
 0x2f8   : > { %v7384_v23 = vpop.f32.mrf.mxu1 }
 0x2f9   : > { %v7386_v44 = vpop.f32.mrf.mxu0 }
 0x2fa   : > { %v7388_v0 = vpop.f32.mrf.mxu1 }
 0x2fb   : > { %v7390_v38 = vpop.f32.mrf.mxu0 }
 0x2fc   : > { %v7392_v45 = vpop.f32.mrf.mxu1 }
 0x2fd   : > { %v7394_v25 = vpop.f32.mrf.mxu0 }
 0x2fe   : > { %v7396_v55 = vpop.f32.mrf.mxu1 }
 0x2ff   : > { %v7398_v56 = vpop.f32.mrf.mxu0 }
 0x300   : > { %v7400_v34 = vpop.f32.mrf.mxu1 }
 0x301   : > { %v7402_v36 = vpop.f32.mrf.mxu0 }
 0x302   : > { %v7408_v11 = vpop.f32.mrf.mxu1 }
 0x303   : > { %v7410_v37 = vpop.f32.mrf.mxu0 }
 0x304   : > { %v7416_v54 = vpop.f32.mrf.mxu1 }
 0x305   : > { %7879 = vst [vmem:[#allocation43_spill] sm:$0xff] %v7416_v54  ;;  %v7418_v20 = vpop.f32.mrf.mxu0  ;;  %v3894_v54 = vadd.f32 %v7320_v39, %v3781_v17 }
 0x306   : > { %7880 = vst [vmem:[#allocation45_spill] sm:$0xff] %v7418_v20  ;;  %v7422_v31 = vpop.f32.mrf.mxu1  ;;  %v3783_v20 = vadd.f32 %v7318_v61, %v7406_v7 }
 0x307   : > { %7881 = vst [vmem:[#allocation49_spill] sm:$0xff] %v7422_v31  ;;  %v7424_v40 = vpop.f32.mrf.mxu0  ;;  %v3821_v31 = vadd.f32 %v3820_v30, %v7414_v1  ;;  %v3789_v30 = vadd.f32 %v7326_v50, %v7406_v7  ;;  %v3829_v50 = vadd.f32 %v3828_v33, %v7406_v7 }
 0x308   : > { %7882 = vst [vmem:[#allocation51_spill] sm:$0xff] %v7424_v40  ;;  %v7428_v10 = vpop.f32.mrf.mxu1  ;;  %v3896_v61 = vadd.f32 %v7324_v28, %v3783_v20  ;;  %v3938_v20 = vadd.f32 %v7376_v26, %v3825_v60  ;;  %v3833_v26 = vadd.f32 %v7382_v14, %v7406_v7 }
 0x309   : > { %7883 = vst [vmem:[#allocation53_spill] sm:$0xff] %v7428_v10  ;;  %v7431_v52 = vpop.f32.mrf.mxu0  ;;  %v3934_v17 = vadd.f32 %v3933_v8, %v3821_v31  ;;  %v3902_v24 = vadd.f32 %v7332_v42, %v3789_v30  ;;  %v3795_v42 = vadd.f32 %v7338_v47, %v7414_v1 }
 0x30a   : > { %7884 = vst [vmem:[#allocation55_spill] sm:$0xff] %v7431_v52  ;;  %v7436_v6 = vpop.f32.mrf.mxu1  ;;  %v3932_v52 = vadd.f32 %v3931_v43, %v3819_v49  ;;  %v3898_v49 = vadd.f32 %v7328_v62, %v3785_v48 }
 0x30b   : > { %7885 = vst [vmem:[#allocation57_spill] sm:$0xff] %v7436_v6  ;;  %v4004_v40 = vpop.f32.mrf.mxu0 }
 0x30c   : > { %v7442_v10 = vpop.f32.mrf.mxu1  ;;  %v4005_v53 = vadd.f32 %v4004_v40, %v3892_v27  ;;  %v3791_v40 = vadd.f32 %v7330_v51, %v7414_v1  ;;  %v3942_v27 = vadd.f32 %v7380_v32, %v3829_v50  ;;  %v3835_v32 = vadd.f32 %v7386_v44, %v7414_v1 }
 0x30d   : > { %7886 = vst [vmem:[#allocation58_spill] sm:$0xff] %v7442_v10  ;;  %v4006_v21 = vpop.f32.mrf.mxu0 }
 0x30e   : > { %4087 = vst [vmem:[%s7015_s24 + $0x20] sm:$0xff] %v4005_v53  ;;  %v4044_v6 = vpop.f32.mrf.mxu1  ;;  %v4007_v39 = vadd.f32 %v4006_v21, %v3894_v54  ;;  %v3793_v54 = vadd.f32 %v7334_v2, %v7406_v7  ;;  %v3904_v33 = vadd.f32 %v7336_v19, %v3791_v40  ;;  %v3799_v19 = vadd.f32 %v7342_v12, %v7406_v7 }
 0x30f   : > { %v4045_v10 = vadd.f32 %v4044_v6, %v3932_v52  ;;  %v4008_v15 = vpop.f32.mrf.mxu0  ;;  %v3948_v40 = vadd.f32 %v7392_v45, %v3835_v32  ;;  %v3843_v45 = vadd.f32 %v7398_v56, %v7406_v7  ;;  %v7893_v32 = vld [vmem:[#allocation51_spill] sm:$0xff] }
 0x310   : > { %4088 = vst [vmem:[%s7015_s24 + $0x28] sm:$0xff] %v4007_v39  ;;  %v4046_v28 = vpop.f32.mrf.mxu1  ;;  %v4009_v43 = vadd.f32 %v4008_v15, %v3896_v61  ;;  %v3831_v15 = vadd.f32 %v7378_v57, %v7414_v1  ;;  %v3906_v48 = vadd.f32 %v7340_v4, %v3793_v54  ;;  %v3908_v61 = vadd.f32 %v7344_v59, %v3795_v42 }
 0x311   : > { %4135 = vst [vmem:[%s7015_s24 + $0x1a0] sm:$0xff] %v4045_v10  ;;  %v4047_v31 = vadd.f32 %v4046_v28, %v3934_v17  ;;  %v4010_v8 = vpop.f32.mrf.mxu0  ;;  %v3801_v4 = vadd.f32 %v7346_v13, %v7414_v1  ;;  %v3946_v39 = vadd.f32 %v7388_v0, %v3833_v26  ;;  %v3912_v60 = vadd.f32 %v7348_v16, %v3799_v19 }
 0x312   : > { %4093 = vst [vmem:[%s7015_s24 + $0x50] sm:$0xff] %v4009_v43  ;;  %v4048_v62 = vpop.f32.mrf.mxu1  ;;  %v4011_v51 = vadd.f32 %v4010_v8, %v3898_v49  ;;  %v3944_v9 = vadd.f32 %v7384_v23, %v3831_v15  ;;  %v3839_v23 = vadd.f32 %v7390_v38, %v7406_v7  ;;  %v3803_v59 = vadd.f32 %v7350_v58, %v7406_v7 }
 0x313   : > { %4136 = vst [vmem:[%s7015_s24 + $0x1a8] sm:$0xff] %v4047_v31  ;;  %v4049_v29 = vadd.f32 %v4048_v62, %v3936_v22  ;;  %v4014_v10 = vpop.f32.mrf.mxu0  ;;  %v3841_v0 = vadd.f32 %v7394_v25, %v7414_v1  ;;  %v3914_v43 = vadd.f32 %v7352_v5, %v3801_v4  ;;  %v3805_v16 = vadd.f32 %v7354_v35, %v7414_v1  ;;  %v7894_v4 = vld [vmem:[#allocation38_spill] sm:$0xff] }
 0x314   : > { %4094 = vst [vmem:[%s7015_s24 + $0x58] sm:$0xff] %v4011_v51  ;;  %v4050_v2 = vpop.f32.mrf.mxu1  ;;  %v4015_v52 = vadd.f32 %v4014_v10, %v3902_v24  ;;  %v3952_v50 = vadd.f32 %v7396_v55, %v3839_v23  ;;  %v3916_v8 = vadd.f32 %v7356_v41, %v3803_v59  ;;  %v3809_v5 = vadd.f32 %v7358_v18, %v7406_v7  ;;  %v7895_v23 = vld [vmem:[#allocation53_spill] sm:$0xff] }
 0x315   : > { %4141 = vst [vmem:[%s7015_s24 + $0x1d0] sm:$0xff] %v4049_v29  ;;  %v4051_v57 = vadd.f32 %v4050_v2, %v3938_v20  ;;  %v4016_v6 = vpop.f32.mrf.mxu0  ;;  %v3954_v54 = vadd.f32 %v7400_v34, %v3841_v0  ;;  %v3845_v55 = vadd.f32 %v7402_v36, %v7414_v1  ;;  %v3918_v51 = vadd.f32 %v7360_v63, %v3805_v16  ;;  %v7887_v63 = vld [vmem:[#allocation56_spill] sm:$0xff]  ;;  %v7888_v2 = vld [vmem:[#allocation43_spill] sm:$0xff] }
 0x316   : > { %4099 = vst [vmem:[%s7015_s24 + $0x80] sm:$0xff] %v4015_v52  ;;  %v4054_v47 = vpop.f32.mrf.mxu1  ;;  %v4017_v53 = vadd.f32 %v4016_v6, %v3904_v33  ;;  %v3811_v41 = vadd.f32 %v7362_v3, %v7414_v1  ;;  %v3956_v15 = vadd.f32 %v7408_v11, %v3843_v45  ;;  %v3849_v34 = vadd.f32 %v7410_v37, %v7406_v7  ;;  %v7889_v11 = vld [vmem:[#allocation45_spill] sm:$0xff] }
 0x317   : > { %4142 = vst [vmem:[%s7015_s24 + $0x1d8] sm:$0xff] %v4051_v57  ;;  %v4055_v14 = vadd.f32 %v4054_v47, %v3942_v27  ;;  %v4018_v21 = vpop.f32.mrf.mxu0  ;;  %v3922_v10 = vadd.f32 %v7364_v46, %v3809_v5  ;;  %v3813_v33 = vadd.f32 %v7887_v63, %v7406_v7  ;;  %v3958_v52 = vadd.f32 %v7888_v2, %v3845_v55  ;;  %v7890_v57 = vld [vmem:[#allocation32_spill] sm:$0xff]  ;;  %v7891_v46 = vld [vmem:[#allocation34_spill] sm:$0xff] }
 0x318   : > { %4100 = vst [vmem:[%s7015_s24 + $0x88] sm:$0xff] %v4017_v53  ;;  %v4056_v12 = vpop.f32.mrf.mxu1  ;;  %v4019_v30 = vadd.f32 %v4018_v21, %v3906_v48  ;;  %v3851_v27 = vadd.f32 %v7889_v11, %v7414_v1  ;;  %v3924_v6 = vadd.f32 %v7890_v57, %v3811_v41  ;;  %v3815_v48 = vadd.f32 %v7891_v46, %v7414_v1  ;;  %v7892_v53 = vld [vmem:[#allocation49_spill] sm:$0xff] }
 0x319   : > { %4147 = vst [vmem:[%s7015_s24 + $0x200] sm:$0xff] %v4055_v14  ;;  %v4057_v44 = vadd.f32 %v4056_v12, %v3944_v9  ;;  %v4020_v17 = vpop.f32.mrf.mxu0  ;;  %v3962_v9 = vadd.f32 %v7892_v53, %v3849_v34  ;;  %v3853_v14 = vadd.f32 %v7893_v32, %v7406_v7  ;;  %v3926_v12 = vadd.f32 %v7894_v4, %v3813_v33 }
 0x31a   : > { %4105 = vst [vmem:[%s7015_s24 + $0xb0] sm:$0xff] %v4019_v30  ;;  %v4058_v13 = vpop.f32.mrf.mxu1  ;;  %v4021_v49 = vadd.f32 %v4020_v17, %v3908_v61  ;;  %v7896_v17 = vld [vmem:[#allocation55_spill] sm:$0xff] }
 0x31b   : > { %4148 = vst [vmem:[%s7015_s24 + $0x208] sm:$0xff] %v4057_v44  ;;  %v4059_v38 = vadd.f32 %v4058_v13, %v3946_v39  ;;  %v4024_v28 = vpop.f32.mrf.mxu0  ;;  %v3964_v44 = vadd.f32 %v7895_v23, %v3851_v27  ;;  %v7897_v13 = vld [vmem:[#allocation41_spill] sm:$0xff] }
 0x31c   : > { %4106 = vst [vmem:[%s7015_s24 + $0xb8] sm:$0xff] %v4021_v49  ;;  %v4060_v58 = vpop.f32.mrf.mxu1  ;;  %v4025_v22 = vadd.f32 %v4024_v28, %v3912_v60  ;;  %v3855_v60 = vadd.f32 %v7896_v17, %v7414_v1  ;;  %v3928_v49 = vadd.f32 %v7897_v13, %v3815_v48 }
 0x31d   : > { %4153 = vst [vmem:[%s7015_s24 + $0x230] sm:$0xff] %v4059_v38  ;;  %v4061_v25 = vadd.f32 %v4060_v58, %v3948_v40  ;;  %v4026_v31 = vpop.f32.mrf.mxu0  ;;  %v7898_v38 = vld [vmem:[#allocation57_spill] sm:$0xff] }
 0x31e   : > { %4111 = vst [vmem:[%s7015_s24 + $0xe0] sm:$0xff] %v4025_v22  ;;  %v4064_v35 = vpop.f32.mrf.mxu1  ;;  %v4027_v24 = vadd.f32 %v4026_v31, %v3914_v43  ;;  %v3966_v28 = vadd.f32 %v7898_v38, %v3853_v14  ;;  %v7899_v22 = vld [vmem:[#allocation58_spill] sm:$0xff] }
 0x31f   : > { %4154 = vst [vmem:[%s7015_s24 + $0x238] sm:$0xff] %v4061_v25  ;;  %v4065_v56 = vadd.f32 %v4064_v35, %v3952_v50  ;;  %v4028_v62 = vpop.f32.mrf.mxu0  ;;  %v3968_v50 = vadd.f32 %v7899_v22, %v3855_v60 }
 0x320   : > { %4112 = vst [vmem:[%s7015_s24 + $0xe8] sm:$0xff] %v4027_v24  ;;  %v4066_v18 = vpop.f32.mrf.mxu1  ;;  %v4029_v20 = vadd.f32 %v4028_v62, %v3916_v8 }
 0x321   : > { %4159 = vst [vmem:[%s7015_s24 + $0x260] sm:$0xff] %v4065_v56  ;;  %v4067_v36 = vadd.f32 %v4066_v18, %v3954_v54  ;;  %v4030_v29 = vpop.f32.mrf.mxu0 }
 0x322   : > { %4117 = vst [vmem:[%s7015_s24 + $0x110] sm:$0xff] %v4029_v20  ;;  %v4068_v3 = vpop.f32.mrf.mxu1  ;;  %v4031_v42 = vadd.f32 %v4030_v29, %v3918_v51 }
 0x323   : > { %4160 = vst [vmem:[%s7015_s24 + $0x268] sm:$0xff] %v4067_v36  ;;  %v4069_v37 = vadd.f32 %v4068_v3, %v3956_v15  ;;  %v4034_v26 = vpop.f32.mrf.mxu0 }
 0x324   : > { %4118 = vst [vmem:[%s7015_s24 + $0x118] sm:$0xff] %v4031_v42  ;;  %v4070_v19 = vpop.f32.mrf.mxu1  ;;  %v4035_v47 = vadd.f32 %v4034_v26, %v3922_v10 }
 0x325   : > { %4165 = vst [vmem:[%s7015_s24 + $0x290] sm:$0xff] %v4069_v37  ;;  %v4071_v21 = vadd.f32 %v4070_v19, %v3958_v52  ;;  %v4036_v61 = vpop.f32.mrf.mxu0 }
 0x326   : > { %4123 = vst [vmem:[%s7015_s24 + $0x140] sm:$0xff] %v4035_v47  ;;  %v4074_v30 = vpop.f32.mrf.mxu1  ;;  %v4037_v39 = vadd.f32 %v4036_v61, %v3924_v6 }
 0x327   : > { %4166 = vst [vmem:[%s7015_s24 + $0x298] sm:$0xff] %v4071_v21  ;;  %v4075_v59 = vadd.f32 %v4074_v30, %v3962_v9  ;;  %v4038_v7 = vpop.f32.mrf.mxu0 }
 0x328   : > { %4124 = vst [vmem:[%s7015_s24 + $0x148] sm:$0xff] %v4037_v39  ;;  %v4076_v40 = vpop.f32.mrf.mxu1  ;;  %v4039_v0 = vadd.f32 %v4038_v7, %v3926_v12 }
 0x329   : > { %4171 = vst [vmem:[%s7015_s24 + $0x2c0] sm:$0xff] %v4075_v59  ;;  %v4077_v43 = vadd.f32 %v4076_v40, %v3964_v44  ;;  %v4040_v1 = vpop.f32.mrf.mxu0 }
 0x32a   : > { %4129 = vst [vmem:[%s7015_s24 + $0x170] sm:$0xff] %v4039_v0  ;;  %v4078_v16 = vpop.f32.mrf.mxu1  ;;  %v4041_v58 = vadd.f32 %v4040_v1, %v3928_v49 }
 0x32b   : > { %4172 = vst [vmem:[%s7015_s24 + $0x2c8] sm:$0xff] %v4077_v43  ;;  %v4079_v45 = vadd.f32 %v4078_v16, %v3966_v28 }
 0x32c   : > { %4130 = vst [vmem:[%s7015_s24 + $0x178] sm:$0xff] %v4041_v58  ;;  %v4080_v25 = vpop.f32.mrf.mxu1 }
 0x32d   : > { %4177 = vst [vmem:[%s7015_s24 + $0x2f0] sm:$0xff] %v4079_v45  ;;  %v4081_v31 = vadd.f32 %v4080_v25, %v3968_v50 }
 0x32f   : > { %4178 = vst [vmem:[%s7015_s24 + $0x2f8] sm:$0xff] %v4081_v31 }
 0x330   : > { %5447 = shalt.err (!%p5444_p12)
}
 0x331   : > { %s5448_s7 = scalar_lea.hbm %s7555_s29, 12288  ;;  %s5452_s15 = scalar_lea.hbm %s7606_s5, 36864 }
 0x332   : > { %p5449_p9 = scmp.ne.s32.totalorder %s7555_s29, %s5448_s7  ;;  %p5453_p13 = scmp.lt.s32.totalorder %s7555_s29, %s7606_s5 }
 0x333   : > { %p5454_p0 = scmp.lt.s32.totalorder %s5452_s15, %s5448_s7 }
 0x334   : > { %p5450_p4 = pnand %p5449_p9, %p7900_p2 }
 0x335   : > { %p5455_p1 = por %p5454_p0, %p5453_p13 }
 0x336   : > { %p5451_p10 = pneg %p5450_p4 }
 0x338   : > { %p5456_p11 = pnand %p5455_p1, %p5451_p10 }
 0x33a   : > { %5459 = shalt.err (!%p5456_p11)
}
 0x33b   : > { %s5518_s26 = smov 768   ;;  %s5519_s27 = smov 48  }
 0x33c   : > { %4667 = dma.vmem_to_hbm [thread:$0]  (%p7900_p2), %s7558_s16, 12288, %s7555_s29, %s4180_s30, %s5518_s26, %s5518_s26, %s5519_s27  }
 0x33d PF: > { %p4699_p3 = scmp.ge.s32.totalorder %s5506_s21, 2  ;;  %s4209_s22 = sand.u32 1, %s5494_s18  }
 0x33e   : > { %p7901_p5 = scmp.ne.s32.totalorder %s7692_s25, 0  ;;  %s4210_s13 = scalar_lea.sflag [#allocation4], %s4209_s22 }
 0x340   : > { %p4687_p6 = pnand %p4699_p3, %p7901_p5 }
 0x342   : > { %p4688_p8 = pneg %p4687_p6 }
 0x344   : > { %5489 = dma.done.wait (%p4688_p8), %s4210_s13, 12288  }
 0x345   : > { %5491 = vsyncadd (%p4688_p8), %s4210_s13, 4294955008  ;;  %p20_p7 = scmp.ge.s32.totalorder %s5637_s8, 5   ;;  %s7902_s18 = smov %s5498_s19 }
 0x346   : > { %s7903_s19 = smov %s5502_s20  ;;  %s7904_s20 = smov %s5653_s12 }
 0x347   : > { %s7905_s21 = smov %s5637_s8  ;;  %22 = sbr.rel (!%p20_p7) target bundleno = 7 (0x7), region = 101 }
 0x34c   :  { %4215 = vsyncpa [#allocation3], 1 }
 0x34d   :  { %4217 = vsyncpa [#allocation3 + $0x1], 1 }
 0x34e   :  { %4218 = vsyncpa [#allocation6], 1 }
 0x34f   :  { %4219 = vsyncpa [#allocation9], 1 }
 0x350   :  { %4220 = vsyncpa [#allocation4], 1 }
 0x351   :  { %4222 = vsyncpa [#allocation4 + $0x1], 1 }

</bundles_post_ra>
